<compile_context>
chip_gen: v7x
topology: tpu7x:2x2x1
jax: 0.10.0
libtpu: 0.0.40
codegen_flags: <defaults>
</compile_context>

<pallas_src>
import numpy as np
import jax
import jax.numpy as jnp
from jax import lax
from jax.experimental import pallas as pl
from jax.experimental.pallas import tpu as pltpu

LANE = 128


def _round_up(x, m):
    return (x + m - 1) // m * m


def _choose_bblk(B, max_bblk=32):
    """Batch rows per grid step.  Blocks must either cover the whole batch or
    have an 8-aligned sublane extent; prefer >= 2 grid steps (v7x has 2 TCs)."""
    best = B if B <= max_bblk else 1
    for d in range(8, min(B, max_bblk) + 1, 8):
        if B % d == 0:
            best = d
    if best == B and B % 16 == 0 and (B // 2) % 8 == 0:
        best = B // 2
    return best


def _vmem_limit_bytes():
    cap = 64 * 1024 * 1024
    try:
        info = pltpu.get_tpu_info()
        cap = int(getattr(info, 'vmem_capacity_bytes', cap))
    except Exception:
        pass
    return max(32 * 1024 * 1024, min(cap * 3 // 4, 100 * 1024 * 1024))


# --------------------------------------------------------------------------- #
# constant structural matrices (numpy, built once at init)                     #
# --------------------------------------------------------------------------- #
def _avg_pool_matrix(H, W, Hh, Wh, HWp):
    """(H*W, HWp) operator: flat HxW -> flat (H-1)x(W-1) 2x2/s1 average pool."""
    A = np.zeros((H * W, HWp), np.float32)
    for h in range(Hh):
        for w in range(Wh):
            col = h * Wh + w
            for dh in (0, 1):
                for dw in (0, 1):
                    A[(h + dh) * W + (w + dw), col] += 0.25
    return A


def _dft_matrices(Hh, Wh, HWp):
    """Packed Kronecker 2-D DFT operators (padded to HWp lanes)."""
    eh = np.exp(-2j * np.pi * np.outer(np.arange(Hh), np.arange(Hh)) / Hh)
    ew = np.exp(-2j * np.pi * np.outer(np.arange(Wh), np.arange(Wh)) / Wh)
    F2 = np.kron(eh, ew)
    n = Hh * Wh
    Fr = np.zeros((HWp, HWp), np.float32)
    Fi = np.zeros((HWp, HWp), np.float32)
    Fr[:n, :n] = F2.real
    Fi[:n, :n] = F2.imag
    ffwd = np.concatenate([Fr, Fi], axis=1)                # x @ ffwd = [Re|Im] fft2
    finv = np.block([[Fr, -Fi], [Fi, Fr]]) / float(n)      # [Re|Im] @ finv = [Re|Im] ifft2
    return ffwd, finv


def _conv3x3s2_gather(Hh, Wh, Ho, Wo, HWp):
    """G[t, q, p] = 1 iff flat input pos q feeds tap t of output pos p (pad=1, s=2)."""
    G = np.zeros((9, HWp, Ho * Wo), np.float32)
    for kh in range(3):
        for kw in range(3):
            t = kh * 3 + kw
            for oh in range(Ho):
                for ow in range(Wo):
                    ih, iw = 2 * oh - 1 + kh, 2 * ow - 1 + kw
                    if 0 <= ih < Hh and 0 <= iw < Wh:
                        G[t, ih * Wh + iw, oh * Wo + ow] = 1.0
    return G


def _maxpool_gather(Hh, Wh, Ho, Wo, HWp):
    """3x3/s2/p1 max-pool gather (HWp, 9*LANE).  Out-of-bounds taps are routed to
    the (always in-bounds) window centre, so no -inf mask constant is needed."""
    S = np.zeros((HWp, 9 * LANE), np.float32)
    for oh in range(Ho):
        for ow in range(Wo):
            p = oh * Wo + ow
            ch_, cw_ = 2 * oh, 2 * ow
            for kh in range(3):
                for kw in range(3):
                    t = kh * 3 + kw
                    ih, iw = 2 * oh - 1 + kh, 2 * ow - 1 + kw
                    if not (0 <= ih < Hh and 0 <= iw < Wh):
                        ih, iw = ch_, cw_
                    S[ih * Wh + iw, t * LANE + p] = 1.0
    return S


# --------------------------------------------------------------------------- #
# weight -> operator folding (runs once, outside the forward path)             #
# --------------------------------------------------------------------------- #
def _fold_bn(w, bn, eps=1e-5):
    g, b, m, v = bn
    s = g / jnp.sqrt(v + eps)
    return w * s[:, None, None, None], b - m * s


def _conv_operator(w_eff, G):
    """3x3/s2 conv as a matmul operator: rows [ci*HWp+q], cols [co*P+p]."""
    Co, Ci = w_eff.shape[:2]
    HWp, P = G.shape[1], G.shape[2]
    wt = w_eff.reshape(Co, Ci, 9)
    M = jnp.einsum('tqp,oct->cqop', jnp.asarray(G), wt)    # (Ci, HWp, Co, P)
    return M.reshape(Ci * HWp, Co * P)


def _chan_operator(w, P, blk):
    """1x1 conv as row operator: rows [ci*blk+q] (valid q<P), cols [co*P+p]."""
    Co, Ci = w.shape
    sel = np.zeros((blk, P), np.float32)
    sel[:P, :P] = np.eye(P, dtype=np.float32)
    M = jnp.einsum('qp,oc->cqop', jnp.asarray(sel), w)     # (Ci, blk, Co, P)
    return M.reshape(Ci * blk, Co * P)


def build_operators(params, x_shape, max_bblk=32):
    """Fold BN + bake weights / pooling / DFT into lane-dense operator matrices."""
    B, C1, H, W = x_shape
    ch = C1 // 2
    c = params['cv1_w'].shape[0]
    assert ch == c, "FFM(dim=c2//2) applied to x2 (c1//2 ch) requires c1 == c2"
    Hh, Wh = H - 1, W - 1                                  # after 2x2/s1 avg pool
    Ho = (Hh + 2 - 3) // 2 + 1
    Wo = (Wh + 2 - 3) // 2 + 1
    P = Ho * Wo
    HW = H * W
    HWp = _round_up(Hh * Wh, LANE)
    assert HW % LANE == 0 and (c * P) % LANE == 0 and P <= LANE

    Bk = _choose_bblk(B, max_bblk)

    apool_np = _avg_pool_matrix(H, W, Hh, Wh, HWp)
    ffwd_np, finv_np = _dft_matrices(Hh, Wh, HWp)
    G_np = _conv3x3s2_gather(Hh, Wh, Ho, Wo, HWp)
    spool_np = _maxpool_gather(Hh, Wh, Ho, Wo, HWp)

    wcv1, bcv1 = _fold_bn(params['cv1_w'], params['cv1_bn'])
    wres, bres = _fold_bn(params['res_w'], params['res_bn'])
    wcv2, bcv2 = _fold_bn(params['cv2_w'], params['cv2_bn'])
    wred, bred = _fold_bn(params['red_w'], params['red_bn'])

    bf16, f32 = jnp.bfloat16, jnp.float32
    cP = c * P

    # cv1: fold the 2x2/s1 avg pool into the 3x3/s2 conv operator (rows [ci*HW+r]).
    mcv1 = _conv_operator(wcv1, G_np)                              # (ch*HWp, cP)
    mcv1f = jnp.einsum('rq,cqo->cro', jnp.asarray(apool_np),
                       mcv1.reshape(ch, HWp, cP)).reshape(ch * HW, cP)
    mres = _conv_operator(wres, G_np)                              # (ch*HWp, cP)
    mcv2 = _chan_operator(wcv2.reshape(c, ch), P, LANE)            # (ch*LANE, cP)
    mred = _chan_operator(wred.reshape(c, 2 * c), P, P)            # (2c*P, cP)

    def brow(b):
        return jnp.repeat(b, P).reshape(1, cP)

    bconv = jnp.concatenate([brow(bcv1), brow(bres), brow(bcv2), brow(bred)],
                            axis=0).astype(f32)                    # (4, cP)

    # FFM 1x1 convs as a stacked (channel-major rows) Kronecker operator.
    W1 = params['ffm_w1'].reshape(c, c)
    W2 = params['ffm_w2'].reshape(c, c)
    eye = jnp.eye(Bk, dtype=f32)
    kffm = jnp.concatenate([jnp.kron(W1, eye), jnp.kron(W2, eye)],
                           axis=0).astype(bf16)                    # (2*c*Bk, c*Bk)

    def rep(v):
        return jnp.repeat(v.reshape(-1), Bk)

    vffm = jnp.stack(
        [jnp.concatenate([rep(params['ffm_b1']), rep(params['ffm_b2'])]),
         jnp.concatenate([rep(params['ffm_alpha']), rep(params['ffm_beta'])])],
        axis=1).astype(f32)                                        # (2*c*Bk, 2)

    return {
        'apool': jnp.asarray(apool_np, bf16),
        'mcv1': mcv1f.astype(bf16),
        'mres': mres.astype(bf16),
        'ffwd': jnp.asarray(ffwd_np, bf16),
        'finv': jnp.asarray(finv_np, bf16),
        'spool': jnp.asarray(spool_np, bf16),
        'mcv2': mcv2.astype(bf16),
        'mred': mred.astype(bf16),
        'kffm': kffm,
        'vffm': vffm,
        'bconv': bconv,
    }


# --------------------------------------------------------------------------- #
# the fused Pallas kernel (one grid step == Bblk batch samples)                 #
# --------------------------------------------------------------------------- #
def _ffds_kernel(x1_ref, x2_ref, apool_ref, mcv1_ref, mres_ref, ffwd_ref,
                 finv_ref, spool_ref, mcv2_ref, mred_ref, kffm_ref, vffm_ref,
                 bconv_ref, o_ref):
    f32, bf16 = jnp.float32, jnp.bfloat16
    Bk = o_ref.shape[0]                       # batch rows this grid step
    BC = x2_ref.shape[0]                      # ch * Bk (channel-major rows)
    ch = BC // Bk
    hwp = apool_ref.shape[1]                  # padded flat spatial after avg-pool
    ntaps = spool_ref.shape[1] // LANE        # 9 max-pool taps

    def silu(y):                              # y*sigmoid(y) == 0.5*y*(1+tanh(y/2))
        return 0.5 * y * (1.0 + jnp.tanh(0.5 * y))

    def mxu(a, b):                            # bf16 MXU matmul, f32 accumulation
        return jnp.dot(a, b, preferred_element_type=f32)

    def conv_rows(lhs_b, op_ref, blk):
        """sum_ci lhs[ci*Bk:(ci+1)*Bk] @ op[ci*blk:(ci+1)*blk]  -> (Bk, c*P)."""
        acc = mxu(lhs_b[0:Bk, :], op_ref[0:blk, :])
        for ci in range(1, ch):
            acc += mxu(lhs_b[ci * Bk:(ci + 1) * Bk, :],
                       op_ref[ci * blk:(ci + 1) * blk, :])
        return acc

    # ---- cv1 branch: avg-pool + 3x3/s2 conv + BN + SiLU folded into ONE matmul
    y1 = silu(mxu(x1_ref[...].astype(bf16), mcv1_ref[...]) + bconv_ref[0:1, :])

    # ---- shared x2 avg pool (channel-major rows, M = ch*Bk) ----
    xa2 = mxu(x2_ref[...].astype(bf16), apool_ref[...])           # (BC, hwp) f32
    xa2b = xa2.astype(bf16)                                       # cast once, used twice

    # ---- FFM: stacked 1x1 convs, packed Kronecker fft2 / pointwise / ifft2 / abs
    a12 = mxu(kffm_ref[...], xa2b) + vffm_ref[:, 0:1]             # (2*BC, hwp)
    a1 = a12[0:BC, :]
    a2b = a12[BC:2 * BC, :].astype(bf16)
    zri = mxu(a2b, ffwd_ref[...])                                 # [Re|Im] fft2(a2)
    pri = zri * jnp.concatenate([a1, a1], axis=1)                 # a1 (real) * fft2(a2)
    vri = mxu(pri.astype(bf16), finv_ref[...])                    # [Re|Im] ifft2
    mag = jnp.sqrt(vri[:, 0:hwp] ** 2 + vri[:, hwp:2 * hwp] ** 2)
    fgm = mag * vffm_ref[0:BC, 1:2] + xa2 * vffm_ref[BC:2 * BC, 1:2]
    fgm_b = fgm.astype(bf16)

    # ---- conv_resize: 3x3/s2 conv + BN + SiLU (per-channel row-block matmuls)
    fres = silu(conv_rows(fgm_b, mres_ref, hwp) + bconv_ref[1:2, :])   # (Bk, cP)

    # ---- max-pool 3x3/s2/p1 via MXU gather + VPU max, then cv2 (1x1 + BN + SiLU)
    g = mxu(xa2b, spool_ref[...])                                 # (BC, 9*LANE)
    pm = g[:, 0:LANE]
    for t in range(1, ntaps):
        pm = jnp.maximum(pm, g[:, t * LANE:(t + 1) * LANE])
    pm_b = pm.astype(bf16)
    pc = silu(conv_rows(pm_b, mcv2_ref, LANE) + bconv_ref[2:3, :])     # (Bk, cP)

    # ---- conv_reduce (1x1 + BN + SiLU) on cat(fres, pc), then final cat with y1
    x2c = silu(mxu(jnp.concatenate([fres, pc], axis=1).astype(bf16), mred_ref[...])
               + bconv_ref[3:4, :])                               # (Bk, cP)
    o_ref[...] = jnp.concatenate([y1, x2c], axis=1)               # (Bk, 2*cP)


def _const_spec(shape):
    idx = lambda i: tuple(0 for _ in shape)
    try:
        # constant operands: single-buffer (index_map never changes across the grid)
        return pl.BlockSpec(shape, idx, pipeline_mode=pl.Buffered(1))
    except TypeError:  # older jax without pipeline_mode on BlockSpec
        return pl.BlockSpec(shape, idx)


def ffds_forward(x, ops):
    """FrequencyFocusedDownSampling.forward — one fused, batch-blocked pallas_call."""
    B, C1, H, W = x.shape
    ch = C1 // 2
    c = ch
    Hh, Wh = H - 1, W - 1
    Ho = (Hh + 2 - 3) // 2 + 1
    Wo = (Wh + 2 - 3) // 2 + 1
    P = Ho * Wo
    cP = c * P
    HW = H * W

    Bk = ops['kffm'].shape[1] // ch           # batch block baked into the operators
    assert B % Bk == 0, (B, Bk)
    nb = B // Bk

    # layout prep (free reshapes + one tiny transpose of the x2 half):
    x1_bs = x[:, :ch].reshape(B, ch * HW)                               # rows = b
    x2_cm = (x[:, ch:].reshape(nb, Bk, ch, HW)
             .transpose(0, 2, 1, 3).reshape(nb * ch * Bk, HW))          # rows = (ci, b)

    order = ['apool', 'mcv1', 'mres', 'ffwd', 'finv', 'spool',
             'mcv2', 'mred', 'kffm', 'vffm', 'bconv']
    consts = [ops[k] for k in order]

    out = pl.pallas_call(
        _ffds_kernel,
        out_shape=jax.ShapeDtypeStruct((B, 2 * cP), jnp.float32),
        grid=(nb,),
        in_specs=[pl.BlockSpec((Bk, ch * HW), lambda i: (i, 0)),
                  pl.BlockSpec((ch * Bk, HW), lambda i: (i, 0))]
                 + [_const_spec(a.shape) for a in consts],
        out_specs=pl.BlockSpec((Bk, 2 * cP), lambda i: (i, 0)),
        compiler_params=pltpu.CompilerParams(
            dimension_semantics=("parallel",),
            vmem_limit_bytes=_vmem_limit_bytes()),
    )(x1_bs, x2_cm, *consts)
    return out.reshape(B, 2 * c, Ho, Wo)


# --------------------------------------------------------------------------- #
# parameters                                                                    #
# --------------------------------------------------------------------------- #
def init_params(c1, c2, key):
    c = c2 // 2
    ch = c1 // 2
    assert ch == c, "FFM(dim=c2//2) applied to x2 (c1//2 ch) requires c1 == c2"
    ks = jax.random.split(key, 8)

    def nrm(k, shape, scale=0.1):
        return scale * jax.random.normal(k, shape, jnp.float32)

    def bn(co):  # (gamma, beta, running_mean, running_var) — PyTorch eval defaults
        return (jnp.ones((co,), jnp.float32), jnp.zeros((co,), jnp.float32),
                jnp.zeros((co,), jnp.float32), jnp.ones((co,), jnp.float32))

    p = {
        'cv1_w': nrm(ks[0], (c, ch, 3, 3)), 'cv1_bn': bn(c),
        'cv2_w': nrm(ks[1], (c, ch, 1, 1)), 'cv2_bn': bn(c),
        'res_w': nrm(ks[2], (c, c, 3, 3)),  'res_bn': bn(c),
        'red_w': nrm(ks[3], (c, 2 * c, 1, 1)), 'red_bn': bn(c),
        'ffm_w1': nrm(ks[4], (c, c, 1, 1)), 'ffm_b1': nrm(ks[5], (c,)),
        'ffm_w2': nrm(ks[6], (c, c, 1, 1)), 'ffm_b2': nrm(ks[7], (c,)),
        # PyTorch inits alpha=0 / beta=1; nonzero alpha so the FFT path is exercised
        # in this synthetic test (do NOT carry into production weights).
        'ffm_alpha': 0.3 * jnp.ones((c,), jnp.float32),
        'ffm_beta': jnp.ones((c,), jnp.float32),
    }
    # TODO(synk): FFM.self.conv (grouped 3x3) is defined in __init__ but never used
    # in forward(), so it is intentionally omitted.
    return p


# --------------------------------------------------------------------------- #
# pure-JAX reference                                                            #
# --------------------------------------------------------------------------- #
def ref_forward(x, p):
    hi = lax.Precision.HIGHEST

    def conv(xx, w, stride, padding):
        return lax.conv_general_dilated(
            xx, w, (stride, stride), [(padding, padding)] * 2,
            dimension_numbers=('NCHW', 'OIHW', 'NCHW'), precision=hi)

    def conv_bn_silu(xx, w, bn, stride, padding):
        g, b, m, v = bn
        y = conv(xx, w, stride, padding)
        s = g / jnp.sqrt(v + 1e-5)
        y = y * s[None, :, None, None] + (b - m * s)[None, :, None, None]
        return y * jax.nn.sigmoid(y)

    xa = lax.reduce_window(x, jnp.float32(0.0), lax.add,
                           (1, 1, 2, 2), (1, 1, 1, 1), 'VALID') / 4.0
    x1, x2 = jnp.split(xa, 2, axis=1)
    y1 = conv_bn_silu(x1, p['cv1_w'], p['cv1_bn'], 2, 1)

    a1 = conv(x2, p['ffm_w1'], 1, 0) + p['ffm_b1'][None, :, None, None]
    a2 = conv(x2, p['ffm_w2'], 1, 0) + p['ffm_b2'][None, :, None, None]
    z = jnp.fft.fft2(a2.astype(jnp.complex64))
    o = jnp.abs(jnp.fft.ifft2(a1.astype(jnp.complex64) * z)).astype(x.dtype)
    fgm = o * p['ffm_alpha'][None, :, None, None] + x2 * p['ffm_beta'][None, :, None, None]

    fgm = conv_bn_silu(fgm, p['res_w'], p['res_bn'], 2, 1)
    pooled = lax.reduce_window(x2, jnp.float32(-np.inf), lax.max,
                               (1, 1, 3, 3), (1, 1, 2, 2),
                               [(0, 0), (0, 0), (1, 1), (1, 1)])
    pooled = conv_bn_silu(pooled, p['cv2_w'], p['cv2_bn'], 1, 0)
    x2c = jnp.concatenate([fgm, pooled], axis=1)
    x2c = conv_bn_silu(x2c, p['red_w'], p['red_bn'], 1, 0)
    return jnp.concatenate([y1, x2c], axis=1)


# --------------------------------------------------------------------------- #
if __name__ == "__main__":
    key = jax.random.PRNGKey(0)
    kx, kp = jax.random.split(key)
    B, C1, H, W = 2, 8, 16, 16
    C2 = 8

    x = jax.random.normal(kx, (B, C1, H, W), jnp.float32)
    params = init_params(C1, C2, kp)
    ops = build_operators(params, x.shape)       # hoisted out of the forward path

    fwd = jax.jit(ffds_forward)
    out = jax.block_until_ready(fwd(x, ops))
    assert out.shape == (B, C2, H // 2, W // 2), out.shape

    ref = jax.block_until_ready(ref_forward(x, params))
    max_err = float(np.max(np.abs(np.asarray(out) - np.asarray(ref))))
    assert np.allclose(np.asarray(out), np.asarray(ref), rtol=2e-2, atol=2e-2), \
        f"mismatch vs reference, max abs err = {max_err}"

    print("KERNEL_OK")
</pallas_src>

<mosaic_0001>
module attributes {stable_mosaic.version = 11 : i64} {
  func.func @_ffds_kernel(%arg0: i32, %arg1: memref<2x1024xf32, #tpu.memory_space<vmem>>, %arg2: memref<8x256xf32, #tpu.memory_space<vmem>>, %arg3: memref<256x256xbf16, #tpu.memory_space<vmem>>, %arg4: memref<1024x256xbf16, #tpu.memory_space<vmem>>, %arg5: memref<1024x256xbf16, #tpu.memory_space<vmem>>, %arg6: memref<256x512xbf16, #tpu.memory_space<vmem>>, %arg7: memref<512x512xbf16, #tpu.memory_space<vmem>>, %arg8: memref<256x1152xbf16, #tpu.memory_space<vmem>>, %arg9: memref<512x256xbf16, #tpu.memory_space<vmem>>, %arg10: memref<512x256xbf16, #tpu.memory_space<vmem>>, %arg11: memref<16x8xbf16, #tpu.memory_space<vmem>>, %arg12: memref<16x2xf32, #tpu.memory_space<vmem>>, %arg13: memref<4x256xf32, #tpu.memory_space<vmem>>, %arg14: memref<2x512xf32, #tpu.memory_space<vmem>>) attributes {dimension_semantics = [#tpu.dimension_semantics<parallel>], iteration_bounds = array<i64: 1>, scalar_prefetch = 0 : i64, scratch_operands = 0 : i64, tpu.core_type = #tpu.core_type<tc>, window_params = [{transform_indices = @transform_0, window_bounds = array<i64: 2, 1024>}, {transform_indices = @transform_1, window_bounds = array<i64: 8, 256>}, {pipeline_mode = #tpu.pipeline_mode<synchronous>, transform_indices = @transform_2, window_bounds = array<i64: 256, 256>}, {pipeline_mode = #tpu.pipeline_mode<synchronous>, transform_indices = @transform_3, window_bounds = array<i64: 1024, 256>}, {pipeline_mode = #tpu.pipeline_mode<synchronous>, transform_indices = @transform_4, window_bounds = array<i64: 1024, 256>}, {pipeline_mode = #tpu.pipeline_mode<synchronous>, transform_indices = @transform_5, window_bounds = array<i64: 256, 512>}, {pipeline_mode = #tpu.pipeline_mode<synchronous>, transform_indices = @transform_6, window_bounds = array<i64: 512, 512>}, {pipeline_mode = #tpu.pipeline_mode<synchronous>, transform_indices = @transform_7, window_bounds = array<i64: 256, 1152>}, {pipeline_mode = #tpu.pipeline_mode<synchronous>, transform_indices = @transform_8, window_bounds = array<i64: 512, 256>}, {pipeline_mode = #tpu.pipeline_mode<synchronous>, transform_indices = @transform_9, window_bounds = array<i64: 512, 256>}, {pipeline_mode = #tpu.pipeline_mode<synchronous>, transform_indices = @transform_10, window_bounds = array<i64: 16, 8>}, {pipeline_mode = #tpu.pipeline_mode<synchronous>, transform_indices = @transform_11, window_bounds = array<i64: 16, 2>}, {pipeline_mode = #tpu.pipeline_mode<synchronous>, transform_indices = @transform_12, window_bounds = array<i64: 4, 256>}, {transform_indices = @transform_13, window_bounds = array<i64: 2, 512>}]} {
    %c0 = arith.constant 0 : index
    %c0_0 = arith.constant 0 : index
    %0 = vector.load %arg1[%c0, %c0_0] : memref<2x1024xf32, #tpu.memory_space<vmem>>, vector<2x1024xf32>
    %1 = arith.truncf %0 : vector<2x1024xf32> to vector<2x1024xbf16>
    %c0_1 = arith.constant 0 : index
    %c0_2 = arith.constant 0 : index
    %2 = vector.load %arg4[%c0_1, %c0_2] : memref<1024x256xbf16, #tpu.memory_space<vmem>>, vector<1024x256xbf16>
    %cst = arith.constant dense<0.000000e+00> : vector<2x256xf32>
    %3 = tpu.matmul %1, %2, %cst {dimension_numbers = #tpu.dot_dimension_numbers<[1], [0], [0], [1], [0, 0, 1, 1], [], []>} : vector<2x1024xbf16>, vector<1024x256xbf16>, vector<2x256xf32> -> vector<2x256xf32>
    %c0_3 = arith.constant 0 : index
    %c0_4 = arith.constant 0 : index
    %4 = vector.load %arg13[%c0_3, %c0_4] : memref<4x256xf32, #tpu.memory_space<vmem>>, vector<1x256xf32>
    %5 = vector.broadcast %4 : vector<1x256xf32> to vector<2x256xf32>
    %6 = arith.addf %3, %5 : vector<2x256xf32>
    %cst_5 = arith.constant 5.000000e-01 : f32
    %7 = vector.broadcast %cst_5 : f32 to vector<2x256xf32>
    %8 = arith.mulf %7, %6 : vector<2x256xf32>
    %cst_6 = arith.constant 5.000000e-01 : f32
    %9 = vector.broadcast %cst_6 : f32 to vector<2x256xf32>
    %10 = arith.mulf %9, %6 : vector<2x256xf32>
    %11 = math.tanh %10 : vector<2x256xf32>
    %cst_7 = arith.constant 1.000000e+00 : f32
    %12 = vector.broadcast %cst_7 : f32 to vector<2x256xf32>
    %13 = arith.addf %12, %11 : vector<2x256xf32>
    %14 = arith.mulf %8, %13 : vector<2x256xf32>
    %c0_8 = arith.constant 0 : index
    %c0_9 = arith.constant 0 : index
    %15 = vector.load %arg2[%c0_8, %c0_9] : memref<8x256xf32, #tpu.memory_space<vmem>>, vector<8x256xf32>
    %16 = arith.truncf %15 : vector<8x256xf32> to vector<8x256xbf16>
    %c0_10 = arith.constant 0 : index
    %c0_11 = arith.constant 0 : index
    %17 = vector.load %arg3[%c0_10, %c0_11] : memref<256x256xbf16, #tpu.memory_space<vmem>>, vector<256x256xbf16>
    %cst_12 = arith.constant dense<0.000000e+00> : vector<8x256xf32>
    %18 = tpu.matmul %16, %17, %cst_12 {dimension_numbers = #tpu.dot_dimension_numbers<[1], [0], [0], [1], [0, 0, 1, 1], [], []>} : vector<8x256xbf16>, vector<256x256xbf16>, vector<8x256xf32> -> vector<8x256xf32>
    %19 = arith.truncf %18 : vector<8x256xf32> to vector<8x256xbf16>
    %c0_13 = arith.constant 0 : index
    %c0_14 = arith.constant 0 : index
    %20 = vector.load %arg11[%c0_13, %c0_14] : memref<16x8xbf16, #tpu.memory_space<vmem>>, vector<16x8xbf16>
    %cst_15 = arith.constant dense<0.000000e+00> : vector<16x256xf32>
    %21 = tpu.matmul %20, %19, %cst_15 {dimension_numbers = #tpu.dot_dimension_numbers<[1], [0], [0], [1], [0, 0, 1, 1], [], []>} : vector<16x8xbf16>, vector<8x256xbf16>, vector<16x256xf32> -> vector<16x256xf32>
    %c0_16 = arith.constant 0 : index
    %c0_17 = arith.constant 0 : index
    %22 = vector.load %arg12[%c0_16, %c0_17] : memref<16x2xf32, #tpu.memory_space<vmem>>, vector<16x1xf32>
    %23 = vector.broadcast %22 : vector<16x1xf32> to vector<16x256xf32>
    %24 = arith.addf %21, %23 : vector<16x256xf32>
    %25 = vector.extract_strided_slice %24 {offsets = [0, 0], sizes = [8, 256], strides = [1, 1]} : vector<16x256xf32> to vector<8x256xf32>
    %26 = vector.extract_strided_slice %24 {offsets = [8, 0], sizes = [8, 256], strides = [1, 1]} : vector<16x256xf32> to vector<8x256xf32>
    %27 = arith.truncf %26 : vector<8x256xf32> to vector<8x256xbf16>
    %c0_18 = arith.constant 0 : index
    %c0_19 = arith.constant 0 : index
    %28 = vector.load %arg6[%c0_18, %c0_19] : memref<256x512xbf16, #tpu.memory_space<vmem>>, vector<256x512xbf16>
    %cst_20 = arith.constant dense<0.000000e+00> : vector<8x512xf32>
    %29 = tpu.matmul %27, %28, %cst_20 {dimension_numbers = #tpu.dot_dimension_numbers<[1], [0], [0], [1], [0, 0, 1, 1], [], []>} : vector<8x256xbf16>, vector<256x512xbf16>, vector<8x512xf32> -> vector<8x512xf32>
    %30 = tpu.concatenate %25, %25 in 1 : vector<8x256xf32>, vector<8x256xf32> -> vector<8x512xf32>
    %31 = arith.mulf %29, %30 : vector<8x512xf32>
    %32 = arith.truncf %31 : vector<8x512xf32> to vector<8x512xbf16>
    %c0_21 = arith.constant 0 : index
    %c0_22 = arith.constant 0 : index
    %33 = vector.load %arg7[%c0_21, %c0_22] : memref<512x512xbf16, #tpu.memory_space<vmem>>, vector<512x512xbf16>
    %cst_23 = arith.constant dense<0.000000e+00> : vector<8x512xf32>
    %34 = tpu.matmul %32, %33, %cst_23 {dimension_numbers = #tpu.dot_dimension_numbers<[1], [0], [0], [1], [0, 0, 1, 1], [], []>} : vector<8x512xbf16>, vector<512x512xbf16>, vector<8x512xf32> -> vector<8x512xf32>
    %35 = vector.extract_strided_slice %34 {offsets = [0, 0], sizes = [8, 256], strides = [1, 1]} : vector<8x512xf32> to vector<8x256xf32>
    %36 = arith.mulf %35, %35 : vector<8x256xf32>
    %37 = vector.extract_strided_slice %34 {offsets = [0, 256], sizes = [8, 256], strides = [1, 1]} : vector<8x512xf32> to vector<8x256xf32>
    %38 = arith.mulf %37, %37 : vector<8x256xf32>
    %39 = arith.addf %36, %38 : vector<8x256xf32>
    %40 = math.sqrt %39 : vector<8x256xf32>
    %c0_24 = arith.constant 0 : index
    %c1 = arith.constant 1 : index
    %41 = vector.load %arg12[%c0_24, %c1] : memref<16x2xf32, #tpu.memory_space<vmem>>, vector<8x1xf32>
    %42 = vector.broadcast %41 : vector<8x1xf32> to vector<8x256xf32>
    %43 = arith.mulf %40, %42 : vector<8x256xf32>
    %c8 = arith.constant 8 : index
    %c1_25 = arith.constant 1 : index
    %44 = vector.load %arg12[%c8, %c1_25] : memref<16x2xf32, #tpu.memory_space<vmem>>, vector<8x1xf32>
    %45 = vector.broadcast %44 : vector<8x1xf32> to vector<8x256xf32>
    %46 = arith.mulf %18, %45 : vector<8x256xf32>
    %47 = arith.addf %43, %46 : vector<8x256xf32>
    %48 = arith.truncf %47 : vector<8x256xf32> to vector<8x256xbf16>
    %49 = vector.extract_strided_slice %48 {offsets = [0, 0], sizes = [2, 256], strides = [1, 1]} : vector<8x256xbf16> to vector<2x256xbf16>
    %c0_26 = arith.constant 0 : index
    %c0_27 = arith.constant 0 : index
    %50 = vector.load %arg5[%c0_26, %c0_27] : memref<1024x256xbf16, #tpu.memory_space<vmem>>, vector<256x256xbf16>
    %cst_28 = arith.constant dense<0.000000e+00> : vector<2x256xf32>
    %51 = tpu.matmul %49, %50, %cst_28 {dimension_numbers = #tpu.dot_dimension_numbers<[1], [0], [0], [1], [0, 0, 1, 1], [], []>} : vector<2x256xbf16>, vector<256x256xbf16>, vector<2x256xf32> -> vector<2x256xf32>
    %52 = vector.extract_strided_slice %48 {offsets = [2, 0], sizes = [2, 256], strides = [1, 1]} : vector<8x256xbf16> to vector<2x256xbf16>
    %c256 = arith.constant 256 : index
    %c0_29 = arith.constant 0 : index
    %53 = vector.load %arg5[%c256, %c0_29] : memref<1024x256xbf16, #tpu.memory_space<vmem>>, vector<256x256xbf16>
    %cst_30 = arith.constant dense<0.000000e+00> : vector<2x256xf32>
    %54 = tpu.matmul %52, %53, %cst_30 {dimension_numbers = #tpu.dot_dimension_numbers<[1], [0], [0], [1], [0, 0, 1, 1], [], []>} : vector<2x256xbf16>, vector<256x256xbf16>, vector<2x256xf32> -> vector<2x256xf32>
    %55 = arith.addf %51, %54 : vector<2x256xf32>
    %56 = vector.extract_strided_slice %48 {offsets = [4, 0], sizes = [2, 256], strides = [1, 1]} : vector<8x256xbf16> to vector<2x256xbf16>
    %c512 = arith.constant 512 : index
    %c0_31 = arith.constant 0 : index
    %57 = vector.load %arg5[%c512, %c0_31] : memref<1024x256xbf16, #tpu.memory_space<vmem>>, vector<256x256xbf16>
    %cst_32 = arith.constant dense<0.000000e+00> : vector<2x256xf32>
    %58 = tpu.matmul %56, %57, %cst_32 {dimension_numbers = #tpu.dot_dimension_numbers<[1], [0], [0], [1], [0, 0, 1, 1], [], []>} : vector<2x256xbf16>, vector<256x256xbf16>, vector<2x256xf32> -> vector<2x256xf32>
    %59 = arith.addf %55, %58 : vector<2x256xf32>
    %60 = vector.extract_strided_slice %48 {offsets = [6, 0], sizes = [2, 256], strides = [1, 1]} : vector<8x256xbf16> to vector<2x256xbf16>
    %c768 = arith.constant 768 : index
    %c0_33 = arith.constant 0 : index
    %61 = vector.load %arg5[%c768, %c0_33] : memref<1024x256xbf16, #tpu.memory_space<vmem>>, vector<256x256xbf16>
    %cst_34 = arith.constant dense<0.000000e+00> : vector<2x256xf32>
    %62 = tpu.matmul %60, %61, %cst_34 {dimension_numbers = #tpu.dot_dimension_numbers<[1], [0], [0], [1], [0, 0, 1, 1], [], []>} : vector<2x256xbf16>, vector<256x256xbf16>, vector<2x256xf32> -> vector<2x256xf32>
    %63 = arith.addf %59, %62 : vector<2x256xf32>
    %c1_35 = arith.constant 1 : index
    %c0_36 = arith.constant 0 : index
    %64 = vector.load %arg13[%c1_35, %c0_36] : memref<4x256xf32, #tpu.memory_space<vmem>>, vector<1x256xf32>
    %65 = vector.broadcast %64 : vector<1x256xf32> to vector<2x256xf32>
    %66 = arith.addf %63, %65 : vector<2x256xf32>
    %cst_37 = arith.constant 5.000000e-01 : f32
    %67 = vector.broadcast %cst_37 : f32 to vector<2x256xf32>
    %68 = arith.mulf %67, %66 : vector<2x256xf32>
    %cst_38 = arith.constant 5.000000e-01 : f32
    %69 = vector.broadcast %cst_38 : f32 to vector<2x256xf32>
    %70 = arith.mulf %69, %66 : vector<2x256xf32>
    %71 = math.tanh %70 : vector<2x256xf32>
    %cst_39 = arith.constant 1.000000e+00 : f32
    %72 = vector.broadcast %cst_39 : f32 to vector<2x256xf32>
    %73 = arith.addf %72, %71 : vector<2x256xf32>
    %74 = arith.mulf %68, %73 : vector<2x256xf32>
    %c0_40 = arith.constant 0 : index
    %c0_41 = arith.constant 0 : index
    %75 = vector.load %arg8[%c0_40, %c0_41] : memref<256x1152xbf16, #tpu.memory_space<vmem>>, vector<256x1152xbf16>
    %cst_42 = arith.constant dense<0.000000e+00> : vector<8x1152xf32>
    %76 = tpu.matmul %19, %75, %cst_42 {dimension_numbers = #tpu.dot_dimension_numbers<[1], [0], [0], [1], [0, 0, 1, 1], [], []>} : vector<8x256xbf16>, vector<256x1152xbf16>, vector<8x1152xf32> -> vector<8x1152xf32>
    %77 = vector.extract_strided_slice %76 {offsets = [0, 0], sizes = [8, 128], strides = [1, 1]} : vector<8x1152xf32> to vector<8x128xf32>
    %78 = vector.extract_strided_slice %76 {offsets = [0, 128], sizes = [8, 128], strides = [1, 1]} : vector<8x1152xf32> to vector<8x128xf32>
    %79 = arith.maximumf %77, %78 : vector<8x128xf32>
    %80 = vector.extract_strided_slice %76 {offsets = [0, 256], sizes = [8, 128], strides = [1, 1]} : vector<8x1152xf32> to vector<8x128xf32>
    %81 = arith.maximumf %79, %80 : vector<8x128xf32>
    %82 = vector.extract_strided_slice %76 {offsets = [0, 384], sizes = [8, 128], strides = [1, 1]} : vector<8x1152xf32> to vector<8x128xf32>
    %83 = arith.maximumf %81, %82 : vector<8x128xf32>
    %84 = vector.extract_strided_slice %76 {offsets = [0, 512], sizes = [8, 128], strides = [1, 1]} : vector<8x1152xf32> to vector<8x128xf32>
    %85 = arith.maximumf %83, %84 : vector<8x128xf32>
    %86 = vector.extract_strided_slice %76 {offsets = [0, 640], sizes = [8, 128], strides = [1, 1]} : vector<8x1152xf32> to vector<8x128xf32>
    %87 = arith.maximumf %85, %86 : vector<8x128xf32>
    %88 = vector.extract_strided_slice %76 {offsets = [0, 768], sizes = [8, 128], strides = [1, 1]} : vector<8x1152xf32> to vector<8x128xf32>
    %89 = arith.maximumf %87, %88 : vector<8x128xf32>
    %90 = vector.extract_strided_slice %76 {offsets = [0, 896], sizes = [8, 128], strides = [1, 1]} : vector<8x1152xf32> to vector<8x128xf32>
    %91 = arith.maximumf %89, %90 : vector<8x128xf32>
    %92 = vector.extract_strided_slice %76 {offsets = [0, 1024], sizes = [8, 128], strides = [1, 1]} : vector<8x1152xf32> to vector<8x128xf32>
    %93 = arith.maximumf %91, %92 : vector<8x128xf32>
    %94 = arith.truncf %93 : vector<8x128xf32> to vector<8x128xbf16>
    %95 = vector.extract_strided_slice %94 {offsets = [0, 0], sizes = [2, 128], strides = [1, 1]} : vector<8x128xbf16> to vector<2x128xbf16>
    %c0_43 = arith.constant 0 : index
    %c0_44 = arith.constant 0 : index
    %96 = vector.load %arg9[%c0_43, %c0_44] : memref<512x256xbf16, #tpu.memory_space<vmem>>, vector<128x256xbf16>
    %cst_45 = arith.constant dense<0.000000e+00> : vector<2x256xf32>
    %97 = tpu.matmul %95, %96, %cst_45 {dimension_numbers = #tpu.dot_dimension_numbers<[1], [0], [0], [1], [0, 0, 1, 1], [], []>} : vector<2x128xbf16>, vector<128x256xbf16>, vector<2x256xf32> -> vector<2x256xf32>
    %98 = vector.extract_strided_slice %94 {offsets = [2, 0], sizes = [2, 128], strides = [1, 1]} : vector<8x128xbf16> to vector<2x128xbf16>
    %c128 = arith.constant 128 : index
    %c0_46 = arith.constant 0 : index
    %99 = vector.load %arg9[%c128, %c0_46] : memref<512x256xbf16, #tpu.memory_space<vmem>>, vector<128x256xbf16>
    %cst_47 = arith.constant dense<0.000000e+00> : vector<2x256xf32>
    %100 = tpu.matmul %98, %99, %cst_47 {dimension_numbers = #tpu.dot_dimension_numbers<[1], [0], [0], [1], [0, 0, 1, 1], [], []>} : vector<2x128xbf16>, vector<128x256xbf16>, vector<2x256xf32> -> vector<2x256xf32>
    %101 = arith.addf %97, %100 : vector<2x256xf32>
    %102 = vector.extract_strided_slice %94 {offsets = [4, 0], sizes = [2, 128], strides = [1, 1]} : vector<8x128xbf16> to vector<2x128xbf16>
    %c256_48 = arith.constant 256 : index
    %c0_49 = arith.constant 0 : index
    %103 = vector.load %arg9[%c256_48, %c0_49] : memref<512x256xbf16, #tpu.memory_space<vmem>>, vector<128x256xbf16>
    %cst_50 = arith.constant dense<0.000000e+00> : vector<2x256xf32>
    %104 = tpu.matmul %102, %103, %cst_50 {dimension_numbers = #tpu.dot_dimension_numbers<[1], [0], [0], [1], [0, 0, 1, 1], [], []>} : vector<2x128xbf16>, vector<128x256xbf16>, vector<2x256xf32> -> vector<2x256xf32>
    %105 = arith.addf %101, %104 : vector<2x256xf32>
    %106 = vector.extract_strided_slice %94 {offsets = [6, 0], sizes = [2, 128], strides = [1, 1]} : vector<8x128xbf16> to vector<2x128xbf16>
    %c384 = arith.constant 384 : index
    %c0_51 = arith.constant 0 : index
    %107 = vector.load %arg9[%c384, %c0_51] : memref<512x256xbf16, #tpu.memory_space<vmem>>, vector<128x256xbf16>
    %cst_52 = arith.constant dense<0.000000e+00> : vector<2x256xf32>
    %108 = tpu.matmul %106, %107, %cst_52 {dimension_numbers = #tpu.dot_dimension_numbers<[1], [0], [0], [1], [0, 0, 1, 1], [], []>} : vector<2x128xbf16>, vector<128x256xbf16>, vector<2x256xf32> -> vector<2x256xf32>
    %109 = arith.addf %105, %108 : vector<2x256xf32>
    %c2 = arith.constant 2 : index
    %c0_53 = arith.constant 0 : index
    %110 = vector.load %arg13[%c2, %c0_53] : memref<4x256xf32, #tpu.memory_space<vmem>>, vector<1x256xf32>
    %111 = vector.broadcast %110 : vector<1x256xf32> to vector<2x256xf32>
    %112 = arith.addf %109, %111 : vector<2x256xf32>
    %cst_54 = arith.constant 5.000000e-01 : f32
    %113 = vector.broadcast %cst_54 : f32 to vector<2x256xf32>
    %114 = arith.mulf %113, %112 : vector<2x256xf32>
    %cst_55 = arith.constant 5.000000e-01 : f32
    %115 = vector.broadcast %cst_55 : f32 to vector<2x256xf32>
    %116 = arith.mulf %115, %112 : vector<2x256xf32>
    %117 = math.tanh %116 : vector<2x256xf32>
    %cst_56 = arith.constant 1.000000e+00 : f32
    %118 = vector.broadcast %cst_56 : f32 to vector<2x256xf32>
    %119 = arith.addf %118, %117 : vector<2x256xf32>
    %120 = arith.mulf %114, %119 : vector<2x256xf32>
    %121 = tpu.concatenate %74, %120 in 1 : vector<2x256xf32>, vector<2x256xf32> -> vector<2x512xf32>
    %122 = arith.truncf %121 : vector<2x512xf32> to vector<2x512xbf16>
    %c0_57 = arith.constant 0 : index
    %c0_58 = arith.constant 0 : index
    %123 = vector.load %arg10[%c0_57, %c0_58] : memref<512x256xbf16, #tpu.memory_space<vmem>>, vector<512x256xbf16>
    %cst_59 = arith.constant dense<0.000000e+00> : vector<2x256xf32>
    %124 = tpu.matmul %122, %123, %cst_59 {dimension_numbers = #tpu.dot_dimension_numbers<[1], [0], [0], [1], [0, 0, 1, 1], [], []>} : vector<2x512xbf16>, vector<512x256xbf16>, vector<2x256xf32> -> vector<2x256xf32>
    %c3 = arith.constant 3 : index
    %c0_60 = arith.constant 0 : index
    %125 = vector.load %arg13[%c3, %c0_60] : memref<4x256xf32, #tpu.memory_space<vmem>>, vector<1x256xf32>
    %126 = vector.broadcast %125 : vector<1x256xf32> to vector<2x256xf32>
    %127 = arith.addf %124, %126 : vector<2x256xf32>
    %cst_61 = arith.constant 5.000000e-01 : f32
    %128 = vector.broadcast %cst_61 : f32 to vector<2x256xf32>
    %129 = arith.mulf %128, %127 : vector<2x256xf32>
    %cst_62 = arith.constant 5.000000e-01 : f32
    %130 = vector.broadcast %cst_62 : f32 to vector<2x256xf32>
    %131 = arith.mulf %130, %127 : vector<2x256xf32>
    %132 = math.tanh %131 : vector<2x256xf32>
    %cst_63 = arith.constant 1.000000e+00 : f32
    %133 = vector.broadcast %cst_63 : f32 to vector<2x256xf32>
    %134 = arith.addf %133, %132 : vector<2x256xf32>
    %135 = arith.mulf %129, %134 : vector<2x256xf32>
    %136 = tpu.concatenate %14, %135 in 1 : vector<2x256xf32>, vector<2x256xf32> -> vector<2x512xf32>
    %c0_64 = arith.constant 0 : index
    %c0_65 = arith.constant 0 : index
    %137 = vector.load %arg14[%c0_64, %c0_65] : memref<2x512xf32, #tpu.memory_space<vmem>>, vector<2x512xf32>
    tpu.vector_store %arg14[%c0_64, %c0_65], %136 {strides = array<i32>} : memref<2x512xf32, #tpu.memory_space<vmem>>, vector<2x512xf32>,
    return
  }
  func.func @transform_0(%arg0: i32) -> (i32, i32) {
    %c0_i32 = arith.constant 0 : i32
    %c0_i32_0 = arith.constant 0 : i32
    return %arg0, %c0_i32 : i32, i32
  }
  func.func @transform_1(%arg0: i32) -> (i32, i32) {
    %c0_i32 = arith.constant 0 : i32
    %c0_i32_0 = arith.constant 0 : i32
    return %arg0, %c0_i32 : i32, i32
  }
  func.func @transform_2(%arg0: i32) -> (i32, i32) {
    %c0_i32 = arith.constant 0 : i32
    %c0_i32_0 = arith.constant 0 : i32
    %c0_i32_1 = arith.constant 0 : i32
    return %c0_i32, %c0_i32_0 : i32, i32
  }
  func.func @transform_3(%arg0: i32) -> (i32, i32) {
    %c0_i32 = arith.constant 0 : i32
    %c0_i32_0 = arith.constant 0 : i32
    %c0_i32_1 = arith.constant 0 : i32
    return %c0_i32, %c0_i32_0 : i32, i32
  }
  func.func @transform_4(%arg0: i32) -> (i32, i32) {
    %c0_i32 = arith.constant 0 : i32
    %c0_i32_0 = arith.constant 0 : i32
    %c0_i32_1 = arith.constant 0 : i32
    return %c0_i32, %c0_i32_0 : i32, i32
  }
  func.func @transform_5(%arg0: i32) -> (i32, i32) {
    %c0_i32 = arith.constant 0 : i32
    %c0_i32_0 = arith.constant 0 : i32
    %c0_i32_1 = arith.constant 0 : i32
    return %c0_i32, %c0_i32_0 : i32, i32
  }
  func.func @transform_6(%arg0: i32) -> (i32, i32) {
    %c0_i32 = arith.constant 0 : i32
    %c0_i32_0 = arith.constant 0 : i32
    %c0_i32_1 = arith.constant 0 : i32
    return %c0_i32, %c0_i32_0 : i32, i32
  }
  func.func @transform_7(%arg0: i32) -> (i32, i32) {
    %c0_i32 = arith.constant 0 : i32
    %c0_i32_0 = arith.constant 0 : i32
    %c0_i32_1 = arith.constant 0 : i32
    return %c0_i32, %c0_i32_0 : i32, i32
  }
  func.func @transform_8(%arg0: i32) -> (i32, i32) {
    %c0_i32 = arith.constant 0 : i32
    %c0_i32_0 = arith.constant 0 : i32
    %c0_i32_1 = arith.constant 0 : i32
    return %c0_i32, %c0_i32_0 : i32, i32
  }
  func.func @transform_9(%arg0: i32) -> (i32, i32) {
    %c0_i32 = arith.constant 0 : i32
    %c0_i32_0 = arith.constant 0 : i32
    %c0_i32_1 = arith.constant 0 : i32
    return %c0_i32, %c0_i32_0 : i32, i32
  }
  func.func @transform_10(%arg0: i32) -> (i32, i32) {
    %c0_i32 = arith.constant 0 : i32
    %c0_i32_0 = arith.constant 0 : i32
    %c0_i32_1 = arith.constant 0 : i32
    return %c0_i32, %c0_i32_0 : i32, i32
  }
  func.func @transform_11(%arg0: i32) -> (i32, i32) {
    %c0_i32 = arith.constant 0 : i32
    %c0_i32_0 = arith.constant 0 : i32
    %c0_i32_1 = arith.constant 0 : i32
    return %c0_i32, %c0_i32_0 : i32, i32
  }
  func.func @transform_12(%arg0: i32) -> (i32, i32) {
    %c0_i32 = arith.constant 0 : i32
    %c0_i32_0 = arith.constant 0 : i32
    %c0_i32_1 = arith.constant 0 : i32
    return %c0_i32, %c0_i32_0 : i32, i32
  }
  func.func @transform_13(%arg0: i32) -> (i32, i32) {
    %c0_i32 = arith.constant 0 : i32
    %c0_i32_0 = arith.constant 0 : i32
    return %arg0, %c0_i32 : i32, i32
  }
}

</mosaic_0001>

<bundles_post_ra>
// kernel: ffds_forward.1
= control target key start
LH: loop header
LB: loop body
LE: loop exit
PB: predicated region body
PF: predicated region fallthrough
CT: control target
= control target key end

     0   :  { %18 = vsyncpa [#allocation3], 0  ;;  %s8839_s0 = inlined_call_operand.vmem [shape: f32[2,1024], index: 0, kind: input, shape index: {}]   ;;  %s8840_s1 = inlined_call_operand.vmem [shape: f32[8,256], index: 1, kind: input, shape index: {}]   ;;  %s8841_s2 = inlined_call_operand.vmem [shape: bf16[256,256], index: 2, kind: input, shape index: {}]   ;;  %s8842_s3 = inlined_call_operand.hbm [shape: bf16[1024,256], index: 3, kind: input, shape index: {}]   ;;  %s8843_s4 = inlined_call_operand.hbm [shape: bf16[1024,256], index: 4, kind: input, shape index: {}]   ;;  %s8844_s5 = inlined_call_operand.vmem [shape: bf16[256,512], index: 5, kind: input, shape index: {}]   ;;  %s8845_s6 = inlined_call_operand.hbm [shape: bf16[512,512], index: 6, kind: input, shape index: {}]   ;;  %s8846_s7 = inlined_call_operand.hbm [shape: bf16[256,1152], index: 7, kind: input, shape index: {}]   ;;  %s8847_s8 = inlined_call_operand.hbm [shape: bf16[512,256], index: 8, kind: input, shape index: {}]   ;;  %s8848_s9 = inlined_call_operand.hbm [shape: bf16[512,256], index: 9, kind: input, shape index: {}]   ;;  %s8849_s10 = inlined_call_operand.vmem [shape: bf16[16,8], index: 10, kind: input, shape index: {}]   ;;  %s8850_s11 = inlined_call_operand.vmem [shape: f32[16,2], index: 11, kind: input, shape index: {}]   ;;  %s8851_s12 = inlined_call_operand.vmem [shape: f32[4,256], index: 12, kind: input, shape index: {}]   ;;  %s8852_s13 = inlined_call_operand.vmem [shape: f32[2,512], index: 13, kind: output, shape index: {}]  }
   0x1   :  { %19 = vsyncpa [#allocation5], 0 }
   0x2   :  { %20 = vsyncpa [#allocation8], 0 }
   0x3   :  { %21 = vsyncpa [#allocation11], 0  ;;  %s8186_s25 = smov [#allocation4]   ;;  %s8187_s27 = smov [#allocation7]  }
   0x4   :  { %s45_s26 = sshll.u32 %s8186_s25, 4  ;;  %s71_s28 = sshll.u32 %s8187_s27, 4  ;;  %s46_s26 = int_to_ptr.vmem [resolvable:$true] %s45_s26  ;;  %s8271_s28 = int_to_ptr.vmem [resolvable:$true] %s71_s28 }
   0x5   :  { %s8046_s14 = scalar_lea.hbm %s8843_s4, 16384 }
   0x6   :  { %p8047_p0 = scmp.ne.s32.totalorder %s8843_s4, %s8046_s14  ;;  %p8050_p1 = scmp.lt.u32.totalorder %s8046_s14, %s8843_s4 }
   0x8   :  { %p8052_p2 = pnand %p8050_p1, %p8047_p0 }
   0xa   :  { %8055 = shalt.err (!%p8052_p2)
}
   0xb   :  { %s8056_s19 = scalar_lea.vmem %s46_s26, 16384  ;;  %p8061_p4 = scmp.lt.s32.totalorder %s46_s26, %s46_s26 }
   0xc   :  { %p8057_p3 = scmp.ne.s32.totalorder %s46_s26, %s8056_s19  ;;  %p8062_p5 = scmp.lt.s32.totalorder %s8056_s19, %s8056_s19 }
   0xe   :  { %p8063_p6 = por %p8062_p5, %p8061_p4 }
  0x10   :  { %p8064_p7 = pnand %p8063_p6, %p8057_p3 }
  0x12   :  { %8067 = shalt.err (!%p8064_p7)
}
  0x13   :  { %s8188_s20 = smov 128   ;;  %s8189_s21 = smov 8  }
  0x14   :  { %51 = dma.hbm_to_vmem [thread:$0]  %s8843_s4, 16384, %s46_s26, [#allocation5], %s8188_s20, %s8188_s20, %s8189_s21  }
  0x15   :  { %s8068_s27 = scalar_lea.hbm %s8846_s7, 18432 }
  0x16   :  { %p8069_p8 = scmp.ne.s32.totalorder %s8846_s7, %s8068_s27  ;;  %p8072_p9 = scmp.lt.u32.totalorder %s8068_s27, %s8846_s7 }
  0x18   :  { %p8074_p10 = pnand %p8072_p9, %p8069_p8 }
  0x1a   :  { %8077 = shalt.err (!%p8074_p10)
}
  0x1b   :  { %s8078_s16 = scalar_lea.vmem %s8271_s28, 18432  ;;  %p8083_p12 = scmp.lt.s32.totalorder %s8271_s28, %s8271_s28 }
  0x1c   :  { %p8079_p11 = scmp.ne.s32.totalorder %s8271_s28, %s8078_s16  ;;  %p8084_p13 = scmp.lt.s32.totalorder %s8078_s16, %s8078_s16 }
  0x1e   :  { %p8085_p0 = por %p8084_p13, %p8083_p12 }
  0x20   :  { %p8086_p1 = pnand %p8085_p0, %p8079_p11 }
  0x22   :  { %8089 = shalt.err (!%p8086_p1)
}
  0x23   :  { %s8190_s4 = smov 576   ;;  %s8191_s26 = smov 36  }
  0x24   :  { %77 = dma.hbm_to_vmem [thread:$0]  %s8846_s7, 18432, %s8271_s28, [#allocation8], %s8190_s4, %s8190_s4, %s8191_s26  }
  0x25   :  { %s8192_s19 = smov [#allocation2]   ;;  %s8193_s23 = smov [#allocation6]  }
  0x26   :  { %s33_s22 = sshll.u32 %s8192_s19, 4  ;;  %s59_s24 = sshll.u32 %s8193_s23, 4  ;;  %s34_s22 = int_to_ptr.vmem [resolvable:$true] %s33_s22  ;;  %s8305_s24 = int_to_ptr.vmem [resolvable:$true] %s59_s24 }
  0x27   :  { %s8090_s29 = scalar_lea.hbm %s8842_s3, 16384 }
  0x28   :  { %p8091_p2 = scmp.ne.s32.totalorder %s8842_s3, %s8090_s29  ;;  %p8094_p3 = scmp.lt.u32.totalorder %s8090_s29, %s8842_s3 }
  0x2a   :  { %p8096_p4 = pnand %p8094_p3, %p8091_p2 }
  0x2c   :  { %8099 = shalt.err (!%p8096_p4)
}
  0x2d   :  { %s8100_s7 = scalar_lea.vmem %s34_s22, 16384  ;;  %p8105_p6 = scmp.lt.s32.totalorder %s34_s22, %s34_s22 }
  0x2e   :  { %p8101_p5 = scmp.ne.s32.totalorder %s34_s22, %s8100_s7  ;;  %p8106_p7 = scmp.lt.s32.totalorder %s8100_s7, %s8100_s7 }
  0x30   :  { %p8107_p8 = por %p8106_p7, %p8105_p6 }
  0x32   :  { %p8108_p9 = pnand %p8107_p8, %p8101_p5 }
  0x34   :  { %8111 = shalt.err (!%p8108_p9)
}
  0x35   :  { %39 = dma.hbm_to_vmem [thread:$0]  %s8842_s3, 16384, %s34_s22, [#allocation3], %s8188_s20, %s8188_s20, %s8189_s21  }
  0x36   :  { %s8112_s18 = scalar_lea.hbm %s8845_s6, 16384 }
  0x37   :  { %p8113_p10 = scmp.ne.s32.totalorder %s8845_s6, %s8112_s18  ;;  %p8116_p11 = scmp.lt.u32.totalorder %s8112_s18, %s8845_s6 }
  0x39   :  { %p8118_p12 = pnand %p8116_p11, %p8113_p10 }
  0x3b   :  { %8121 = shalt.err (!%p8118_p12)
}
  0x3c   :  { %s8122_s29 = scalar_lea.vmem %s8305_s24, 16384  ;;  %p8127_p0 = scmp.lt.s32.totalorder %s8305_s24, %s8305_s24 }
  0x3d   :  { %p8123_p13 = scmp.ne.s32.totalorder %s8305_s24, %s8122_s29  ;;  %p8128_p1 = scmp.lt.s32.totalorder %s8122_s29, %s8122_s29 }
  0x3f   :  { %p8129_p2 = por %p8128_p1, %p8127_p0 }
  0x41   :  { %p8130_p3 = pnand %p8129_p2, %p8123_p13 }
  0x43   :  { %8133 = shalt.err (!%p8130_p3)
}
  0x44   :  { %s8194_s3 = smov 256   ;;  %s8195_s22 = smov 16  }
  0x45   :  { %65 = dma.hbm_to_vmem [thread:$0]  %s8845_s6, 16384, %s8305_s24, [#allocation5], %s8194_s3, %s8194_s3, %s8195_s22  }
  0x46   :  { %s8196_s15 = smov [#allocation9]   ;;  %s8197_s7 = smov [#allocation10]  }
  0x47   :  { %s83_s16 = sshll.u32 %s8196_s15, 4  ;;  %s95_s28 = sshll.u32 %s8197_s7, 4  ;;  %s84_s16 = int_to_ptr.vmem [resolvable:$true] %s83_s16  ;;  %s8339_s28 = int_to_ptr.vmem [resolvable:$true] %s95_s28 }
  0x48   :  { %s8134_s17 = scalar_lea.hbm %s8847_s8, 8192 }
  0x49   :  { %p8135_p4 = scmp.ne.s32.totalorder %s8847_s8, %s8134_s17  ;;  %p8138_p5 = scmp.lt.u32.totalorder %s8134_s17, %s8847_s8 }
  0x4b   :  { %p8140_p6 = pnand %p8138_p5, %p8135_p4 }
  0x4d   :  { %8143 = shalt.err (!%p8140_p6)
}
  0x4e   :  { %s8144_s6 = scalar_lea.vmem %s84_s16, 8192  ;;  %p8149_p8 = scmp.lt.s32.totalorder %s84_s16, %s84_s16 }
  0x4f   :  { %p8145_p7 = scmp.ne.s32.totalorder %s84_s16, %s8144_s6  ;;  %p8150_p9 = scmp.lt.s32.totalorder %s8144_s6, %s8144_s6 }
  0x51   :  { %p8151_p10 = por %p8150_p9, %p8149_p8 }
  0x53   :  { %p8152_p11 = pnand %p8151_p10, %p8145_p7 }
  0x55   :  { %8155 = shalt.err (!%p8152_p11)
}
  0x56   :  { %89 = dma.hbm_to_vmem [thread:$0]  %s8847_s8, 8192, %s84_s16, [#allocation8], %s8188_s20, %s8188_s20, %s8189_s21  }
  0x57   :  { %s8156_s22 = scalar_lea.hbm %s8848_s9, 8192 }
  0x58   :  { %p8157_p12 = scmp.ne.s32.totalorder %s8848_s9, %s8156_s22  ;;  %p8160_p13 = scmp.lt.u32.totalorder %s8156_s22, %s8848_s9 }
  0x5a   :  { %p8162_p0 = pnand %p8160_p13, %p8157_p12 }
  0x5c   :  { %8165 = shalt.err (!%p8162_p0)
}
  0x5d   :  { %s8166_s4 = scalar_lea.vmem %s8339_s28, 8192  ;;  %p8171_p2 = scmp.lt.s32.totalorder %s8339_s28, %s8339_s28 }
  0x5e   :  { %p8167_p1 = scmp.ne.s32.totalorder %s8339_s28, %s8166_s4  ;;  %p8172_p3 = scmp.lt.s32.totalorder %s8166_s4, %s8166_s4 }
  0x60   :  { %p8173_p4 = por %p8172_p3, %p8171_p2 }
  0x62   :  { %p8174_p5 = pnand %p8173_p4, %p8167_p1 }
  0x64   :  { %8177 = shalt.err (!%p8174_p5)
}
  0x65   :  { %101 = dma.hbm_to_vmem [thread:$0]  %s8848_s9, 8192, %s8339_s28, [#allocation11], %s8188_s20, %s8188_s20, %s8189_s21  }
  0x66   :  { %8178 = dma.done.wait [#allocation3], 16384  }
  0x67   :  { %8179 = vsyncadd [#allocation3], 4294950912 }
  0x68   :  { %8180 = dma.done.wait [#allocation5], 32768  }
  0x69   :  { %8181 = vsyncadd [#allocation5], 4294934528 }
  0x6a   :  { %8182 = dma.done.wait [#allocation8], 26624  }
  0x6b   :  { %8183 = vsyncadd [#allocation8], 4294940672 }
  0x6c   :  { %8184 = dma.done.wait [#allocation11], 8192  }
  0x6d   :  { %8185 = vsyncadd [#allocation11], 4294959104  ;;  %v6903_v0 = vld [vmem:[#allocation2 + $0x4] ss:$8 sps:$4 sm:$0xff]   ;;  %v6905_v1 = vld [vmem:[#allocation2] ss:$8 sps:$4 sm:$0xff]   ;;  %v135_v9 = vlaneseq }
  0x6e   :  { %961 = vmatprep.subr.bf16.mxu0 %v6903_v0  ;;  %v6906_v2 = vld [vmem:[#allocation2 + $0x14] ss:$8 sps:$4 sm:$0xff]   ;;  %v6908_v3 = vld [vmem:[#allocation2 + $0x10] ss:$8 sps:$4 sm:$0xff]   ;;  %v6909_v4 = vld [vmem:[#allocation2 + $0x24] ss:$8 sps:$4 sm:$0xff]  }
  0x6f   :  { %962 = vmatpush1.bf16.msra.mxu0 %v6905_v1  ;;  %v6911_v5 = vld [vmem:[#allocation2 + $0x20] ss:$8 sps:$4 sm:$0xff]   ;;  %v6912_v6 = vld [vmem:[#allocation2 + $0x34] ss:$8 sps:$4 sm:$0xff]   ;;  %v8198_v7 = vmov 1983009808  }
  0x70   :  { %963 = vmatprep.subr.bf16.mxu0 %v6906_v2  ;;  %v133_v8 = vunpack.c.l.s4 %v8198_v7  ;;  %v6914_v10 = vld [vmem:[#allocation2 + $0x30] ss:$8 sps:$4 sm:$0xff]   ;;  %v6915_v11 = vld [vmem:[#allocation2 + $0x44] ss:$8 sps:$4 sm:$0xff]   ;;  %v8376_v13 = vshrl.u32 %v135_v9, 7  ;;  %vm1395_vm0 = vcmask 1043456  }
  0x71   :  { %v6917_v14 = vld [vmem:[#allocation2 + $0x40] ss:$8 sps:$4 sm:$0xff]   ;;  %v6918_v15 = vld [vmem:[#allocation2 + $0x54] ss:$8 sps:$4 sm:$0xff]   ;;  %v6920_v17 = vld [vmem:[#allocation2 + $0x50] ss:$8 sps:$4 sm:$0xff]  }
  0x72   :  { %v134_v12 = vunpack.c.0.s8 %v133_v8  ;;  %v6921_v18 = vld [vmem:[#allocation2 + $0x64] ss:$8 sps:$4 sm:$0xff]   ;;  %v6923_v21 = vld [vmem:[#allocation2 + $0x60] ss:$8 sps:$4 sm:$0xff]   ;;  %v6924_v22 = vld [vmem:[#allocation2 + $0x74] ss:$8 sps:$4 sm:$0xff]  }
  0x73   :  { %964 = vmatpush1.bf16.msra.mxu0 %v6908_v3  ;;  %v127_v19 = vld [vmem:[%s8839_s0] sm:$0xff]  ;;  %v6926_v25 = vld [vmem:[#allocation2 + $0x70] ss:$8 sps:$4 sm:$0xff]   ;;  %v6930_v28 = vld [vmem:[#allocation2 + $0x94] ss:$8 sps:$4 sm:$0xff]   ;;  %vm1391_vm1 = vcmask 64512  }
  0x74   :  { %965 = vmatprep.subr.bf16.mxu0 %v6909_v4  ;;  %v8379_v16 = vsub.s32 %v134_v12, %v8376_v13  ;;  %v6927_v26 = vld [vmem:[#allocation2 + $0x84] ss:$8 sps:$4 sm:$0xff]   ;;  %v6929_v27 = vld [vmem:[#allocation2 + $0x80] ss:$8 sps:$4 sm:$0xff]   ;;  %v6932_v29 = vld [vmem:[#allocation2 + $0x90] ss:$8 sps:$4 sm:$0xff]   ;;  %v131_v38 = vcombine.high %v127_v19, %v127_v19 }
  0x75   :  { %v6933_v30 = vld [vmem:[#allocation2 + $0xa4] ss:$8 sps:$4 sm:$0xff]   ;;  %v6935_v31 = vld [vmem:[#allocation2 + $0xa0] ss:$8 sps:$4 sm:$0xff]   ;;  %v6936_v32 = vld [vmem:[#allocation2 + $0xb4] ss:$8 sps:$4 sm:$0xff]  }
  0x76   :  { %v138_v20 = vrot.slane %v127_v19, %v8379_v16  ;;  %v6938_v33 = vld [vmem:[#allocation2 + $0xb0] ss:$8 sps:$4 sm:$0xff]   ;;  %v6939_v34 = vld [vmem:[#allocation2 + $0xc4] ss:$8 sps:$4 sm:$0xff]   ;;  %v6941_v35 = vld [vmem:[#allocation2 + $0xc0] ss:$8 sps:$4 sm:$0xff]   ;;  %v8386_v41 = vrot.slane %v131_v38, %v8379_v16 }
  0x77   :  { %966 = vmatpush1.bf16.msra.mxu0 %v6911_v5  ;;  %v6942_v36 = vld [vmem:[#allocation2 + $0xd4] ss:$8 sps:$4 sm:$0xff]   ;;  %v6944_v37 = vld [vmem:[#allocation2 + $0xd0] ss:$8 sps:$4 sm:$0xff]   ;;  %v6945_v39 = vld [vmem:[#allocation2 + $0xe4] ss:$8 sps:$4 sm:$0xff]  }
  0x78   :  { %967 = vmatprep.subr.bf16.mxu0 %v6912_v6  ;;  %v146_v23 = vcombine.high %v138_v20, %v138_v20  ;;  %v6947_v40 = vld [vmem:[#allocation2 + $0xe0] ss:$8 sps:$4 sm:$0xff]   ;;  %v6948_v42 = vld [vmem:[#allocation2 + $0xf4] ss:$8 sps:$4 sm:$0xff]   ;;  %v6950_v43 = vld [vmem:[#allocation2 + $0xf0] ss:$8 sps:$4 sm:$0xff]   ;;  %v147_v44 = vcombine.high %v8386_v41, %v8386_v41  ;;  %v173_v46 = vpack.c.bf16 %v138_v20, %v138_v20 }
  0x79   :  { %v6954_v45 = vld [vmem:[#allocation2 + $0x104] ss:$8 sps:$4 sm:$0xff]   ;;  %v6952_v47 = vld [vmem:[#allocation2 + $0x100] ss:$8 sps:$4 sm:$0xff]   ;;  %v6957_v49 = vld [vmem:[#allocation2 + $0x114] ss:$8 sps:$4 sm:$0xff]  }
  0x7a   :  { %v174_v24 = vpack.c.bf16 %v146_v23, %v146_v23  ;;  %v176_v48 = vpack.c.bf16 %v147_v44, %v147_v44  ;;  %v6955_v50 = vld [vmem:[#allocation2 + $0x110] ss:$8 sps:$4 sm:$0xff]   ;;  %v6960_v51 = vld [vmem:[#allocation2 + $0x124] ss:$8 sps:$4 sm:$0xff]   ;;  %v6958_v52 = vld [vmem:[#allocation2 + $0x120] ss:$8 sps:$4 sm:$0xff]  }
  0x7b   :  { %968 = vmatpush1.bf16.msra.mxu0 %v6914_v10  ;;  %v6963_v53 = vld [vmem:[#allocation2 + $0x134] ss:$8 sps:$4 sm:$0xff]   ;;  %v6961_v54 = vld [vmem:[#allocation2 + $0x130] ss:$8 sps:$4 sm:$0xff]   ;;  %v6966_v55 = vld [vmem:[#allocation2 + $0x144] ss:$8 sps:$4 sm:$0xff]  }
  0x7c   :  { %969 = vmatprep.subr.bf16.mxu0 %v6915_v11  ;;  %993 = vmatprep.mubr.bf16.mxu0 %v174_v24  ;;  %v6964_v56 = vld [vmem:[#allocation2 + $0x140] ss:$8 sps:$4 sm:$0xff]   ;;  %v6969_v57 = vld [vmem:[#allocation2 + $0x154] ss:$8 sps:$4 sm:$0xff]   ;;  %v6967_v58 = vld [vmem:[#allocation2 + $0x150] ss:$8 sps:$4 sm:$0xff]  }
  0x7d   :  { %v6972_v59 = vld [vmem:[#allocation2 + $0x164] ss:$8 sps:$4 sm:$0xff]   ;;  %v6970_v60 = vld [vmem:[#allocation2 + $0x160] ss:$8 sps:$4 sm:$0xff]   ;;  %v6975_v61 = vld [vmem:[#allocation2 + $0x174] ss:$8 sps:$4 sm:$0xff]  }
  0x7e   :  { %v6973_v62 = vld [vmem:[#allocation2 + $0x170] ss:$8 sps:$4 sm:$0xff]   ;;  %v6978_v63 = vld [vmem:[#allocation2 + $0x184] ss:$8 sps:$4 sm:$0xff]   ;;  %v6976_v0 = vld [vmem:[#allocation2 + $0x180] ss:$8 sps:$4 sm:$0xff]  }
  0x7f   :  { %970 = vmatpush1.bf16.msra.mxu0 %v6917_v14  ;;  %v6981_v1 = vld [vmem:[#allocation2 + $0x194] ss:$8 sps:$4 sm:$0xff]   ;;  %v6979_v2 = vld [vmem:[#allocation2 + $0x190] ss:$8 sps:$4 sm:$0xff]   ;;  %v6984_v3 = vld [vmem:[#allocation2 + $0x1a4] ss:$8 sps:$4 sm:$0xff]  }
  0x80   :  { %971 = vmatprep.subr.bf16.mxu0 %v6918_v15  ;;  %v6982_v4 = vld [vmem:[#allocation2 + $0x1a0] ss:$8 sps:$4 sm:$0xff]   ;;  %v6987_v5 = vld [vmem:[#allocation2 + $0x1b4] ss:$8 sps:$4 sm:$0xff]   ;;  %v6985_v6 = vld [vmem:[#allocation2 + $0x1b0] ss:$8 sps:$4 sm:$0xff]  }
  0x81   :  { %v6990_v7 = vld [vmem:[#allocation2 + $0x1c4] ss:$8 sps:$4 sm:$0xff]   ;;  %v6988_v8 = vld [vmem:[#allocation2 + $0x1c0] ss:$8 sps:$4 sm:$0xff]   ;;  %v6993_v9 = vld [vmem:[#allocation2 + $0x1d4] ss:$8 sps:$4 sm:$0xff]  }
  0x82   :  { %v6991_v10 = vld [vmem:[#allocation2 + $0x1d0] ss:$8 sps:$4 sm:$0xff]   ;;  %v6996_v11 = vld [vmem:[#allocation2 + $0x1e4] ss:$8 sps:$4 sm:$0xff]   ;;  %v6994_v14 = vld [vmem:[#allocation2 + $0x1e0] ss:$8 sps:$4 sm:$0xff]  }
  0x83   :  { %972 = vmatpush1.bf16.msra.mxu0 %v6920_v17  ;;  %v8393_v12 = vld [vmem:[%s8839_s0 + $0x8] sm:$0xff]  ;;  %v6999_v15 = vld [vmem:[#allocation2 + $0x1f4] ss:$8 sps:$4 sm:$0xff]  }
  0x84   :  { %973 = vmatprep.subr.bf16.mxu0 %v6921_v18  ;;  %v8397_v17 = vrot.slane %v8393_v12, %v8379_v16  ;;  %v6997_v18 = vld [vmem:[#allocation2 + $0x1f0] ss:$8 sps:$4 sm:$0xff]   ;;  %v7002_v19 = vld [vmem:[#allocation2 + $0x204] ss:$8 sps:$4 sm:$0xff]   ;;  %v7005_v24 = vld [vmem:[#allocation2 + $0x214] ss:$8 sps:$4 sm:$0xff]  }
  0x85   :  { %v7026_v38 = vld [vmem:[#allocation2 + $0x284] ss:$8 sps:$4 sm:$0xff]   ;;  %v7035_v44 = vld [vmem:[#allocation2 + $0x2b4] ss:$8 sps:$4 sm:$0xff]  }
  0x86   :  { %v163_v20 = vcombine.high %v8397_v17, %v8397_v17 }
  0x87   :  { %974 = vmatpush1.bf16.msra.mxu0 %v6923_v21  ;;  %v7000_v21 = vld [vmem:[#allocation2 + $0x200] ss:$8 sps:$4 sm:$0xff]  }
  0x88   :  { %975 = vmatprep.subr.bf16.mxu0 %v6924_v22  ;;  %v175_v22 = vpack.c.bf16 %v8386_v41, %v8386_v41  ;;  %v178_v23 = vpack.c.bf16 %v163_v20, %v163_v20  ;;  %v7027_v41 = vld [vmem:[#allocation2 + $0x290] ss:$8 sps:$4 sm:$0xff]   ;;  %v7080_v20 = vld [vmem:[#allocation2 + $0x3a4] ss:$8 sps:$4 sm:$0xff]  }
  0x8b   :  { %976 = vmatpush1.bf16.msra.mxu0 %v6926_v25  ;;  %v7003_v25 = vld [vmem:[#allocation2 + $0x210] ss:$8 sps:$4 sm:$0xff]  }
  0x8c   :  { %977 = vmatprep.subr.bf16.mxu0 %v6927_v26  ;;  %v7008_v26 = vld [vmem:[#allocation2 + $0x224] ss:$8 sps:$4 sm:$0xff]  }
  0x8f   :  { %978 = vmatpush1.bf16.msra.mxu0 %v6929_v27  ;;  %v7006_v27 = vld [vmem:[#allocation2 + $0x220] ss:$8 sps:$4 sm:$0xff]  }
  0x90   :  { %979 = vmatprep.subr.bf16.mxu0 %v6930_v28  ;;  %v7011_v28 = vld [vmem:[#allocation2 + $0x234] ss:$8 sps:$4 sm:$0xff]  }
  0x93   :  { %980 = vmatpush1.bf16.msra.mxu0 %v6932_v29  ;;  %v7009_v29 = vld [vmem:[#allocation2 + $0x230] ss:$8 sps:$4 sm:$0xff]  }
  0x94   :  { %981 = vmatprep.subr.bf16.mxu0 %v6933_v30  ;;  %v7014_v30 = vld [vmem:[#allocation2 + $0x244] ss:$8 sps:$4 sm:$0xff]  }
  0x97   :  { %982 = vmatpush1.bf16.msra.mxu0 %v6935_v31  ;;  %v7012_v31 = vld [vmem:[#allocation2 + $0x240] ss:$8 sps:$4 sm:$0xff]  }
  0x98   :  { %983 = vmatprep.subr.bf16.mxu0 %v6936_v32  ;;  %v7017_v32 = vld [vmem:[#allocation2 + $0x254] ss:$8 sps:$4 sm:$0xff]  }
  0x9b   :  { %984 = vmatpush1.bf16.msra.mxu0 %v6938_v33  ;;  %v7015_v33 = vld [vmem:[#allocation2 + $0x250] ss:$8 sps:$4 sm:$0xff]  }
  0x9c   :  { %985 = vmatprep.subr.bf16.mxu0 %v6939_v34  ;;  %v7020_v34 = vld [vmem:[#allocation2 + $0x264] ss:$8 sps:$4 sm:$0xff]  }
  0x9f   :  { %986 = vmatpush1.bf16.msra.mxu0 %v6941_v35  ;;  %v7018_v35 = vld [vmem:[#allocation2 + $0x260] ss:$8 sps:$4 sm:$0xff]  }
  0xa0   :  { %987 = vmatprep.subr.bf16.mxu0 %v6942_v36  ;;  %v7023_v36 = vld [vmem:[#allocation2 + $0x274] ss:$8 sps:$4 sm:$0xff]  }
  0xa3   :  { %988 = vmatpush1.bf16.msra.mxu0 %v6944_v37  ;;  %v7021_v37 = vld [vmem:[#allocation2 + $0x270] ss:$8 sps:$4 sm:$0xff]  }
  0xa4   :  { %989 = vmatprep.subr.bf16.mxu0 %v6945_v39  ;;  %v7024_v39 = vld [vmem:[#allocation2 + $0x280] ss:$8 sps:$4 sm:$0xff]  }
  0xa7   :  { %990 = vmatpush1.bf16.msra.mxu0 %v6947_v40  ;;  %v7029_v40 = vld [vmem:[#allocation2 + $0x294] ss:$8 sps:$4 sm:$0xff]  }
  0xa8   :  { %991 = vmatprep.subr.bf16.mxu0 %v6948_v42  ;;  %v7032_v42 = vld [vmem:[#allocation2 + $0x2a4] ss:$8 sps:$4 sm:$0xff]  }
  0xab   :  { %992 = vmatpush1.bf16.msra.mxu0 %v6950_v43  ;;  %v7030_v43 = vld [vmem:[#allocation2 + $0x2a0] ss:$8 sps:$4 sm:$0xff]  }
  0xac   :  { %1002 = vmatprep.subr.bf16.mxu0 %v6954_v45  ;;  %v7033_v45 = vld [vmem:[#allocation2 + $0x2b0] ss:$8 sps:$4 sm:$0xff]  }
  0xae   :  { %994 = vmatmul.mubr.bf16.vlgmr.msra.gmra.mrb[0].mxu0 %v173_v46  ;;  %v7038_v46 = vld [vmem:[#allocation2 + $0x2c4] ss:$8 sps:$4 sm:$0xff]  }
  0xaf   :  { %1003 = vmatpush1.bf16.msra.mxu0 %v6952_v47  ;;  %1034 = vmatprep.mubr.bf16.mxu0 %v176_v48  ;;  %v7036_v47 = vld [vmem:[#allocation2 + $0x2c0] ss:$8 sps:$4 sm:$0xff]   ;;  %v7041_v48 = vld [vmem:[#allocation2 + $0x2d4] ss:$8 sps:$4 sm:$0xff]  }
  0xb0   :  { %1004 = vmatprep.subr.bf16.mxu0 %v6957_v49  ;;  %v7039_v49 = vld [vmem:[#allocation2 + $0x2d0] ss:$8 sps:$4 sm:$0xff]  }
  0xb3   :  { %1005 = vmatpush1.bf16.msra.mxu0 %v6955_v50  ;;  %v7044_v50 = vld [vmem:[#allocation2 + $0x2e4] ss:$8 sps:$4 sm:$0xff]  }
  0xb4   :  { %1006 = vmatprep.subr.bf16.mxu0 %v6960_v51  ;;  %v148_v51 = vcombine.high %v8393_v12, %v8393_v12  ;;  %v7071_v12 = vld [vmem:[#allocation2 + $0x374] ss:$8 sps:$4 sm:$0xff]  }
  0xb7   :  { %1007 = vmatpush1.bf16.msra.mxu0 %v6958_v52  ;;  %v7042_v52 = vld [vmem:[#allocation2 + $0x2e0] ss:$8 sps:$4 sm:$0xff]  }
  0xb8   :  { %1008 = vmatprep.subr.bf16.mxu0 %v6963_v53  ;;  %v7047_v53 = vld [vmem:[#allocation2 + $0x2f4] ss:$8 sps:$4 sm:$0xff]  }
  0xbb   :  { %1009 = vmatpush1.bf16.msra.mxu0 %v6961_v54  ;;  %v8406_v54 = vrot.slane %v148_v51, %v8379_v16  ;;  %v7123_v51 = vld [vmem:[%s8841_s2 + $0x84] ss:$8 sps:$4 sm:$0xff]  }
  0xbc   :  { %1010 = vmatprep.subr.bf16.mxu0 %v6966_v55  ;;  %v7045_v55 = vld [vmem:[#allocation2 + $0x2f0] ss:$8 sps:$4 sm:$0xff]  }
  0xbf   :  { %1011 = vmatpush1.bf16.msra.mxu0 %v6964_v56  ;;  %v7050_v56 = vld [vmem:[#allocation2 + $0x304] ss:$8 sps:$4 sm:$0xff]  }
  0xc0   :  { %1012 = vmatprep.subr.bf16.mxu0 %v6969_v57  ;;  %v164_v57 = vcombine.high %v8406_v54, %v8406_v54 }
  0xc3   :  { %1013 = vmatpush1.bf16.msra.mxu0 %v6967_v58  ;;  %v7048_v58 = vld [vmem:[#allocation2 + $0x300] ss:$8 sps:$4 sm:$0xff]  }
  0xc4   :  { %1014 = vmatprep.subr.bf16.mxu0 %v6972_v59  ;;  %v177_v59 = vpack.c.bf16 %v8397_v17, %v8397_v17  ;;  %v7072_v17 = vld [vmem:[#allocation2 + $0x380] ss:$8 sps:$4 sm:$0xff]  }
  0xc7   :  { %1015 = vmatpush1.bf16.msra.mxu0 %v6970_v60  ;;  %v7053_v60 = vld [vmem:[#allocation2 + $0x314] ss:$8 sps:$4 sm:$0xff]  }
  0xc8   :  { %1016 = vmatprep.subr.bf16.mxu0 %v6975_v61  ;;  %v180_v61 = vpack.c.bf16 %v164_v57, %v164_v57  ;;  %v7132_v57 = vld [vmem:[%s8841_s2 + $0xb4] ss:$8 sps:$4 sm:$0xff]  }
  0xcb   :  { %1017 = vmatpush1.bf16.msra.mxu0 %v6973_v62  ;;  %v7051_v62 = vld [vmem:[#allocation2 + $0x310] ss:$8 sps:$4 sm:$0xff]  }
  0xcc   :  { %1018 = vmatprep.subr.bf16.mxu0 %v6978_v63  ;;  %v7056_v63 = vld [vmem:[#allocation2 + $0x324] ss:$8 sps:$4 sm:$0xff]  }
  0xcf   :  { %1019 = vmatpush1.bf16.msra.mxu0 %v6976_v0  ;;  %v8415_v0 = vld [vmem:[%s8850_s11] sm:$0xff] }
  0xd0   :  { %1020 = vmatprep.subr.bf16.mxu0 %v6981_v1  ;;  %v8199_v1 = vmov 1  }
  0xd1   :  { %6901 = vset.pattern.permute.xlu1 %v8199_v1 }
  0xd2   :  { %2876 = vperm.xlu1 %6901, %v8415_v0  }
  0xd3   :  { %1021 = vmatpush1.bf16.msra.mxu0 %v6979_v2  ;;  %v8421_v2 = vld [vmem:[%s8850_s11 + $0x8] sm:$0xff] }
  0xd4   :  { %1022 = vmatprep.subr.bf16.mxu0 %v6984_v3  ;;  %v7054_v3 = vld [vmem:[#allocation2 + $0x320] ss:$8 sps:$4 sm:$0xff]  }
  0xd6   :  { %2882 = vperm.xlu1 %6901, %v8421_v2  }
  0xd7   :  { %1023 = vmatpush1.bf16.msra.mxu0 %v6982_v4  ;;  %v7059_v4 = vld [vmem:[#allocation2 + $0x334] ss:$8 sps:$4 sm:$0xff]  }
  0xd8   :  { %1024 = vmatprep.subr.bf16.mxu0 %v6987_v5  ;;  %v7057_v5 = vld [vmem:[#allocation2 + $0x330] ss:$8 sps:$4 sm:$0xff]  }
  0xdb   :  { %1025 = vmatpush1.bf16.msra.mxu0 %v6985_v6  ;;  %v7062_v6 = vld [vmem:[#allocation2 + $0x344] ss:$8 sps:$4 sm:$0xff]  }
  0xdc   :  { %1026 = vmatprep.subr.bf16.mxu0 %v6990_v7  ;;  %v7060_v7 = vld [vmem:[#allocation2 + $0x340] ss:$8 sps:$4 sm:$0xff]  }
  0xdf   :  { %1027 = vmatpush1.bf16.msra.mxu0 %v6988_v8  ;;  %v7065_v8 = vld [vmem:[#allocation2 + $0x354] ss:$8 sps:$4 sm:$0xff]  }
  0xe0   :  { %1028 = vmatprep.subr.bf16.mxu0 %v6993_v9  ;;  %v7063_v9 = vld [vmem:[#allocation2 + $0x350] ss:$8 sps:$4 sm:$0xff]  }
  0xe3   :  { %1029 = vmatpush1.bf16.msra.mxu0 %v6991_v10  ;;  %v7068_v10 = vld [vmem:[#allocation2 + $0x364] ss:$8 sps:$4 sm:$0xff]  }
  0xe4   :  { %1030 = vmatprep.subr.bf16.mxu0 %v6996_v11  ;;  %v7066_v11 = vld [vmem:[#allocation2 + $0x360] ss:$8 sps:$4 sm:$0xff]  }
  0xe7   :  { %1031 = vmatpush1.bf16.msra.mxu0 %v6994_v14  ;;  %v7069_v14 = vld [vmem:[#allocation2 + $0x370] ss:$8 sps:$4 sm:$0xff]  }
  0xe8   :  { %1032 = vmatprep.subr.bf16.mxu0 %v6999_v15  ;;  %v7074_v15 = vld [vmem:[#allocation2 + $0x384] ss:$8 sps:$4 sm:$0xff]  }
  0xeb   :  { %1033 = vmatpush1.bf16.msra.mxu0 %v6997_v18  ;;  %v7077_v18 = vld [vmem:[#allocation2 + $0x394] ss:$8 sps:$4 sm:$0xff]  }
  0xec   :  { %1043 = vmatprep.subr.bf16.mxu0 %v7002_v19  ;;  %v7075_v19 = vld [vmem:[#allocation2 + $0x390] ss:$8 sps:$4 sm:$0xff]  }
  0xee   :  { %1035 = vmatmul.mubr.bf16.vlgmr.msra.gmra.mrb[0].mxu0 %v175_v22  ;;  %v7083_v22 = vld [vmem:[#allocation2 + $0x3b4] ss:$8 sps:$4 sm:$0xff]  }
  0xef   :  { %1044 = vmatpush1.bf16.msra.mxu0 %v7000_v21  ;;  %1075 = vmatprep.mubr.bf16.mxu0 %v178_v23  ;;  %v7078_v21 = vld [vmem:[#allocation2 + $0x3a0] ss:$8 sps:$4 sm:$0xff]   ;;  %v7081_v23 = vld [vmem:[#allocation2 + $0x3b0] ss:$8 sps:$4 sm:$0xff]  }
  0xf0   :  { %1045 = vmatprep.subr.bf16.mxu0 %v7005_v24  ;;  %v7086_v24 = vld [vmem:[#allocation2 + $0x3c4] ss:$8 sps:$4 sm:$0xff]  }
  0xf3   :  { %1046 = vmatpush1.bf16.msra.mxu0 %v7003_v25  ;;  %v7084_v25 = vld [vmem:[#allocation2 + $0x3c0] ss:$8 sps:$4 sm:$0xff]  }
  0xf4   :  { %1047 = vmatprep.subr.bf16.mxu0 %v7008_v26  ;;  %v7089_v26 = vld [vmem:[#allocation2 + $0x3d4] ss:$8 sps:$4 sm:$0xff]  }
  0xf7   :  { %1048 = vmatpush1.bf16.msra.mxu0 %v7006_v27  ;;  %v7087_v27 = vld [vmem:[#allocation2 + $0x3d0] ss:$8 sps:$4 sm:$0xff]  }
  0xf8   :  { %1049 = vmatprep.subr.bf16.mxu0 %v7011_v28  ;;  %v7092_v28 = vld [vmem:[#allocation2 + $0x3e4] ss:$8 sps:$4 sm:$0xff]  }
  0xfb   :  { %1050 = vmatpush1.bf16.msra.mxu0 %v7009_v29  ;;  %v7090_v29 = vld [vmem:[#allocation2 + $0x3e0] ss:$8 sps:$4 sm:$0xff]  }
  0xfc   :  { %1051 = vmatprep.subr.bf16.mxu0 %v7014_v30  ;;  %v7095_v30 = vld [vmem:[#allocation2 + $0x3f4] ss:$8 sps:$4 sm:$0xff]  }
  0xff   :  { %1052 = vmatpush1.bf16.msra.mxu0 %v7012_v31  ;;  %v7093_v31 = vld [vmem:[#allocation2 + $0x3f0] ss:$8 sps:$4 sm:$0xff]  }
 0x100   :  { %1053 = vmatprep.subr.bf16.mxu0 %v7017_v32  ;;  %v7099_v32 = vld [vmem:[%s8841_s2 + $0x4] ss:$8 sps:$4 sm:$0xff]  }
 0x103   :  { %1054 = vmatpush1.bf16.msra.mxu0 %v7015_v33  ;;  %v1134_v33 = vld [vmem:[%s8840_s1 + $0x8] sm:$0xff] }
 0x104   :  { %1055 = vmatprep.subr.bf16.mxu0 %v7020_v34  ;;  %v7097_v34 = vld [vmem:[%s8841_s2] ss:$8 sps:$4 sm:$0xff]  }
 0x107   :  { %1056 = vmatpush1.bf16.msra.mxu0 %v7018_v35  ;;  %v179_v35 = vpack.c.bf16 %v8406_v54, %v8406_v54  ;;  %v7124_v54 = vld [vmem:[%s8841_s2 + $0x90] ss:$8 sps:$4 sm:$0xff]  }
 0x108   :  { %1057 = vmatprep.subr.bf16.mxu0 %v7023_v36  ;;  %v7102_v36 = vld [vmem:[%s8841_s2 + $0x14] ss:$8 sps:$4 sm:$0xff]  }
 0x10b   :  { %1058 = vmatpush1.bf16.msra.mxu0 %v7021_v37  ;;  %v1136_v37 = vpack.c.bf16 %v1134_v33, %v1134_v33 }
 0x10c   :  { %1059 = vmatprep.subr.bf16.mxu0 %v7026_v38  ;;  %v7100_v38 = vld [vmem:[%s8841_s2 + $0x10] ss:$8 sps:$4 sm:$0xff]  }
 0x10f   :  { %1060 = vmatpush1.bf16.msra.mxu0 %v7024_v39  ;;  %v7105_v39 = vld [vmem:[%s8841_s2 + $0x24] ss:$8 sps:$4 sm:$0xff]  }
 0x110   :  { %1061 = vmatprep.subr.bf16.mxu0 %v7029_v40  ;;  %v7103_v40 = vld [vmem:[%s8841_s2 + $0x20] ss:$8 sps:$4 sm:$0xff]  }
 0x113   :  { %1062 = vmatpush1.bf16.msra.mxu0 %v7027_v41  ;;  %v7108_v41 = vld [vmem:[%s8841_s2 + $0x34] ss:$8 sps:$4 sm:$0xff]  }
 0x114   :  { %1063 = vmatprep.subr.bf16.mxu0 %v7032_v42  ;;  %v7106_v42 = vld [vmem:[%s8841_s2 + $0x30] ss:$8 sps:$4 sm:$0xff]  }
 0x117   :  { %1064 = vmatpush1.bf16.msra.mxu0 %v7030_v43  ;;  %v7111_v43 = vld [vmem:[%s8841_s2 + $0x44] ss:$8 sps:$4 sm:$0xff]  }
 0x118   :  { %1065 = vmatprep.subr.bf16.mxu0 %v7035_v44  ;;  %v7109_v44 = vld [vmem:[%s8841_s2 + $0x40] ss:$8 sps:$4 sm:$0xff]  }
 0x11b   :  { %1066 = vmatpush1.bf16.msra.mxu0 %v7033_v45  ;;  %v7114_v45 = vld [vmem:[%s8841_s2 + $0x54] ss:$8 sps:$4 sm:$0xff]  }
 0x11c   :  { %1067 = vmatprep.subr.bf16.mxu0 %v7038_v46  ;;  %v7112_v46 = vld [vmem:[%s8841_s2 + $0x50] ss:$8 sps:$4 sm:$0xff]  }
 0x11f   :  { %1068 = vmatpush1.bf16.msra.mxu0 %v7036_v47  ;;  %v7117_v47 = vld [vmem:[%s8841_s2 + $0x64] ss:$8 sps:$4 sm:$0xff]  }
 0x120   :  { %1069 = vmatprep.subr.bf16.mxu0 %v7041_v48  ;;  %v7115_v48 = vld [vmem:[%s8841_s2 + $0x60] ss:$8 sps:$4 sm:$0xff]  }
 0x123   :  { %1070 = vmatpush1.bf16.msra.mxu0 %v7039_v49  ;;  %v7120_v49 = vld [vmem:[%s8841_s2 + $0x74] ss:$8 sps:$4 sm:$0xff]  }
 0x124   :  { %1071 = vmatprep.subr.bf16.mxu0 %v7044_v50  ;;  %v7118_v50 = vld [vmem:[%s8841_s2 + $0x70] ss:$8 sps:$4 sm:$0xff]  }
 0x127   :  { %1072 = vmatpush1.bf16.msra.mxu0 %v7042_v52  ;;  %v7121_v52 = vld [vmem:[%s8841_s2 + $0x80] ss:$8 sps:$4 sm:$0xff]  }
 0x128   :  { %1073 = vmatprep.subr.bf16.mxu0 %v7047_v53  ;;  %v7126_v53 = vld [vmem:[%s8841_s2 + $0x94] ss:$8 sps:$4 sm:$0xff]  }
 0x12b   :  { %1074 = vmatpush1.bf16.msra.mxu0 %v7045_v55  ;;  %v7129_v55 = vld [vmem:[%s8841_s2 + $0xa4] ss:$8 sps:$4 sm:$0xff]  }
 0x12c   :  { %1084 = vmatprep.subr.bf16.mxu0 %v7050_v56  ;;  %v7127_v56 = vld [vmem:[%s8841_s2 + $0xa0] ss:$8 sps:$4 sm:$0xff]  }
 0x12e   :  { %1076 = vmatmul.mubr.bf16.vlgmr.msra.gmra.mrb[0].mxu0 %v177_v59  ;;  %v7135_v59 = vld [vmem:[%s8841_s2 + $0xc4] ss:$8 sps:$4 sm:$0xff]  }
 0x12f   :  { %1085 = vmatpush1.bf16.msra.mxu0 %v7048_v58  ;;  %1116 = vmatprep.mubr.bf16.mxu0 %v180_v61  ;;  %v7130_v58 = vld [vmem:[%s8841_s2 + $0xb0] ss:$8 sps:$4 sm:$0xff]   ;;  %v7138_v61 = vld [vmem:[%s8841_s2 + $0xd4] ss:$8 sps:$4 sm:$0xff]  }
 0x130   :  { %1086 = vmatprep.subr.bf16.mxu0 %v7053_v60  ;;  %v7133_v60 = vld [vmem:[%s8841_s2 + $0xc0] ss:$8 sps:$4 sm:$0xff]  }
 0x133   :  { %1087 = vmatpush1.bf16.msra.mxu0 %v7051_v62  ;;  %v7136_v62 = vld [vmem:[%s8841_s2 + $0xd0] ss:$8 sps:$4 sm:$0xff]  }
 0x134   :  { %1088 = vmatprep.subr.bf16.mxu0 %v7056_v63  ;;  %v7141_v63 = vld [vmem:[%s8841_s2 + $0xe4] ss:$8 sps:$4 sm:$0xff]  }
 0x137   :  { %1089 = vmatpush1.bf16.msra.mxu0 %v7054_v3  ;;  %v7139_v3 = vld [vmem:[%s8841_s2 + $0xe0] ss:$8 sps:$4 sm:$0xff]  }
 0x138   :  { %1090 = vmatprep.subr.bf16.mxu0 %v7059_v4  ;;  %v7144_v4 = vld [vmem:[%s8841_s2 + $0xf4] ss:$8 sps:$4 sm:$0xff]  }
 0x13b   :  { %1091 = vmatpush1.bf16.msra.mxu0 %v7057_v5  ;;  %v7142_v5 = vld [vmem:[%s8841_s2 + $0xf0] ss:$8 sps:$4 sm:$0xff]  }
 0x13c   :  { %1092 = vmatprep.subr.bf16.mxu0 %v7062_v6  ;;  %v1133_v6 = vld [vmem:[%s8840_s1] sm:$0xff] }
 0x13f   :  { %1093 = vmatpush1.bf16.msra.mxu0 %v7060_v7  ;;  %v1135_v7 = vpack.c.bf16 %v1133_v6, %v1133_v6  ;;  %v7196_v6 = vld [vmem:[%s8844_s5 + $0xc] ss:$16 sps:$4 sm:$0xff]  }
 0x140   :  { %1094 = vmatprep.subr.bf16.mxu0 %v7065_v8  ;;  %v8200_v8 = vmov 0  }
 0x141   :  { %1434 = vmatprep.mubr.bf16.mxu1 %v8200_v8  ;;  %6900 = vset.pattern.permute.xlu0 %v8200_v8 }
 0x142   :  { %1383 = vperm.xlu0 %6900, %v8421_v2  }
 0x143   :  { %1095 = vmatpush1.bf16.msra.mxu0 %v7063_v9  ;;  %v8535_v9 = vsub.s32 0, %v8376_v13 }
 0x144   :  { %1096 = vmatprep.subr.bf16.mxu0 %v7068_v10  ;;  %v309_v10 = vld [vmem:[%s8851_s12] ss:$4 sm:$0x3] }
 0x146   :  { %1378 = vperm.xlu0 %6900, %v8415_v0  }
 0x147   :  { %1097 = vmatpush1.bf16.msra.mxu0 %v7066_v11  ;;  %v8541_v11 = vsub.s32 1, %v8376_v13 }
 0x148   :  { %1098 = vmatprep.subr.bf16.mxu0 %v7071_v12  ;;  %v314_v12 = vrot.slane %v309_v10, %v8535_v9 }
 0x14a   :  { %6902 = vset.pattern.permute.xlu0 %v8199_v1 }
 0x14b   :  { %1099 = vmatpush1.bf16.msra.mxu0 %v7069_v14  ;;  %v318_v14 = vrot.slane %v309_v10, %v8541_v11  ;;  %v7247_v10 = vld [vmem:[#allocation6 + $0xc] ss:$16 sps:$4 sm:$0xff]  }
 0x14c   :  { %1100 = vmatprep.subr.bf16.mxu0 %v7074_v15 }
 0x14f   :  { %1101 = vmatpush1.bf16.msra.mxu0 %v7072_v17 }
 0x150   :  { %1102 = vmatprep.subr.bf16.mxu0 %v7077_v18 }
 0x153   :  { %1103 = vmatpush1.bf16.msra.mxu0 %v7075_v19 }
 0x154   :  { %1104 = vmatprep.subr.bf16.mxu0 %v7080_v20 }
 0x157   :  { %1105 = vmatpush1.bf16.msra.mxu0 %v7078_v21 }
 0x158   :  { %1106 = vmatprep.subr.bf16.mxu0 %v7083_v22 }
 0x15b   :  { %1107 = vmatpush1.bf16.msra.mxu0 %v7081_v23 }
 0x15c   :  { %1108 = vmatprep.subr.bf16.mxu0 %v7086_v24 }
 0x15f   :  { %1109 = vmatpush1.bf16.msra.mxu0 %v7084_v25 }
 0x160   :  { %1110 = vmatprep.subr.bf16.mxu0 %v7089_v26 }
 0x163   :  { %1111 = vmatpush1.bf16.msra.mxu0 %v7087_v27 }
 0x164   :  { %1112 = vmatprep.subr.bf16.mxu0 %v7092_v28 }
 0x167   :  { %1113 = vmatpush1.bf16.msra.mxu0 %v7090_v29 }
 0x168   :  { %1114 = vmatprep.subr.bf16.mxu0 %v7095_v30 }
 0x16b   :  { %1115 = vmatpush1.bf16.msra.mxu0 %v7093_v31 }
 0x16c   :  { %1329 = vmatprep.subr.bf16.mxu0 %v7099_v32  ;;  %v7148_v32 = vld [vmem:[%s8844_s5 + $0x4] ss:$16 sps:$4 sm:$0xff]  }
 0x16e   :  { %1117 = vmatmul.mubr.bf16.vlgmr.msra.gmra.mrb[0].mxu0 %v179_v35  ;;  %v7145_v35 = vld [vmem:[%s8849_s10] sm:$0xff]  }
 0x16f   :  { %1330 = vmatpush1.bf16.msra.mxu0 %v7097_v34  ;;  %1361 = vmatprep.mubr.bf16.mxu0 %v1136_v37  ;;  %v7151_v37 = vld [vmem:[%s8844_s5 + $0x24] ss:$16 sps:$4 sm:$0xff]  }
 0x170   :  { %1331 = vmatprep.subr.bf16.mxu0 %v7102_v36  ;;  %v7146_v36 = vld [vmem:[%s8844_s5] ss:$16 sps:$4 sm:$0xff]  }
 0x173   :  { %1332 = vmatpush1.bf16.msra.mxu0 %v7100_v38  ;;  %v7149_v38 = vld [vmem:[%s8844_s5 + $0x20] ss:$16 sps:$4 sm:$0xff]  }
 0x174   :  { %1333 = vmatprep.subr.bf16.mxu0 %v7105_v39  ;;  %v7154_v39 = vld [vmem:[%s8844_s5 + $0x44] ss:$16 sps:$4 sm:$0xff]  }
 0x177   :  { %1334 = vmatpush1.bf16.msra.mxu0 %v7103_v40  ;;  %v7152_v40 = vld [vmem:[%s8844_s5 + $0x40] ss:$16 sps:$4 sm:$0xff]  }
 0x178   :  { %1335 = vmatprep.subr.bf16.mxu0 %v7108_v41  ;;  %v7157_v41 = vld [vmem:[%s8844_s5 + $0x64] ss:$16 sps:$4 sm:$0xff]  }
 0x17b   :  { %1336 = vmatpush1.bf16.msra.mxu0 %v7106_v42  ;;  %v7155_v42 = vld [vmem:[%s8844_s5 + $0x60] ss:$16 sps:$4 sm:$0xff]  }
 0x17c   :  { %1337 = vmatprep.subr.bf16.mxu0 %v7111_v43  ;;  %v7160_v43 = vld [vmem:[%s8844_s5 + $0x84] ss:$16 sps:$4 sm:$0xff]  }
 0x17f   :  { %1338 = vmatpush1.bf16.msra.mxu0 %v7109_v44  ;;  %v7158_v44 = vld [vmem:[%s8844_s5 + $0x80] ss:$16 sps:$4 sm:$0xff]  }
 0x180   :  { %1339 = vmatprep.subr.bf16.mxu0 %v7114_v45  ;;  %v7163_v45 = vld [vmem:[%s8844_s5 + $0xa4] ss:$16 sps:$4 sm:$0xff]  }
 0x183   :  { %1340 = vmatpush1.bf16.msra.mxu0 %v7112_v46  ;;  %v7161_v46 = vld [vmem:[%s8844_s5 + $0xa0] ss:$16 sps:$4 sm:$0xff]  }
 0x184   :  { %1341 = vmatprep.subr.bf16.mxu0 %v7117_v47  ;;  %v7166_v47 = vld [vmem:[%s8844_s5 + $0xc4] ss:$16 sps:$4 sm:$0xff]  }
 0x187   :  { %1342 = vmatpush1.bf16.msra.mxu0 %v7115_v48  ;;  %v7164_v48 = vld [vmem:[%s8844_s5 + $0xc0] ss:$16 sps:$4 sm:$0xff]  }
 0x188   :  { %1343 = vmatprep.subr.bf16.mxu0 %v7120_v49  ;;  %v7169_v49 = vld [vmem:[%s8844_s5 + $0xe4] ss:$16 sps:$4 sm:$0xff]  }
 0x18b   :  { %1344 = vmatpush1.bf16.msra.mxu0 %v7118_v50  ;;  %v7167_v50 = vld [vmem:[%s8844_s5 + $0xe0] ss:$16 sps:$4 sm:$0xff]  }
 0x18c   :  { %1345 = vmatprep.subr.bf16.mxu0 %v7123_v51  ;;  %v7172_v51 = vld [vmem:[%s8844_s5 + $0x104] ss:$16 sps:$4 sm:$0xff]  }
 0x18f   :  { %1346 = vmatpush1.bf16.msra.mxu0 %v7121_v52  ;;  %v7170_v52 = vld [vmem:[%s8844_s5 + $0x100] ss:$16 sps:$4 sm:$0xff]  }
 0x190   :  { %1347 = vmatprep.subr.bf16.mxu0 %v7126_v53  ;;  %v7175_v53 = vld [vmem:[%s8844_s5 + $0x124] ss:$16 sps:$4 sm:$0xff]  }
 0x193   :  { %1348 = vmatpush1.bf16.msra.mxu0 %v7124_v54  ;;  %v7173_v54 = vld [vmem:[%s8844_s5 + $0x120] ss:$16 sps:$4 sm:$0xff]  }
 0x194   :  { %1349 = vmatprep.subr.bf16.mxu0 %v7129_v55  ;;  %v7178_v55 = vld [vmem:[%s8844_s5 + $0x144] ss:$16 sps:$4 sm:$0xff]  }
 0x197   :  { %1350 = vmatpush1.bf16.msra.mxu0 %v7127_v56  ;;  %v7176_v56 = vld [vmem:[%s8844_s5 + $0x140] ss:$16 sps:$4 sm:$0xff]  }
 0x198   :  { %1351 = vmatprep.subr.bf16.mxu0 %v7132_v57  ;;  %v7181_v57 = vld [vmem:[%s8844_s5 + $0x164] ss:$16 sps:$4 sm:$0xff]  }
 0x19b   :  { %1352 = vmatpush1.bf16.msra.mxu0 %v7130_v58  ;;  %v7179_v58 = vld [vmem:[%s8844_s5 + $0x160] ss:$16 sps:$4 sm:$0xff]  }
 0x19c   :  { %1353 = vmatprep.subr.bf16.mxu0 %v7135_v59  ;;  %v7184_v59 = vld [vmem:[%s8844_s5 + $0x184] ss:$16 sps:$4 sm:$0xff]  }
 0x19f   :  { %1354 = vmatpush1.bf16.msra.mxu0 %v7133_v60  ;;  %v7182_v60 = vld [vmem:[%s8844_s5 + $0x180] ss:$16 sps:$4 sm:$0xff]  }
 0x1a0   :  { %1355 = vmatprep.subr.bf16.mxu0 %v7138_v61  ;;  %v7187_v61 = vld [vmem:[%s8844_s5 + $0x1a4] ss:$16 sps:$4 sm:$0xff]  }
 0x1a3   :  { %1356 = vmatpush1.bf16.msra.mxu0 %v7136_v62  ;;  %v7185_v62 = vld [vmem:[%s8844_s5 + $0x1a0] ss:$16 sps:$4 sm:$0xff]  }
 0x1a4   :  { %1357 = vmatprep.subr.bf16.mxu0 %v7141_v63  ;;  %v7190_v63 = vld [vmem:[%s8844_s5 + $0x1c4] ss:$16 sps:$4 sm:$0xff]  }
 0x1a7   :  { %1358 = vmatpush1.bf16.msra.mxu0 %v7139_v3  ;;  %v7188_v3 = vld [vmem:[%s8844_s5 + $0x1c0] ss:$16 sps:$4 sm:$0xff]  }
 0x1a8   :  { %1359 = vmatprep.subr.bf16.mxu0 %v7144_v4  ;;  %v7193_v4 = vld [vmem:[%s8844_s5 + $0x1e4] ss:$16 sps:$4 sm:$0xff]  }
 0x1ab   :  { %1360 = vmatpush1.bf16.msra.mxu0 %v7142_v5  ;;  %v7191_v5 = vld [vmem:[%s8844_s5 + $0x1e0] ss:$16 sps:$4 sm:$0xff]  }
 0x1ac   :  { %2771 = vmatprep.subr.bf16.mxu0 %v7247_v10  ;;  %v7220_v10 = vld [vmem:[%s8844_s5 + $0x10c] ss:$16 sps:$4 sm:$0xff]  }
 0x1ae   :  { %1362 = vmatmul.mubr.bf16.vlgmr.msra.gmra.mrb[4].mxu0 %v1135_v7  ;;  %v7245_v7 = vld [vmem:[#allocation6 + $0x8] ss:$16 sps:$4 sm:$0xff]  }
 0x1af   :  { %2772 = vmatpush1.bf16.msra.mxu0 %v7245_v7  ;;  %v7215_v7 = vld [vmem:[%s8844_s5 + $0xe8] ss:$16 sps:$4 sm:$0xff]  }
 0x241   :  { %v1118_v15 = vpop.f32.mrb[0].mxu0 }
 0x242   :  { %v6857_v2 = vadd.f32 %v1118_v15, %v314_v12  ;;  %v1120_v17 = vpop.f32.mrb[1].mxu0  ;;  %v7253_v12 = vld [vmem:[#allocation6 + $0x2c] ss:$16 sps:$4 sm:$0xff]  }
 0x243   :  { %v6858_v0 = vadd.f32 %v1120_v17, %v318_v14  ;;  %v1122_v18 = vpop.f32.mrb[2].mxu0  ;;  %v7251_v14 = vld [vmem:[#allocation6 + $0x28] ss:$16 sps:$4 sm:$0xff]   ;;  %2773 = vmatprep.subr.bf16.mxu0 %v7253_v12  ;;  %v7259_v15 = vld [vmem:[#allocation6 + $0x4c] ss:$16 sps:$4 sm:$0xff]  }
 0x244   :  { %v1125_v1 = vmul.f32 0.5, %v6857_v2  ;;  %v1123_v19 = vpop.f32.mrb[3].mxu0  ;;  %2774 = vmatpush1.bf16.msra.mxu0 %v7251_v14  ;;  %v7257_v2 = vld [vmem:[#allocation6 + $0x48] ss:$16 sps:$4 sm:$0xff]   ;;  %v7265_v17 = vld [vmem:[#allocation6 + $0x6c] ss:$16 sps:$4 sm:$0xff]  }
 0x245   :  { %v1126_v20 = vmul.f32 0.5, %v6858_v0  ;;  %2775 = vmatprep.subr.bf16.mxu0 %v7259_v15  ;;  %v7263_v0 = vld [vmem:[#allocation6 + $0x68] ss:$16 sps:$4 sm:$0xff]   ;;  %v7271_v18 = vld [vmem:[#allocation6 + $0x8c] ss:$16 sps:$4 sm:$0xff]  }
 0x246   :  { %8026 = vtanh.f32 %v1125_v1  ;;  %v7277_v19 = vld [vmem:[#allocation6 + $0xac] ss:$16 sps:$4 sm:$0xff]   ;;  %v7218_v12 = vld [vmem:[%s8844_s5 + $0x108] ss:$16 sps:$4 sm:$0xff]  }
 0x247   :  { %8028 = vtanh.f32 %v1126_v20  ;;  %v7223_v14 = vld [vmem:[%s8844_s5 + $0x12c] ss:$16 sps:$4 sm:$0xff]   ;;  %v7221_v15 = vld [vmem:[%s8844_s5 + $0x128] ss:$16 sps:$4 sm:$0xff]  }
 0x248   :  { %2776 = vmatpush1.bf16.msra.mxu0 %v7257_v2  ;;  %v7226_v2 = vld [vmem:[%s8844_s5 + $0x14c] ss:$16 sps:$4 sm:$0xff]  }
 0x249   :  { %2777 = vmatprep.subr.bf16.mxu0 %v7265_v17  ;;  %v7224_v17 = vld [vmem:[%s8844_s5 + $0x148] ss:$16 sps:$4 sm:$0xff]  }
 0x24c   :  { %2778 = vmatpush1.bf16.msra.mxu0 %v7263_v0  ;;  %v7229_v0 = vld [vmem:[%s8844_s5 + $0x16c] ss:$16 sps:$4 sm:$0xff]  }
 0x24d   :  { %2779 = vmatprep.subr.bf16.mxu0 %v7271_v18  ;;  %v7227_v18 = vld [vmem:[%s8844_s5 + $0x168] ss:$16 sps:$4 sm:$0xff]  }
 0x250   :  { %v8027_v21 = vpop.eup %8026 }
 0x251   :  { %v8029_v22 = vpop.eup %8028  ;;  %v1129_v23 = vadd.f32 1.0, %v8027_v21  ;;  %v7283_v21 = vld [vmem:[#allocation6 + $0xcc] ss:$16 sps:$4 sm:$0xff]  }
 0x252   :  { %v1130_v24 = vadd.f32 1.0, %v8029_v22  ;;  %v7281_v22 = vld [vmem:[#allocation6 + $0xc8] ss:$16 sps:$4 sm:$0xff]  }
 0x253   :  { %v8545_v13 = vmul.f32 %v1129_v23, %v1125_v1  ;;  %v7269_v1 = vld [vmem:[#allocation6 + $0x88] ss:$16 sps:$4 sm:$0xff]   ;;  %v7289_v23 = vld [vmem:[#allocation6 + $0xec] ss:$16 sps:$4 sm:$0xff]  }
 0x254   :  { %v8547_v25 = vmul.f32 %v1130_v24, %v1126_v20  ;;  %2780 = vmatpush1.bf16.msra.mxu0 %v7269_v1  ;;  %v7275_v20 = vld [vmem:[#allocation6 + $0xa8] ss:$16 sps:$4 sm:$0xff]   ;;  %v7232_v1 = vld [vmem:[%s8844_s5 + $0x18c] ss:$16 sps:$4 sm:$0xff]  }
 0x255   :  { %2781 = vmatprep.subr.bf16.mxu0 %v7277_v19  ;;  %v7287_v24 = vld [vmem:[#allocation6 + $0xe8] ss:$16 sps:$4 sm:$0xff]  }
 0x256   :  { %v6050_v26 = vcombine.low %v8545_v13, %v8547_v25  ;;  %v7230_v19 = vld [vmem:[%s8844_s5 + $0x188] ss:$16 sps:$4 sm:$0xff]  }
 0x258   :  { %2782 = vmatpush1.bf16.msra.mxu0 %v7275_v20  ;;  %v7235_v20 = vld [vmem:[%s8844_s5 + $0x1ac] ss:$16 sps:$4 sm:$0xff]  }
 0x259   :  { %2783 = vmatprep.subr.bf16.mxu0 %v7283_v21  ;;  %v7233_v21 = vld [vmem:[%s8844_s5 + $0x1a8] ss:$16 sps:$4 sm:$0xff]  }
 0x25c   :  { %2784 = vmatpush1.bf16.msra.mxu0 %v7281_v22  ;;  %v7238_v22 = vld [vmem:[%s8844_s5 + $0x1cc] ss:$16 sps:$4 sm:$0xff]  }
 0x25d   :  { %2785 = vmatprep.subr.bf16.mxu0 %v7289_v23  ;;  %v7236_v23 = vld [vmem:[%s8844_s5 + $0x1c8] ss:$16 sps:$4 sm:$0xff]  }
 0x260   :  { %2786 = vmatpush1.bf16.msra.mxu0 %v7287_v24  ;;  %v7241_v24 = vld [vmem:[%s8844_s5 + $0x1ec] ss:$16 sps:$4 sm:$0xff]  }
 0x281   :  { %v8551_v27 = vpop.f32.mrb[4].mxu0 }
 0x282   :  { %v8555_v28 = vpack.c.bf16 %v8551_v27, %v8551_v27  ;;  %v8557_v29 = vpop.f32.mrb[5].mxu0 }
 0x283   :  { %v8561_v30 = vpack.c.bf16 %v8557_v29, %v8557_v29  ;;  %v1367_v31 = vpop.f32.mrb[6].mxu0 }
 0x284   :  { %v1368_v33 = vpop.f32.mrb[7].mxu0  ;;  %v1397_v34 = vsel %vm1395_vm0, %v8555_v28, 0  ;;  %v7295_v31 = vld [vmem:[#allocation6 + $0x10c] ss:$16 sps:$4 sm:$0xff]  }
 0x285   :  { %6238 = vmatprep.subr.msk.bf16.mxu1 %vm1395_vm0, %v8561_v30  ;;  %2787 = vmatprep.subr.bf16.mxu0 %v7295_v31  ;;  %v7301_v33 = vld [vmem:[#allocation6 + $0x12c] ss:$16 sps:$4 sm:$0xff]   ;;  %v7239_v31 = vld [vmem:[%s8844_s5 + $0x1e8] ss:$16 sps:$4 sm:$0xff]  }
 0x286   :  { %1403 = vmatpush1.bf16.msra.mxu1 %v1397_v34  ;;  %v7299_v34 = vld [vmem:[#allocation6 + $0x128] ss:$16 sps:$4 sm:$0xff]  }
 0x287   :  { %1831 = vmatprep.subr.bf16.mxu1 %v7148_v32  ;;  %v7293_v32 = vld [vmem:[#allocation6 + $0x108] ss:$16 sps:$4 sm:$0xff]  }
 0x288   :  { %2788 = vmatpush1.bf16.msra.mxu0 %v7293_v32  ;;  %v7244_v32 = vld [vmem:[#allocation6 + $0x4] ss:$16 sps:$4 sm:$0xff]  }
 0x289   :  { %6239 = vmatmul.mubr.msk.bf16.vlgmr.msra.gmra.mrb[0].mxu1 %vm1391_vm1, %v7145_v35  ;;  %2789 = vmatprep.subr.bf16.mxu0 %v7301_v33  ;;  %v7307_v35 = vld [vmem:[#allocation6 + $0x14c] ss:$16 sps:$4 sm:$0xff]   ;;  %v7242_v33 = vld [vmem:[#allocation6] ss:$16 sps:$4 sm:$0xff]  }
 0x28a   :  { %1832 = vmatpush1.bf16.msra.mxu1 %v7146_v36  ;;  %v7305_v36 = vld [vmem:[#allocation6 + $0x148] ss:$16 sps:$4 sm:$0xff]  }
 0x28b   :  { %1833 = vmatprep.subr.bf16.mxu1 %v7151_v37  ;;  %v7313_v37 = vld [vmem:[#allocation6 + $0x16c] ss:$16 sps:$4 sm:$0xff]  }
 0x28c   :  { %2790 = vmatpush1.bf16.msra.mxu0 %v7299_v34  ;;  %v7250_v34 = vld [vmem:[#allocation6 + $0x24] ss:$16 sps:$4 sm:$0xff]  }
 0x28d   :  { %2791 = vmatprep.subr.bf16.mxu0 %v7307_v35  ;;  %v7248_v35 = vld [vmem:[#allocation6 + $0x20] ss:$16 sps:$4 sm:$0xff]  }
 0x28e   :  { %1834 = vmatpush1.bf16.msra.mxu1 %v7149_v38  ;;  %v7311_v38 = vld [vmem:[#allocation6 + $0x168] ss:$16 sps:$4 sm:$0xff]  }
 0x28f   :  { %1835 = vmatprep.subr.bf16.mxu1 %v7154_v39  ;;  %v7319_v39 = vld [vmem:[#allocation6 + $0x18c] ss:$16 sps:$4 sm:$0xff]  }
 0x290   :  { %2792 = vmatpush1.bf16.msra.mxu0 %v7305_v36  ;;  %v7256_v36 = vld [vmem:[#allocation6 + $0x44] ss:$16 sps:$4 sm:$0xff]  }
 0x291   :  { %2793 = vmatprep.subr.bf16.mxu0 %v7313_v37  ;;  %v7254_v37 = vld [vmem:[#allocation6 + $0x40] ss:$16 sps:$4 sm:$0xff]  }
 0x292   :  { %1836 = vmatpush1.bf16.msra.mxu1 %v7152_v40  ;;  %v7317_v40 = vld [vmem:[#allocation6 + $0x188] ss:$16 sps:$4 sm:$0xff]  }
 0x293   :  { %1837 = vmatprep.subr.bf16.mxu1 %v7157_v41  ;;  %v7325_v41 = vld [vmem:[#allocation6 + $0x1ac] ss:$16 sps:$4 sm:$0xff]  }
 0x294   :  { %2794 = vmatpush1.bf16.msra.mxu0 %v7311_v38  ;;  %v7262_v38 = vld [vmem:[#allocation6 + $0x64] ss:$16 sps:$4 sm:$0xff]  }
 0x295   :  { %2795 = vmatprep.subr.bf16.mxu0 %v7319_v39  ;;  %v7260_v39 = vld [vmem:[#allocation6 + $0x60] ss:$16 sps:$4 sm:$0xff]  }
 0x296   :  { %1838 = vmatpush1.bf16.msra.mxu1 %v7155_v42  ;;  %v7323_v42 = vld [vmem:[#allocation6 + $0x1a8] ss:$16 sps:$4 sm:$0xff]  }
 0x297   :  { %1839 = vmatprep.subr.bf16.mxu1 %v7160_v43  ;;  %v7331_v43 = vld [vmem:[#allocation6 + $0x1cc] ss:$16 sps:$4 sm:$0xff]  }
 0x298   :  { %2796 = vmatpush1.bf16.msra.mxu0 %v7317_v40  ;;  %v7268_v40 = vld [vmem:[#allocation6 + $0x84] ss:$16 sps:$4 sm:$0xff]  }
 0x299   :  { %2797 = vmatprep.subr.bf16.mxu0 %v7325_v41  ;;  %v7266_v41 = vld [vmem:[#allocation6 + $0x80] ss:$16 sps:$4 sm:$0xff]  }
 0x29a   :  { %1840 = vmatpush1.bf16.msra.mxu1 %v7158_v44 }
 0x29b   :  { %1841 = vmatprep.subr.bf16.mxu1 %v7163_v45 }
 0x29c   :  { %2798 = vmatpush1.bf16.msra.mxu0 %v7323_v42  ;;  %v7274_v42 = vld [vmem:[#allocation6 + $0xa4] ss:$16 sps:$4 sm:$0xff]  }
 0x29d   :  { %2799 = vmatprep.subr.bf16.mxu0 %v7331_v43  ;;  %v7272_v43 = vld [vmem:[#allocation6 + $0xa0] ss:$16 sps:$4 sm:$0xff]  }
 0x29e   :  { %1842 = vmatpush1.bf16.msra.mxu1 %v7161_v46  ;;  %v7329_v46 = vld [vmem:[#allocation6 + $0x1c8] ss:$16 sps:$4 sm:$0xff]  }
 0x29f   :  { %1843 = vmatprep.subr.bf16.mxu1 %v7166_v47  ;;  %v1384_v47 = vpop.permute.xlu0 %1383 }
 0x2a0   :  { %2800 = vmatpush1.bf16.msra.mxu0 %v7329_v46  ;;  %v7280_v46 = vld [vmem:[#allocation6 + $0xc4] ss:$16 sps:$4 sm:$0xff]  }
 0x2a2   :  { %1844 = vmatpush1.bf16.msra.mxu1 %v7164_v48 }
 0x2a3   :  { %1845 = vmatprep.subr.bf16.mxu1 %v7169_v49 }
 0x2a6   :  { %1846 = vmatpush1.bf16.msra.mxu1 %v7167_v50 }
 0x2a7   :  { %1847 = vmatprep.subr.bf16.mxu1 %v7172_v51 }
 0x2aa   :  { %1848 = vmatpush1.bf16.msra.mxu1 %v7170_v52 }
 0x2ab   :  { %1849 = vmatprep.subr.bf16.mxu1 %v7175_v53  ;;  %v7194_v53 = vld [vmem:[%s8844_s5 + $0x8] ss:$16 sps:$4 sm:$0xff]  }
 0x2ae   :  { %1850 = vmatpush1.bf16.msra.mxu1 %v7173_v54 }
 0x2af   :  { %1851 = vmatprep.subr.bf16.mxu1 %v7178_v55  ;;  %v7199_v55 = vld [vmem:[%s8844_s5 + $0x2c] ss:$16 sps:$4 sm:$0xff]  }
 0x2b2   :  { %1852 = vmatpush1.bf16.msra.mxu1 %v7176_v56  ;;  %v7197_v56 = vld [vmem:[%s8844_s5 + $0x28] ss:$16 sps:$4 sm:$0xff]  }
 0x2b3   :  { %1853 = vmatprep.subr.bf16.mxu1 %v7181_v57  ;;  %v7202_v57 = vld [vmem:[%s8844_s5 + $0x4c] ss:$16 sps:$4 sm:$0xff]  }
 0x2b6   :  { %1854 = vmatpush1.bf16.msra.mxu1 %v7179_v58  ;;  %v7200_v58 = vld [vmem:[%s8844_s5 + $0x48] ss:$16 sps:$4 sm:$0xff]  }
 0x2b7   :  { %1855 = vmatprep.subr.bf16.mxu1 %v7184_v59  ;;  %v7205_v59 = vld [vmem:[%s8844_s5 + $0x6c] ss:$16 sps:$4 sm:$0xff]  }
 0x2ba   :  { %1856 = vmatpush1.bf16.msra.mxu1 %v7182_v60  ;;  %v7203_v60 = vld [vmem:[%s8844_s5 + $0x68] ss:$16 sps:$4 sm:$0xff]  }
 0x2bb   :  { %1857 = vmatprep.subr.bf16.mxu1 %v7187_v61  ;;  %v7208_v61 = vld [vmem:[%s8844_s5 + $0x8c] ss:$16 sps:$4 sm:$0xff]  }
 0x2be   :  { %1858 = vmatpush1.bf16.msra.mxu1 %v7185_v62  ;;  %v7206_v62 = vld [vmem:[%s8844_s5 + $0x88] ss:$16 sps:$4 sm:$0xff]  }
 0x2bf   :  { %1859 = vmatprep.subr.bf16.mxu1 %v7190_v63  ;;  %v7211_v63 = vld [vmem:[%s8844_s5 + $0xac] ss:$16 sps:$4 sm:$0xff]  }
 0x2c2   :  { %1860 = vmatpush1.bf16.msra.mxu1 %v7188_v3  ;;  %v7209_v3 = vld [vmem:[%s8844_s5 + $0xa8] ss:$16 sps:$4 sm:$0xff]  }
 0x2c3   :  { %1861 = vmatprep.subr.bf16.mxu1 %v7193_v4  ;;  %v7214_v4 = vld [vmem:[%s8844_s5 + $0xcc] ss:$16 sps:$4 sm:$0xff]  }
 0x2c6   :  { %1862 = vmatpush1.bf16.msra.mxu1 %v7191_v5  ;;  %v7212_v5 = vld [vmem:[%s8844_s5 + $0xc8] ss:$16 sps:$4 sm:$0xff]  }
 0x2c7   :  { %1872 = vmatprep.subr.bf16.mxu1 %v7196_v6  ;;  %v7217_v6 = vld [vmem:[%s8844_s5 + $0xec] ss:$16 sps:$4 sm:$0xff]  }
 0x35c   :  { %v8667_v44 = vpop.f32.mrb[0].mxu1 }
 0x35d   :  { %v8669_v45 = vpop.f32.mrb[1].mxu1 }
 0x35e   :  { %v1440_v48 = vpop.f32.mrb[2].mxu1 }
 0x35f   :  { %v1441_v49 = vadd.f32 %v1440_v48, %v1384_v47  ;;  %v1442_v50 = vpop.f32.mrb[3].mxu1  ;;  %v7278_v48 = vld [vmem:[#allocation6 + $0xc0] ss:$16 sps:$4 sm:$0xff]  }
 0x360   :  { %v1443_v51 = vadd.f32 %v1442_v50, %v1384_v47  ;;  %v7337_v47 = vld [vmem:[#allocation6 + $0x1ec] ss:$16 sps:$4 sm:$0xff]   ;;  %v7286_v50 = vld [vmem:[#allocation6 + $0xe4] ss:$16 sps:$4 sm:$0xff]  }
 0x361   :  { %v8674_v54 = vpack.c.bf16 %v1441_v49, %v1441_v49  ;;  %v7335_v49 = vld [vmem:[#allocation6 + $0x1e8] ss:$16 sps:$4 sm:$0xff]   ;;  %2801 = vmatprep.subr.bf16.mxu0 %v7337_v47  ;;  %v7373_v47 = vld [vmem:[#allocation6 + $0x2ac] ss:$16 sps:$4 sm:$0xff]  }
 0x362   :  { %v1446_v52 = vpack.c.bf16 %v1443_v51, %v1443_v51  ;;  %2802 = vmatpush1.bf16.msra.mxu0 %v7335_v49  ;;  %v7343_v51 = vld [vmem:[#allocation6 + $0x20c] ss:$16 sps:$4 sm:$0xff]   ;;  %v7371_v49 = vld [vmem:[#allocation6 + $0x2a8] ss:$16 sps:$4 sm:$0xff]  }
 0x363   :  { %2812 = vmatprep.subr.bf16.mxu0 %v7343_v51  ;;  %v7379_v51 = vld [vmem:[#allocation6 + $0x2cc] ss:$16 sps:$4 sm:$0xff]  }
 0x364   :  { %1863 = vmatprep.mubr.bf16.mxu1 %v1446_v52 }
 0x365   :  { %1864 = vmatmul.mubr.bf16.vlgmr.msra.gmra.mrb[4].mxu1 %v8674_v54 }
 0x366   :  { %1873 = vmatpush1.bf16.msra.mxu1 %v7194_v53  ;;  %1904 = vmatprep.mubr.bf16.mxu1 %v1446_v52  ;;  %v7284_v52 = vld [vmem:[#allocation6 + $0xe0] ss:$16 sps:$4 sm:$0xff]   ;;  %v7292_v53 = vld [vmem:[#allocation6 + $0x104] ss:$16 sps:$4 sm:$0xff]  }
 0x367   :  { %1874 = vmatprep.subr.bf16.mxu1 %v7199_v55  ;;  %v7298_v55 = vld [vmem:[#allocation6 + $0x124] ss:$16 sps:$4 sm:$0xff]  }
 0x36a   :  { %1875 = vmatpush1.bf16.msra.mxu1 %v7197_v56  ;;  %v7296_v56 = vld [vmem:[#allocation6 + $0x120] ss:$16 sps:$4 sm:$0xff]  }
 0x36b   :  { %1876 = vmatprep.subr.bf16.mxu1 %v7202_v57  ;;  %v7304_v57 = vld [vmem:[#allocation6 + $0x144] ss:$16 sps:$4 sm:$0xff]  }
 0x36e   :  { %1877 = vmatpush1.bf16.msra.mxu1 %v7200_v58  ;;  %v7302_v58 = vld [vmem:[#allocation6 + $0x140] ss:$16 sps:$4 sm:$0xff]  }
 0x36f   :  { %1878 = vmatprep.subr.bf16.mxu1 %v7205_v59  ;;  %v7310_v59 = vld [vmem:[#allocation6 + $0x164] ss:$16 sps:$4 sm:$0xff]  }
 0x372   :  { %1879 = vmatpush1.bf16.msra.mxu1 %v7203_v60  ;;  %v7308_v60 = vld [vmem:[#allocation6 + $0x160] ss:$16 sps:$4 sm:$0xff]  }
 0x373   :  { %1880 = vmatprep.subr.bf16.mxu1 %v7208_v61  ;;  %v7316_v61 = vld [vmem:[#allocation6 + $0x184] ss:$16 sps:$4 sm:$0xff]  }
 0x376   :  { %1881 = vmatpush1.bf16.msra.mxu1 %v7206_v62  ;;  %v7314_v62 = vld [vmem:[#allocation6 + $0x180] ss:$16 sps:$4 sm:$0xff]  }
 0x377   :  { %1882 = vmatprep.subr.bf16.mxu1 %v7211_v63  ;;  %v7322_v63 = vld [vmem:[#allocation6 + $0x1a4] ss:$16 sps:$4 sm:$0xff]  }
 0x37a   :  { %1883 = vmatpush1.bf16.msra.mxu1 %v7209_v3  ;;  %v7320_v3 = vld [vmem:[#allocation6 + $0x1a0] ss:$16 sps:$4 sm:$0xff]  }
 0x37b   :  { %1884 = vmatprep.subr.bf16.mxu1 %v7214_v4  ;;  %v7328_v4 = vld [vmem:[#allocation6 + $0x1c4] ss:$16 sps:$4 sm:$0xff]  }
 0x37e   :  { %1885 = vmatpush1.bf16.msra.mxu1 %v7212_v5  ;;  %v7326_v5 = vld [vmem:[#allocation6 + $0x1c0] ss:$16 sps:$4 sm:$0xff]  }
 0x37f   :  { %1886 = vmatprep.subr.bf16.mxu1 %v7217_v6  ;;  %v7334_v6 = vld [vmem:[#allocation6 + $0x1e4] ss:$16 sps:$4 sm:$0xff]  }
 0x382   :  { %1887 = vmatpush1.bf16.msra.mxu1 %v7215_v7  ;;  %v7332_v7 = vld [vmem:[#allocation6 + $0x1e0] ss:$16 sps:$4 sm:$0xff]  }
 0x383   :  { %1888 = vmatprep.subr.bf16.mxu1 %v7220_v10  ;;  %v7340_v10 = vld [vmem:[#allocation6 + $0x204] ss:$16 sps:$4 sm:$0xff]  }
 0x386   :  { %1889 = vmatpush1.bf16.msra.mxu1 %v7218_v12  ;;  %v1379_v12 = vpop.permute.xlu0 %1378 }
 0x387   :  { %1890 = vmatprep.subr.bf16.mxu1 %v7223_v14  ;;  %v8769_v14 = vadd.f32 %v8667_v44, %v1379_v12  ;;  %v7344_v44 = vld [vmem:[#allocation6 + $0x220] ss:$16 sps:$4 sm:$0xff]  }
 0x38a   :  { %1891 = vmatpush1.bf16.msra.mxu1 %v7221_v15  ;;  %v8772_v15 = vadd.f32 %v8669_v45, %v1379_v12  ;;  %v7347_v45 = vld [vmem:[#allocation6 + $0x228] ss:$16 sps:$4 sm:$0xff]   ;;  %v7406_v12 = vld [vmem:[#allocation6 + $0x364] ss:$16 sps:$4 sm:$0xff]  }
 0x38b   :  { %1892 = vmatprep.subr.bf16.mxu1 %v7226_v2 }
 0x38e   :  { %1893 = vmatpush1.bf16.msra.mxu1 %v7224_v17 }
 0x38f   :  { %1894 = vmatprep.subr.bf16.mxu1 %v7229_v0 }
 0x392   :  { %1895 = vmatpush1.bf16.msra.mxu1 %v7227_v18 }
 0x393   :  { %1896 = vmatprep.subr.bf16.mxu1 %v7232_v1 }
 0x396   :  { %1897 = vmatpush1.bf16.msra.mxu1 %v7230_v19 }
 0x397   :  { %1898 = vmatprep.subr.bf16.mxu1 %v7235_v20 }
 0x39a   :  { %1899 = vmatpush1.bf16.msra.mxu1 %v7233_v21  ;;  %v7338_v21 = vld [vmem:[#allocation6 + $0x200] ss:$16 sps:$4 sm:$0xff]  }
 0x39b   :  { %1900 = vmatprep.subr.bf16.mxu1 %v7238_v22  ;;  %v7341_v22 = vld [vmem:[#allocation6 + $0x208] ss:$16 sps:$4 sm:$0xff]  }
 0x39e   :  { %1901 = vmatpush1.bf16.msra.mxu1 %v7236_v23 }
 0x39f   :  { %1902 = vmatprep.subr.bf16.mxu1 %v7241_v24  ;;  %v7346_v24 = vld [vmem:[#allocation6 + $0x224] ss:$16 sps:$4 sm:$0xff]  }
 0x3a2   :  { %1903 = vmatpush1.bf16.msra.mxu1 %v7239_v31  ;;  %v7349_v31 = vld [vmem:[#allocation6 + $0x22c] ss:$16 sps:$4 sm:$0xff]  }
 0x3a3   :  { %2689 = vmatprep.subr.bf16.mxu1 %v7244_v32  ;;  %v7352_v32 = vld [vmem:[#allocation6 + $0x244] ss:$16 sps:$4 sm:$0xff]  }
 0x3a5   :  { %1905 = vmatmul.mubr.bf16.vlgmr.msra.gmra.mrb[8].mxu1 %v8674_v54  ;;  %v7290_v54 = vld [vmem:[#allocation6 + $0x100] ss:$16 sps:$4 sm:$0xff]  }
 0x3a6   :  { %2690 = vmatpush1.bf16.msra.mxu1 %v7242_v33  ;;  %v7355_v33 = vld [vmem:[#allocation6 + $0x24c] ss:$16 sps:$4 sm:$0xff]  }
 0x3a7   :  { %2691 = vmatprep.subr.bf16.mxu1 %v7250_v34  ;;  %v7350_v34 = vld [vmem:[#allocation6 + $0x240] ss:$16 sps:$4 sm:$0xff]  }
 0x3aa   :  { %2692 = vmatpush1.bf16.msra.mxu1 %v7248_v35  ;;  %v7353_v35 = vld [vmem:[#allocation6 + $0x248] ss:$16 sps:$4 sm:$0xff]  }
 0x3ab   :  { %2693 = vmatprep.subr.bf16.mxu1 %v7256_v36  ;;  %v7358_v36 = vld [vmem:[#allocation6 + $0x264] ss:$16 sps:$4 sm:$0xff]  }
 0x3ae   :  { %2694 = vmatpush1.bf16.msra.mxu1 %v7254_v37  ;;  %v7361_v37 = vld [vmem:[#allocation6 + $0x26c] ss:$16 sps:$4 sm:$0xff]  }
 0x3af   :  { %2695 = vmatprep.subr.bf16.mxu1 %v7262_v38  ;;  %v7356_v38 = vld [vmem:[#allocation6 + $0x260] ss:$16 sps:$4 sm:$0xff]  }
 0x3b2   :  { %2696 = vmatpush1.bf16.msra.mxu1 %v7260_v39  ;;  %v7359_v39 = vld [vmem:[#allocation6 + $0x268] ss:$16 sps:$4 sm:$0xff]  }
 0x3b3   :  { %2697 = vmatprep.subr.bf16.mxu1 %v7268_v40  ;;  %v7364_v40 = vld [vmem:[#allocation6 + $0x284] ss:$16 sps:$4 sm:$0xff]  }
 0x3b6   :  { %2698 = vmatpush1.bf16.msra.mxu1 %v7266_v41  ;;  %v7367_v41 = vld [vmem:[#allocation6 + $0x28c] ss:$16 sps:$4 sm:$0xff]  }
 0x3b7   :  { %2699 = vmatprep.subr.bf16.mxu1 %v7274_v42  ;;  %v7362_v42 = vld [vmem:[#allocation6 + $0x280] ss:$16 sps:$4 sm:$0xff]  }
 0x3ba   :  { %2700 = vmatpush1.bf16.msra.mxu1 %v7272_v43  ;;  %v7365_v43 = vld [vmem:[#allocation6 + $0x288] ss:$16 sps:$4 sm:$0xff]  }
 0x3bb   :  { %2701 = vmatprep.subr.bf16.mxu1 %v7280_v46  ;;  %v7370_v46 = vld [vmem:[#allocation6 + $0x2a4] ss:$16 sps:$4 sm:$0xff]  }
 0x3be   :  { %2702 = vmatpush1.bf16.msra.mxu1 %v7278_v48  ;;  %v7368_v48 = vld [vmem:[#allocation6 + $0x2a0] ss:$16 sps:$4 sm:$0xff]  }
 0x3bf   :  { %2703 = vmatprep.subr.bf16.mxu1 %v7286_v50  ;;  %v7376_v50 = vld [vmem:[#allocation6 + $0x2c4] ss:$16 sps:$4 sm:$0xff]  }
 0x3c2   :  { %2704 = vmatpush1.bf16.msra.mxu1 %v7284_v52  ;;  %v7374_v52 = vld [vmem:[#allocation6 + $0x2c0] ss:$16 sps:$4 sm:$0xff]  }
 0x3c3   :  { %2705 = vmatprep.subr.bf16.mxu1 %v7292_v53  ;;  %v7377_v53 = vld [vmem:[#allocation6 + $0x2c8] ss:$16 sps:$4 sm:$0xff]  }
 0x3c6   :  { %2706 = vmatpush1.bf16.msra.mxu1 %v7290_v54  ;;  %v7382_v54 = vld [vmem:[#allocation6 + $0x2e4] ss:$16 sps:$4 sm:$0xff]  }
 0x3c7   :  { %2707 = vmatprep.subr.bf16.mxu1 %v7298_v55  ;;  %v7385_v55 = vld [vmem:[#allocation6 + $0x2ec] ss:$16 sps:$4 sm:$0xff]  }
 0x3ca   :  { %2708 = vmatpush1.bf16.msra.mxu1 %v7296_v56  ;;  %v7380_v56 = vld [vmem:[#allocation6 + $0x2e0] ss:$16 sps:$4 sm:$0xff]  }
 0x3cb   :  { %2709 = vmatprep.subr.bf16.mxu1 %v7304_v57  ;;  %v7383_v57 = vld [vmem:[#allocation6 + $0x2e8] ss:$16 sps:$4 sm:$0xff]  }
 0x3ce   :  { %2710 = vmatpush1.bf16.msra.mxu1 %v7302_v58  ;;  %v7388_v58 = vld [vmem:[#allocation6 + $0x304] ss:$16 sps:$4 sm:$0xff]  }
 0x3cf   :  { %2711 = vmatprep.subr.bf16.mxu1 %v7310_v59  ;;  %v7391_v59 = vld [vmem:[#allocation6 + $0x30c] ss:$16 sps:$4 sm:$0xff]  }
 0x3d2   :  { %2712 = vmatpush1.bf16.msra.mxu1 %v7308_v60  ;;  %v7386_v60 = vld [vmem:[#allocation6 + $0x300] ss:$16 sps:$4 sm:$0xff]  }
 0x3d3   :  { %2713 = vmatprep.subr.bf16.mxu1 %v7316_v61  ;;  %v7389_v61 = vld [vmem:[#allocation6 + $0x308] ss:$16 sps:$4 sm:$0xff]  }
 0x3d6   :  { %2714 = vmatpush1.bf16.msra.mxu1 %v7314_v62  ;;  %v7394_v62 = vld [vmem:[#allocation6 + $0x324] ss:$16 sps:$4 sm:$0xff]  }
 0x3d7   :  { %2715 = vmatprep.subr.bf16.mxu1 %v7322_v63  ;;  %v7397_v63 = vld [vmem:[#allocation6 + $0x32c] ss:$16 sps:$4 sm:$0xff]  }
 0x3da   :  { %2716 = vmatpush1.bf16.msra.mxu1 %v7320_v3  ;;  %v7392_v3 = vld [vmem:[#allocation6 + $0x320] ss:$16 sps:$4 sm:$0xff]  }
 0x3db   :  { %2717 = vmatprep.subr.bf16.mxu1 %v7328_v4  ;;  %v7395_v4 = vld [vmem:[#allocation6 + $0x328] ss:$16 sps:$4 sm:$0xff]  }
 0x3de   :  { %2718 = vmatpush1.bf16.msra.mxu1 %v7326_v5  ;;  %v7400_v5 = vld [vmem:[#allocation6 + $0x344] ss:$16 sps:$4 sm:$0xff]  }
 0x3df   :  { %2719 = vmatprep.subr.bf16.mxu1 %v7334_v6  ;;  %v7403_v6 = vld [vmem:[#allocation6 + $0x34c] ss:$16 sps:$4 sm:$0xff]  }
 0x3e2   :  { %2720 = vmatpush1.bf16.msra.mxu1 %v7332_v7  ;;  %v7398_v7 = vld [vmem:[#allocation6 + $0x340] ss:$16 sps:$4 sm:$0xff]  }
 0x3e3   :  { %2730 = vmatprep.subr.bf16.mxu1 %v7340_v10  ;;  %v7401_v10 = vld [vmem:[#allocation6 + $0x348] ss:$16 sps:$4 sm:$0xff]  }
 0x438   :  { %v1865_v2 = vpop.f32.mrb[4].mxu1 }
 0x439   :  { %v1913_v17 = vmul.f32 %v1865_v2, %v8769_v14  ;;  %v1867_v0 = vpop.f32.mrb[5].mxu1  ;;  %v7409_v2 = vld [vmem:[#allocation6 + $0x36c] ss:$16 sps:$4 sm:$0xff]  }
 0x43a   :  { %v1914_v18 = vmul.f32 %v1867_v0, %v8772_v15  ;;  %v1869_v1 = vpop.f32.mrb[6].mxu1  ;;  %v7407_v0 = vld [vmem:[#allocation6 + $0x368] ss:$16 sps:$4 sm:$0xff]  }
 0x43b   :  { %v1870_v19 = vpop.f32.mrb[7].mxu1  ;;  %v1917_v23 = vpack.c.bf16 %v1913_v17, %v1913_v17  ;;  %v7404_v17 = vld [vmem:[#allocation6 + $0x360] ss:$16 sps:$4 sm:$0xff]   ;;  %v7415_v1 = vld [vmem:[#allocation6 + $0x38c] ss:$16 sps:$4 sm:$0xff]  }
 0x43c   :  { %v1918_v20 = vpack.c.bf16 %v1914_v18, %v1914_v18  ;;  %v7412_v18 = vld [vmem:[#allocation6 + $0x384] ss:$16 sps:$4 sm:$0xff]   ;;  %v7410_v19 = vld [vmem:[#allocation6 + $0x380] ss:$16 sps:$4 sm:$0xff]  }
 0x43e   :  { %2721 = vmatprep.mubr.bf16.mxu1 %v1918_v20  ;;  %2803 = vmatprep.mubr.bf16.mxu0 %v1918_v20  ;;  %v7413_v20 = vld [vmem:[#allocation6 + $0x388] ss:$16 sps:$4 sm:$0xff]  }
 0x43f   :  { %2722 = vmatmul.mubr.bf16.vlgmr.msra.gmra.mrb[12].mxu1 %v1917_v23  ;;  %2804 = vmatmul.mubr.bf16.vlgmr.msra.gmra.mrb[8].mxu0 %v1917_v23  ;;  %v7416_v23 = vld [vmem:[#allocation6 + $0x3a0] ss:$16 sps:$4 sm:$0xff]  }
 0x440   :  { %2731 = vmatpush1.bf16.msra.mxu1 %v7338_v21  ;;  %2813 = vmatpush1.bf16.msra.mxu0 %v7341_v22  ;;  %v7418_v21 = vld [vmem:[#allocation6 + $0x3a4] ss:$16 sps:$4 sm:$0xff]   ;;  %v7421_v22 = vld [vmem:[#allocation6 + $0x3ac] ss:$16 sps:$4 sm:$0xff]  }
 0x441   :  { %2732 = vmatprep.subr.bf16.mxu1 %v7346_v24  ;;  %2814 = vmatprep.subr.bf16.mxu0 %v7349_v31  ;;  %v7419_v24 = vld [vmem:[#allocation6 + $0x3a8] ss:$16 sps:$4 sm:$0xff]   ;;  %v7424_v31 = vld [vmem:[#allocation6 + $0x3c4] ss:$16 sps:$4 sm:$0xff]  }
 0x444   :  { %2733 = vmatpush1.bf16.msra.mxu1 %v7344_v44  ;;  %2815 = vmatpush1.bf16.msra.mxu0 %v7347_v45  ;;  %v7427_v44 = vld [vmem:[#allocation6 + $0x3cc] ss:$16 sps:$4 sm:$0xff]   ;;  %v7422_v45 = vld [vmem:[#allocation6 + $0x3c0] ss:$16 sps:$4 sm:$0xff]  }
 0x445   :  { %2734 = vmatprep.subr.bf16.mxu1 %v7352_v32  ;;  %2816 = vmatprep.subr.bf16.mxu0 %v7355_v33  ;;  %v7425_v32 = vld [vmem:[#allocation6 + $0x3c8] ss:$16 sps:$4 sm:$0xff]   ;;  %v7430_v33 = vld [vmem:[#allocation6 + $0x3e4] ss:$16 sps:$4 sm:$0xff]  }
 0x448   :  { %2735 = vmatpush1.bf16.msra.mxu1 %v7350_v34  ;;  %2817 = vmatpush1.bf16.msra.mxu0 %v7353_v35  ;;  %v7433_v34 = vld [vmem:[#allocation6 + $0x3ec] ss:$16 sps:$4 sm:$0xff]  }
 0x449   :  { %2736 = vmatprep.subr.bf16.mxu1 %v7358_v36  ;;  %2818 = vmatprep.subr.bf16.mxu0 %v7361_v37  ;;  %v7428_v36 = vld [vmem:[#allocation6 + $0x3e0] ss:$16 sps:$4 sm:$0xff]   ;;  %v7431_v37 = vld [vmem:[#allocation6 + $0x3e8] ss:$16 sps:$4 sm:$0xff]  }
 0x44c   :  { %2737 = vmatpush1.bf16.msra.mxu1 %v7356_v38  ;;  %2819 = vmatpush1.bf16.msra.mxu0 %v7359_v39 }
 0x44d   :  { %2738 = vmatprep.subr.bf16.mxu1 %v7364_v40  ;;  %2820 = vmatprep.subr.bf16.mxu0 %v7367_v41  ;;  %v7436_v40 = vld [vmem:[#allocation4 + $0x4] ss:$8 sps:$4 sm:$0xff]  }
 0x44e   :  { %v7439_v41 = vld [vmem:[#allocation4 + $0x104] ss:$8 sps:$4 sm:$0xff]  }
 0x450   :  { %2739 = vmatpush1.bf16.msra.mxu1 %v7362_v42  ;;  %2821 = vmatpush1.bf16.msra.mxu0 %v7365_v43 }
 0x451   :  { %2740 = vmatprep.subr.bf16.mxu1 %v7370_v46  ;;  %2822 = vmatprep.subr.bf16.mxu0 %v7373_v47 }
 0x454   :  { %2741 = vmatpush1.bf16.msra.mxu1 %v7368_v48  ;;  %2823 = vmatpush1.bf16.msra.mxu0 %v7371_v49  ;;  %v7434_v48 = vld [vmem:[#allocation4] ss:$8 sps:$4 sm:$0xff]  }
 0x455   :  { %2742 = vmatprep.subr.bf16.mxu1 %v7376_v50  ;;  %2824 = vmatprep.subr.bf16.mxu0 %v7379_v51  ;;  %v7437_v49 = vld [vmem:[#allocation4 + $0x100] ss:$8 sps:$4 sm:$0xff]   ;;  %v7442_v51 = vld [vmem:[#allocation4 + $0x14] ss:$8 sps:$4 sm:$0xff]  }
 0x458   :  { %2743 = vmatpush1.bf16.msra.mxu1 %v7374_v52  ;;  %2825 = vmatpush1.bf16.msra.mxu0 %v7377_v53  ;;  %v7445_v52 = vld [vmem:[#allocation4 + $0x114] ss:$8 sps:$4 sm:$0xff]   ;;  %v7448_v53 = vld [vmem:[#allocation4 + $0x24] ss:$8 sps:$4 sm:$0xff]  }
 0x459   :  { %2744 = vmatprep.subr.bf16.mxu1 %v7382_v54  ;;  %2826 = vmatprep.subr.bf16.mxu0 %v7385_v55  ;;  %v7451_v54 = vld [vmem:[#allocation4 + $0x124] ss:$8 sps:$4 sm:$0xff]   ;;  %v7446_v55 = vld [vmem:[#allocation4 + $0x20] ss:$8 sps:$4 sm:$0xff]  }
 0x45c   :  { %2745 = vmatpush1.bf16.msra.mxu1 %v7380_v56  ;;  %2827 = vmatpush1.bf16.msra.mxu0 %v7383_v57  ;;  %v7449_v56 = vld [vmem:[#allocation4 + $0x120] ss:$8 sps:$4 sm:$0xff]   ;;  %v7454_v57 = vld [vmem:[#allocation4 + $0x34] ss:$8 sps:$4 sm:$0xff]  }
 0x45d   :  { %2746 = vmatprep.subr.bf16.mxu1 %v7388_v58  ;;  %2828 = vmatprep.subr.bf16.mxu0 %v7391_v59  ;;  %v7457_v58 = vld [vmem:[#allocation4 + $0x134] ss:$8 sps:$4 sm:$0xff]   ;;  %v7452_v59 = vld [vmem:[#allocation4 + $0x30] ss:$8 sps:$4 sm:$0xff]  }
 0x460   :  { %2747 = vmatpush1.bf16.msra.mxu1 %v7386_v60  ;;  %2829 = vmatpush1.bf16.msra.mxu0 %v7389_v61  ;;  %v7455_v60 = vld [vmem:[#allocation4 + $0x130] ss:$8 sps:$4 sm:$0xff]   ;;  %v7460_v61 = vld [vmem:[#allocation4 + $0x44] ss:$8 sps:$4 sm:$0xff]  }
 0x461   :  { %2748 = vmatprep.subr.bf16.mxu1 %v7394_v62  ;;  %2830 = vmatprep.subr.bf16.mxu0 %v7397_v63  ;;  %v7463_v62 = vld [vmem:[#allocation4 + $0x144] ss:$8 sps:$4 sm:$0xff]   ;;  %v7458_v63 = vld [vmem:[#allocation4 + $0x40] ss:$8 sps:$4 sm:$0xff]  }
 0x464   :  { %2749 = vmatpush1.bf16.msra.mxu1 %v7392_v3  ;;  %2831 = vmatpush1.bf16.msra.mxu0 %v7395_v4  ;;  %v7461_v3 = vld [vmem:[#allocation4 + $0x140] ss:$8 sps:$4 sm:$0xff]   ;;  %v7466_v4 = vld [vmem:[#allocation4 + $0x54] ss:$8 sps:$4 sm:$0xff]  }
 0x465   :  { %2750 = vmatprep.subr.bf16.mxu1 %v7400_v5  ;;  %2832 = vmatprep.subr.bf16.mxu0 %v7403_v6  ;;  %v7469_v5 = vld [vmem:[#allocation4 + $0x154] ss:$8 sps:$4 sm:$0xff]   ;;  %v7464_v6 = vld [vmem:[#allocation4 + $0x50] ss:$8 sps:$4 sm:$0xff]  }
 0x468   :  { %2751 = vmatpush1.bf16.msra.mxu1 %v7398_v7  ;;  %2833 = vmatpush1.bf16.msra.mxu0 %v7401_v10  ;;  %v7467_v7 = vld [vmem:[#allocation4 + $0x150] ss:$8 sps:$4 sm:$0xff]   ;;  %v7472_v10 = vld [vmem:[#allocation4 + $0x64] ss:$8 sps:$4 sm:$0xff]  }
 0x469   :  { %2752 = vmatprep.subr.bf16.mxu1 %v7406_v12  ;;  %2834 = vmatprep.subr.bf16.mxu0 %v7409_v2  ;;  %v7475_v12 = vld [vmem:[#allocation4 + $0x164] ss:$8 sps:$4 sm:$0xff]   ;;  %v7470_v2 = vld [vmem:[#allocation4 + $0x60] ss:$8 sps:$4 sm:$0xff]  }
 0x46c   :  { %2753 = vmatpush1.bf16.msra.mxu1 %v7404_v17  ;;  %2835 = vmatpush1.bf16.msra.mxu0 %v7407_v0  ;;  %v7473_v17 = vld [vmem:[#allocation4 + $0x160] ss:$8 sps:$4 sm:$0xff]   ;;  %v7478_v0 = vld [vmem:[#allocation4 + $0x74] ss:$8 sps:$4 sm:$0xff]  }
 0x46d   :  { %2754 = vmatprep.subr.bf16.mxu1 %v7412_v18  ;;  %2836 = vmatprep.subr.bf16.mxu0 %v7415_v1  ;;  %v7481_v18 = vld [vmem:[#allocation4 + $0x174] ss:$8 sps:$4 sm:$0xff]   ;;  %v7476_v1 = vld [vmem:[#allocation4 + $0x70] ss:$8 sps:$4 sm:$0xff]  }
 0x470   :  { %2755 = vmatpush1.bf16.msra.mxu1 %v7410_v19  ;;  %2837 = vmatpush1.bf16.msra.mxu0 %v7413_v20  ;;  %v7479_v19 = vld [vmem:[#allocation4 + $0x170] ss:$8 sps:$4 sm:$0xff]   ;;  %v7484_v20 = vld [vmem:[#allocation4 + $0x84] ss:$8 sps:$4 sm:$0xff]  }
 0x471   :  { %2756 = vmatprep.subr.bf16.mxu1 %v7418_v21  ;;  %2838 = vmatprep.subr.bf16.mxu0 %v7421_v22  ;;  %v7487_v21 = vld [vmem:[#allocation4 + $0x184] ss:$8 sps:$4 sm:$0xff]   ;;  %v7482_v22 = vld [vmem:[#allocation4 + $0x80] ss:$8 sps:$4 sm:$0xff]  }
 0x474   :  { %2757 = vmatpush1.bf16.msra.mxu1 %v7416_v23  ;;  %2839 = vmatpush1.bf16.msra.mxu0 %v7419_v24  ;;  %v7485_v23 = vld [vmem:[#allocation4 + $0x180] ss:$8 sps:$4 sm:$0xff]   ;;  %v7490_v24 = vld [vmem:[#allocation4 + $0x94] ss:$8 sps:$4 sm:$0xff]  }
 0x475   :  { %2758 = vmatprep.subr.bf16.mxu1 %v7424_v31  ;;  %2840 = vmatprep.subr.bf16.mxu0 %v7427_v44  ;;  %v7488_v31 = vld [vmem:[#allocation4 + $0x90] ss:$8 sps:$4 sm:$0xff]   ;;  %v7493_v44 = vld [vmem:[#allocation4 + $0x194] ss:$8 sps:$4 sm:$0xff]  }
 0x478   :  { %v1906_v35 = vpop.f32.mrb[8].mxu1  ;;  %2759 = vmatpush1.bf16.msra.mxu1 %v7422_v45  ;;  %2841 = vmatpush1.bf16.msra.mxu0 %v7425_v32  ;;  %v7491_v45 = vld [vmem:[#allocation4 + $0x190] ss:$8 sps:$4 sm:$0xff]   ;;  %v7496_v32 = vld [vmem:[#allocation4 + $0xa4] ss:$8 sps:$4 sm:$0xff]  }
 0x479   :  { %v1915_v38 = vmul.f32 %v1906_v35, %v8769_v14  ;;  %v1908_v39 = vpop.f32.mrb[9].mxu1  ;;  %2760 = vmatprep.subr.bf16.mxu1 %v7430_v33  ;;  %2842 = vmatprep.subr.bf16.mxu0 %v7433_v34  ;;  %v7440_v14 = vld [vmem:[#allocation4 + $0x10] ss:$8 sps:$4 sm:$0xff]   ;;  %v7494_v33 = vld [vmem:[#allocation4 + $0xa0] ss:$8 sps:$4 sm:$0xff]  }
 0x47a   :  { %v1916_v42 = vmul.f32 %v1908_v39, %v8772_v15  ;;  %v1910_v43 = vpop.f32.mrb[10].mxu1  ;;  %v7443_v15 = vld [vmem:[#allocation4 + $0x110] ss:$8 sps:$4 sm:$0xff]   ;;  %v7499_v34 = vld [vmem:[#allocation4 + $0x1a4] ss:$8 sps:$4 sm:$0xff]  }
 0x47b   :  { %v1911_v46 = vpop.f32.mrb[11].mxu1  ;;  %v1919_v50 = vpack.c.bf16 %v1915_v38, %v1915_v38  ;;  %v7497_v35 = vld [vmem:[#allocation4 + $0x1a0] ss:$8 sps:$4 sm:$0xff]   ;;  %v7503_v38 = vld [vmem:[#allocation4 + $0x1b0] ss:$8 sps:$4 sm:$0xff]  }
 0x47c   :  { %v1920_v47 = vpack.c.bf16 %v1916_v42, %v1916_v42  ;;  %2761 = vmatpush1.bf16.msra.mxu1 %v7428_v36  ;;  %2843 = vmatpush1.bf16.msra.mxu0 %v7431_v37  ;;  %v7502_v36 = vld [vmem:[#allocation4 + $0xb4] ss:$8 sps:$4 sm:$0xff]   ;;  %v7500_v37 = vld [vmem:[#allocation4 + $0xb0] ss:$8 sps:$4 sm:$0xff]   ;;  %v7511_v42 = vld [vmem:[#allocation4 + $0x1c4] ss:$8 sps:$4 sm:$0xff]  }
 0x47d   :  { %3322 = vmatprep.subr.bf16.mxu0 %v7436_v40  ;;  %3121 = vmatprep.subr.bf16.mxu1 %v7439_v41  ;;  %v7505_v39 = vld [vmem:[#allocation4 + $0x1b4] ss:$8 sps:$4 sm:$0xff]   ;;  %v7508_v40 = vld [vmem:[#allocation4 + $0xc4] ss:$8 sps:$4 sm:$0xff]   ;;  %v7506_v41 = vld [vmem:[#allocation4 + $0xc0] ss:$8 sps:$4 sm:$0xff]  }
 0x47e   :  { %2762 = vmatprep.mubr.bf16.mxu1 %v1920_v47  ;;  %2844 = vmatprep.mubr.bf16.mxu0 %v1920_v47  ;;  %v7514_v43 = vld [vmem:[#allocation4 + $0xd4] ss:$8 sps:$4 sm:$0xff]   ;;  %v7509_v46 = vld [vmem:[#allocation4 + $0x1c0] ss:$8 sps:$4 sm:$0xff]  }
 0x47f   :  { %2763 = vmatmul.mubr.bf16.vlgmr.msra.gmra.mrb[12].mxu1 %v1919_v50  ;;  %2845 = vmatmul.mubr.bf16.vlgmr.msra.gmra.mrb[8].mxu0 %v1919_v50  ;;  %v7517_v47 = vld [vmem:[#allocation4 + $0x1d4] ss:$8 sps:$4 sm:$0xff]   ;;  %v7515_v50 = vld [vmem:[#allocation4 + $0x1d0] ss:$8 sps:$4 sm:$0xff]  }
 0x480   :  { %3323 = vmatpush1.bf16.msra.mxu0 %v7434_v48  ;;  %3122 = vmatpush1.bf16.msra.mxu1 %v7437_v49  ;;  %v7512_v48 = vld [vmem:[#allocation4 + $0xd0] ss:$8 sps:$4 sm:$0xff]   ;;  %v7520_v49 = vld [vmem:[#allocation4 + $0xe4] ss:$8 sps:$4 sm:$0xff]  }
 0x481   :  { %3324 = vmatprep.subr.bf16.mxu0 %v7442_v51  ;;  %3123 = vmatprep.subr.bf16.mxu1 %v7445_v52  ;;  %v7523_v51 = vld [vmem:[#allocation4 + $0x1e4] ss:$8 sps:$4 sm:$0xff]   ;;  %v7518_v52 = vld [vmem:[#allocation4 + $0xe0] ss:$8 sps:$4 sm:$0xff]  }
 0x484   :  { %3325 = vmatpush1.bf16.msra.mxu0 %v7440_v14  ;;  %3124 = vmatpush1.bf16.msra.mxu1 %v7443_v15  ;;  %v7526_v14 = vld [vmem:[#allocation4 + $0xf4] ss:$8 sps:$4 sm:$0xff]   ;;  %v7521_v15 = vld [vmem:[#allocation4 + $0x1e0] ss:$8 sps:$4 sm:$0xff]  }
 0x485   :  { %3326 = vmatprep.subr.bf16.mxu0 %v7448_v53  ;;  %3125 = vmatprep.subr.bf16.mxu1 %v7451_v54  ;;  %v7529_v53 = vld [vmem:[#allocation4 + $0x1f4] ss:$8 sps:$4 sm:$0xff]   ;;  %v7524_v54 = vld [vmem:[#allocation4 + $0xf0] ss:$8 sps:$4 sm:$0xff]  }
 0x488   :  { %3327 = vmatpush1.bf16.msra.mxu0 %v7446_v55  ;;  %3126 = vmatpush1.bf16.msra.mxu1 %v7449_v56  ;;  %v7527_v55 = vld [vmem:[#allocation4 + $0x1f0] ss:$8 sps:$4 sm:$0xff]   ;;  %v7532_v56 = vld [vmem:[#allocation4 + $0x304] ss:$8 sps:$4 sm:$0xff]  }
 0x489   :  { %3328 = vmatprep.subr.bf16.mxu0 %v7454_v57  ;;  %3127 = vmatprep.subr.bf16.mxu1 %v7457_v58  ;;  %v7535_v57 = vld [vmem:[#allocation4 + $0x204] ss:$8 sps:$4 sm:$0xff]  }
 0x48c   :  { %3329 = vmatpush1.bf16.msra.mxu0 %v7452_v59  ;;  %3128 = vmatpush1.bf16.msra.mxu1 %v7455_v60 }
 0x48d   :  { %3330 = vmatprep.subr.bf16.mxu0 %v7460_v61  ;;  %3129 = vmatprep.subr.bf16.mxu1 %v7463_v62 }
 0x490   :  { %3331 = vmatpush1.bf16.msra.mxu0 %v7458_v63  ;;  %3130 = vmatpush1.bf16.msra.mxu1 %v7461_v3 }
 0x491   :  { %3332 = vmatprep.subr.bf16.mxu0 %v7466_v4  ;;  %3131 = vmatprep.subr.bf16.mxu1 %v7469_v5 }
 0x494   :  { %3333 = vmatpush1.bf16.msra.mxu0 %v7464_v6  ;;  %3132 = vmatpush1.bf16.msra.mxu1 %v7467_v7 }
 0x495   :  { %3334 = vmatprep.subr.bf16.mxu0 %v7472_v10  ;;  %3133 = vmatprep.subr.bf16.mxu1 %v7475_v12 }
 0x498   :  { %3335 = vmatpush1.bf16.msra.mxu0 %v7470_v2  ;;  %3134 = vmatpush1.bf16.msra.mxu1 %v7473_v17  ;;  %v2877_v17 = vpop.permute.xlu1 %2876 }
 0x499   :  { %3336 = vmatprep.subr.bf16.mxu0 %v7478_v0  ;;  %3135 = vmatprep.subr.bf16.mxu1 %v7481_v18 }
 0x49c   :  { %3337 = vmatpush1.bf16.msra.mxu0 %v7476_v1  ;;  %3136 = vmatpush1.bf16.msra.mxu1 %v7479_v19  ;;  %v2883_v19 = vpop.permute.xlu1 %2882 }
 0x49d   :  { %3338 = vmatprep.subr.bf16.mxu0 %v7484_v20  ;;  %3137 = vmatprep.subr.bf16.mxu1 %v7487_v21 }
 0x4a0   :  { %3339 = vmatpush1.bf16.msra.mxu0 %v7482_v22  ;;  %3138 = vmatpush1.bf16.msra.mxu1 %v7485_v23 }
 0x4a1   :  { %3340 = vmatprep.subr.bf16.mxu0 %v7490_v24  ;;  %3139 = vmatprep.subr.bf16.mxu1 %v7493_v44  ;;  %v2885_v44 = vmul.f32 %v2883_v19, %v8551_v27  ;;  %v7538_v27 = vld [vmem:[#allocation4 + $0x314] ss:$8 sps:$4 sm:$0xff]  }
 0x4a4   :  { %3341 = vmatpush1.bf16.msra.mxu0 %v7488_v31  ;;  %3140 = vmatpush1.bf16.msra.mxu1 %v7491_v45 }
 0x4a5   :  { %3342 = vmatprep.subr.bf16.mxu0 %v7496_v32  ;;  %3141 = vmatprep.subr.bf16.mxu1 %v7499_v34 }
 0x4a8   :  { %3343 = vmatpush1.bf16.msra.mxu0 %v7494_v33  ;;  %3142 = vmatpush1.bf16.msra.mxu1 %v7497_v35  ;;  %v2886_v33 = vmul.f32 %v2883_v19, %v8557_v29  ;;  %v7589_v19 = vld [vmem:[#allocation4 + $0x294] ss:$8 sps:$4 sm:$0xff]  }
 0x4a9   :  { %3344 = vmatprep.subr.bf16.mxu0 %v7502_v36  ;;  %3143 = vmatprep.subr.bf16.mxu1 %v7505_v39  ;;  %v7530_v39 = vld [vmem:[#allocation4 + $0x300] ss:$8 sps:$4 sm:$0xff]  }
 0x4ac   :  { %3345 = vmatpush1.bf16.msra.mxu0 %v7500_v37  ;;  %3144 = vmatpush1.bf16.msra.mxu1 %v7503_v38 }
 0x4ad   :  { %3346 = vmatprep.subr.bf16.mxu0 %v7508_v40  ;;  %3145 = vmatprep.subr.bf16.mxu1 %v7511_v42 }
 0x4b0   :  { %3347 = vmatpush1.bf16.msra.mxu0 %v7506_v41  ;;  %3146 = vmatpush1.bf16.msra.mxu1 %v7509_v46  ;;  %v7533_v41 = vld [vmem:[#allocation4 + $0x200] ss:$8 sps:$4 sm:$0xff]   ;;  %v7541_v46 = vld [vmem:[#allocation4 + $0x214] ss:$8 sps:$4 sm:$0xff]  }
 0x4b1   :  { %3348 = vmatprep.subr.bf16.mxu0 %v7514_v43  ;;  %3147 = vmatprep.subr.bf16.mxu1 %v7517_v47  ;;  %v7536_v47 = vld [vmem:[#allocation4 + $0x310] ss:$8 sps:$4 sm:$0xff]  }
 0x4b4   :  { %3349 = vmatpush1.bf16.msra.mxu0 %v7512_v48  ;;  %3148 = vmatpush1.bf16.msra.mxu1 %v7515_v50  ;;  %v7544_v48 = vld [vmem:[#allocation4 + $0x324] ss:$8 sps:$4 sm:$0xff]  }
 0x4b5   :  { %3350 = vmatprep.subr.bf16.mxu0 %v7520_v49  ;;  %3149 = vmatprep.subr.bf16.mxu1 %v7523_v51  ;;  %v7539_v49 = vld [vmem:[#allocation4 + $0x210] ss:$8 sps:$4 sm:$0xff]   ;;  %v7547_v50 = vld [vmem:[#allocation4 + $0x224] ss:$8 sps:$4 sm:$0xff]   ;;  %v7542_v51 = vld [vmem:[#allocation4 + $0x320] ss:$8 sps:$4 sm:$0xff]  }
 0x4b8   :  { %3351 = vmatpush1.bf16.msra.mxu0 %v7518_v52  ;;  %3150 = vmatpush1.bf16.msra.mxu1 %v7521_v15  ;;  %v7550_v52 = vld [vmem:[#allocation4 + $0x334] ss:$8 sps:$4 sm:$0xff]  }
 0x4b9   :  { %3352 = vmatprep.subr.bf16.mxu0 %v7526_v14  ;;  %3151 = vmatprep.subr.bf16.mxu1 %v7529_v53  ;;  %v7545_v14 = vld [vmem:[#allocation4 + $0x220] ss:$8 sps:$4 sm:$0xff]   ;;  %v7553_v15 = vld [vmem:[#allocation4 + $0x234] ss:$8 sps:$4 sm:$0xff]   ;;  %v7548_v53 = vld [vmem:[#allocation4 + $0x330] ss:$8 sps:$4 sm:$0xff]  }
 0x4bc   :  { %3353 = vmatpush1.bf16.msra.mxu0 %v7524_v54  ;;  %3152 = vmatpush1.bf16.msra.mxu1 %v7527_v55  ;;  %v7556_v54 = vld [vmem:[#allocation4 + $0x344] ss:$8 sps:$4 sm:$0xff]   ;;  %v7551_v55 = vld [vmem:[#allocation4 + $0x230] ss:$8 sps:$4 sm:$0xff]  }
 0x4bd   :  { %3798 = vmatprep.subr.bf16.mxu0 %v7532_v56  ;;  %3559 = vmatprep.subr.bf16.mxu1 %v7535_v57  ;;  %v7559_v56 = vld [vmem:[#allocation4 + $0x244] ss:$8 sps:$4 sm:$0xff]   ;;  %v7554_v57 = vld [vmem:[#allocation4 + $0x340] ss:$8 sps:$4 sm:$0xff]  }
 0x552   :  { %v2764_v58 = vpop.f32.mrb[12].mxu1  ;;  %v2846_v59 = vpop.f32.mrb[8].mxu0 }
 0x553   :  { %v2853_v60 = vmul.f32 %v2764_v58, %v2764_v58  ;;  %v2855_v61 = vmul.f32 %v2846_v59, %v2846_v59  ;;  %v2766_v62 = vpop.f32.mrb[13].mxu1  ;;  %v2848_v63 = vpop.f32.mrb[9].mxu0  ;;  %v7562_v58 = vld [vmem:[#allocation4 + $0x354] ss:$8 sps:$4 sm:$0xff]   ;;  %v7557_v59 = vld [vmem:[#allocation4 + $0x240] ss:$8 sps:$4 sm:$0xff]  }
 0x554   :  { %v2854_v3 = vmul.f32 %v2766_v62, %v2766_v62  ;;  %v2856_v4 = vmul.f32 %v2848_v63, %v2848_v63  ;;  %v2768_v5 = vpop.f32.mrb[14].mxu1  ;;  %v2850_v6 = vpop.f32.mrb[10].mxu0  ;;  %v7568_v62 = vld [vmem:[#allocation4 + $0x364] ss:$8 sps:$4 sm:$0xff]   ;;  %v7563_v63 = vld [vmem:[#allocation4 + $0x250] ss:$8 sps:$4 sm:$0xff]  }
 0x555   :  { %v2857_v7 = vadd.f32 %v2855_v61, %v2853_v60  ;;  %v2769_v10 = vpop.f32.mrb[15].mxu1  ;;  %v2851_v12 = vpop.f32.mrb[11].mxu0  ;;  %v7565_v60 = vld [vmem:[#allocation4 + $0x254] ss:$8 sps:$4 sm:$0xff]   ;;  %v7560_v61 = vld [vmem:[#allocation4 + $0x350] ss:$8 sps:$4 sm:$0xff]  }
 0x556   :  { %v2858_v2 = vadd.f32 %v2856_v4, %v2854_v3  ;;  %v7571_v3 = vld [vmem:[#allocation4 + $0x264] ss:$8 sps:$4 sm:$0xff]   ;;  %v7566_v4 = vld [vmem:[#allocation4 + $0x360] ss:$8 sps:$4 sm:$0xff]   ;;  %v7574_v5 = vld [vmem:[#allocation4 + $0x374] ss:$8 sps:$4 sm:$0xff]  }
 0x557   :  { %8030 = vrsqrt.f32 %v2857_v7  ;;  %vm2861_vm2 = vcmp.eq.f32.partialorder %v2857_v7, inf  ;;  %v2864_v21 = vand.u32 2147483648, %v2857_v7  ;;  %vm2863_vm4 = vcmp.eq.f32.partialorder %v2857_v7, 0.0  ;;  %v7569_v6 = vld [vmem:[#allocation4 + $0x260] ss:$8 sps:$4 sm:$0xff]  }
 0x558   :  { %8032 = vrsqrt.f32 %v2858_v2  ;;  %vm2868_vm3 = vcmp.eq.f32.partialorder %v2858_v2, inf  ;;  %v2871_v22 = vand.u32 2147483648, %v2858_v2  ;;  %vm2870_vm5 = vcmp.eq.f32.partialorder %v2858_v2, 0.0  ;;  %v7572_v10 = vld [vmem:[#allocation4 + $0x370] ss:$8 sps:$4 sm:$0xff]  }
 0x559   :  { %v7580_v12 = vld [vmem:[#allocation4 + $0x384] ss:$8 sps:$4 sm:$0xff]  }
 0x561   :  { %v8031_v0 = vpop.eup %8030 }
 0x562   :  { %v8033_v18 = vpop.eup %8032  ;;  %v2860_v1 = vmul.f32 %v8031_v0, %v2857_v7  ;;  %v7578_v0 = vld [vmem:[#allocation4 + $0x380] ss:$8 sps:$4 sm:$0xff]  }
 0x563   :  { %v2867_v20 = vmul.f32 %v8033_v18, %v2858_v2  ;;  %v7586_v18 = vld [vmem:[#allocation4 + $0x394] ss:$8 sps:$4 sm:$0xff]  }
 0x564   :  { %v2862_v23 = vsel %vm2861_vm2, %v2857_v7, %v2860_v1  ;;  %v7577_v7 = vld [vmem:[#allocation4 + $0x274] ss:$8 sps:$4 sm:$0xff]   ;;  %v7581_v1 = vld [vmem:[#allocation4 + $0x280] ss:$8 sps:$4 sm:$0xff]  }
 0x565   :  { %v2869_v24 = vsel %vm2868_vm3, %v2858_v2, %v2867_v20  ;;  %v2865_v31 = vsel %vm2863_vm4, %v2864_v21, %v2862_v23  ;;  %v7575_v2 = vld [vmem:[#allocation4 + $0x270] ss:$8 sps:$4 sm:$0xff]   ;;  %v7592_v21 = vld [vmem:[#allocation4 + $0x3a4] ss:$8 sps:$4 sm:$0xff]  }
 0x566   :  { %v2872_v45 = vsel %vm2870_vm5, %v2871_v22, %v2869_v24  ;;  %v2879_v32 = vmul.f32 %v2877_v17, %v2865_v31  ;;  %v7584_v20 = vld [vmem:[#allocation4 + $0x390] ss:$8 sps:$4 sm:$0xff]   ;;  %v7595_v23 = vld [vmem:[#allocation4 + $0x2a4] ss:$8 sps:$4 sm:$0xff]   ;;  %v7590_v24 = vld [vmem:[#allocation4 + $0x3a0] ss:$8 sps:$4 sm:$0xff]  }
 0x567   :  { %v2880_v34 = vmul.f32 %v2877_v17, %v2872_v45  ;;  %v7583_v17 = vld [vmem:[#allocation4 + $0x284] ss:$8 sps:$4 sm:$0xff]   ;;  %v7587_v22 = vld [vmem:[#allocation4 + $0x290] ss:$8 sps:$4 sm:$0xff]   ;;  %v7598_v31 = vld [vmem:[#allocation4 + $0x3b4] ss:$8 sps:$4 sm:$0xff]  }
 0x568   :  { %v2887_v35 = vadd.f32 %v2885_v44, %v2879_v32  ;;  %v7593_v44 = vld [vmem:[#allocation4 + $0x2a0] ss:$8 sps:$4 sm:$0xff]   ;;  %v7601_v45 = vld [vmem:[#allocation4 + $0x2b4] ss:$8 sps:$4 sm:$0xff]   ;;  %v7596_v32 = vld [vmem:[#allocation4 + $0x3b0] ss:$8 sps:$4 sm:$0xff]  }
 0x569   :  { %v2888_v36 = vadd.f32 %v2886_v33, %v2880_v34  ;;  %v7604_v33 = vld [vmem:[#allocation4 + $0x3c4] ss:$8 sps:$4 sm:$0xff]   ;;  %v7599_v34 = vld [vmem:[#allocation4 + $0x2b0] ss:$8 sps:$4 sm:$0xff]  }
 0x56a   :  { %v8780_v37 = vpack.c.bf16 %v2887_v35, %v2887_v35  ;;  %v7607_v35 = vld [vmem:[#allocation4 + $0x2c4] ss:$8 sps:$4 sm:$0xff]  }
 0x56b   :  { %v2890_v38 = vpack.c.bf16 %v2888_v36, %v2888_v36  ;;  %v7602_v36 = vld [vmem:[#allocation4 + $0x3c0] ss:$8 sps:$4 sm:$0xff]  }
 0x56c   :  { %v2957_v43 = vrot.slane %v8780_v37, 1 }
 0x56d   :  { %3354 = vmatprep.mubr.bf16.mxu0 %v2890_v38  ;;  %v2958_v40 = vrot.slane %v2890_v38, 1  ;;  %v3635_v42 = vrot.slane %v2890_v38, 3  ;;  %v3396_v29 = vrot.slane %v2890_v38, 2  ;;  %v7610_v38 = vld [vmem:[#allocation4 + $0x3d4] ss:$8 sps:$4 sm:$0xff]  }
 0x56e   :  { %3355 = vmatmul.mubr.bf16.vlgmr.msra.gmra.mrb[12].mxu0 %v8780_v37 }
 0x56f   :  { %3799 = vmatpush1.bf16.msra.mxu0 %v7530_v39  ;;  %3153 = vmatprep.mubr.bf16.mxu1 %v2958_v40  ;;  %v7605_v39 = vld [vmem:[#allocation4 + $0x2c0] ss:$8 sps:$4 sm:$0xff]   ;;  %v7613_v40 = vld [vmem:[#allocation4 + $0x2d4] ss:$8 sps:$4 sm:$0xff]  }
 0x570   :  { %3830 = vmatprep.mubr.bf16.mxu0 %v3635_v42  ;;  %3154 = vmatmul.mubr.bf16.vlgmr.msra.gmra.mrb[16].mxu1 %v2957_v43  ;;  %v7616_v42 = vld [vmem:[#allocation4 + $0x3e4] ss:$8 sps:$4 sm:$0xff]   ;;  %v7611_v43 = vld [vmem:[#allocation4 + $0x2d0] ss:$8 sps:$4 sm:$0xff]  }
 0x571   :  { %3560 = vmatpush1.bf16.msra.mxu1 %v7533_v41  ;;  %3591 = vmatprep.mubr.bf16.mxu1 %v3396_v29  ;;  %v7608_v41 = vld [vmem:[#allocation4 + $0x3d0] ss:$8 sps:$4 sm:$0xff]   ;;  %v7622_v29 = vld [vmem:[#allocation4 + $0x3f4] ss:$8 sps:$4 sm:$0xff]  }
 0x572   :  { %3800 = vmatprep.subr.bf16.mxu0 %v7538_v27  ;;  %3561 = vmatprep.subr.bf16.mxu1 %v7541_v46  ;;  %v7619_v27 = vld [vmem:[#allocation4 + $0x2e4] ss:$8 sps:$4 sm:$0xff]   ;;  %v7614_v46 = vld [vmem:[#allocation4 + $0x3e0] ss:$8 sps:$4 sm:$0xff]  }
 0x573   :  { %3801 = vmatpush1.bf16.msra.mxu0 %v7536_v47  ;;  %v7617_v47 = vld [vmem:[#allocation4 + $0x2e0] ss:$8 sps:$4 sm:$0xff]  }
 0x574   :  { %3802 = vmatprep.subr.bf16.mxu0 %v7544_v48  ;;  %v7625_v48 = vld [vmem:[#allocation4 + $0x2f4] ss:$8 sps:$4 sm:$0xff]  }
 0x575   :  { %3562 = vmatpush1.bf16.msra.mxu1 %v7539_v49  ;;  %v7620_v49 = vld [vmem:[#allocation4 + $0x3f0] ss:$8 sps:$4 sm:$0xff]  }
 0x576   :  { %3563 = vmatprep.subr.bf16.mxu1 %v7547_v50  ;;  %v7628_v50 = vld [vmem:[#allocation7 + $0xc] ss:$36 sps:$4 sm:$0xff]  }
 0x577   :  { %3803 = vmatpush1.bf16.msra.mxu0 %v7542_v51  ;;  %v7623_v51 = vld [vmem:[#allocation4 + $0x2f0] ss:$8 sps:$4 sm:$0xff]  }
 0x578   :  { %3804 = vmatprep.subr.bf16.mxu0 %v7550_v52  ;;  %v7631_v52 = vld [vmem:[#allocation7 + $0x4] ss:$36 sps:$4 sm:$0xff]  }
 0x579   :  { %3564 = vmatpush1.bf16.msra.mxu1 %v7545_v14  ;;  %v7626_v14 = vld [vmem:[#allocation7 + $0x8] ss:$36 sps:$4 sm:$0xff]  }
 0x57a   :  { %3565 = vmatprep.subr.bf16.mxu1 %v7553_v15  ;;  %v3634_v15 = vrot.slane %v8780_v37, 3 }
 0x57b   :  { %3805 = vmatpush1.bf16.msra.mxu0 %v7548_v53  ;;  %v7634_v53 = vld [vmem:[#allocation7 + $0x54] ss:$36 sps:$4 sm:$0xff]  }
 0x57c   :  { %3806 = vmatprep.subr.bf16.mxu0 %v7556_v54  ;;  %v7629_v54 = vld [vmem:[#allocation7] ss:$36 sps:$4 sm:$0xff]  }
 0x57d   :  { %3566 = vmatpush1.bf16.msra.mxu1 %v7551_v55  ;;  %v3395_v55 = vrot.slane %v8780_v37, 2  ;;  %v7641_v37 = vld [vmem:[#allocation7 + $0x90] ss:$36 sps:$4 sm:$0xff]  }
 0x57e   :  { %3567 = vmatprep.subr.bf16.mxu1 %v7559_v56  ;;  %v7637_v56 = vld [vmem:[#allocation7 + $0x4c] ss:$36 sps:$4 sm:$0xff]  }
 0x57f   :  { %3807 = vmatpush1.bf16.msra.mxu0 %v7554_v57  ;;  %v7632_v57 = vld [vmem:[#allocation7 + $0x50] ss:$36 sps:$4 sm:$0xff]  }
 0x580   :  { %3808 = vmatprep.subr.bf16.mxu0 %v7562_v58  ;;  %v7640_v58 = vld [vmem:[#allocation7 + $0x9c] ss:$36 sps:$4 sm:$0xff]  }
 0x581   :  { %3568 = vmatpush1.bf16.msra.mxu1 %v7557_v59  ;;  %v7635_v59 = vld [vmem:[#allocation7 + $0x48] ss:$36 sps:$4 sm:$0xff]  }
 0x582   :  { %3569 = vmatprep.subr.bf16.mxu1 %v7565_v60  ;;  %v7643_v60 = vld [vmem:[#allocation7 + $0x94] ss:$36 sps:$4 sm:$0xff]  }
 0x583   :  { %3809 = vmatpush1.bf16.msra.mxu0 %v7560_v61  ;;  %v7638_v61 = vld [vmem:[#allocation7 + $0x98] ss:$36 sps:$4 sm:$0xff]  }
 0x584   :  { %3810 = vmatprep.subr.bf16.mxu0 %v7568_v62  ;;  %v7646_v62 = vld [vmem:[#allocation7 + $0xe4] ss:$36 sps:$4 sm:$0xff]  }
 0x585   :  { %3570 = vmatpush1.bf16.msra.mxu1 %v7563_v63  ;;  %v7649_v63 = vld [vmem:[#allocation7 + $0xdc] ss:$36 sps:$4 sm:$0xff]  }
 0x586   :  { %3571 = vmatprep.subr.bf16.mxu1 %v7571_v3  ;;  %v7644_v3 = vld [vmem:[#allocation7 + $0xe0] ss:$36 sps:$4 sm:$0xff]  }
 0x587   :  { %3811 = vmatpush1.bf16.msra.mxu0 %v7566_v4  ;;  %v7652_v4 = vld [vmem:[#allocation7 + $0x12c] ss:$36 sps:$4 sm:$0xff]  }
 0x588   :  { %3812 = vmatprep.subr.bf16.mxu0 %v7574_v5  ;;  %v7647_v5 = vld [vmem:[#allocation7 + $0xd8] ss:$36 sps:$4 sm:$0xff]  }
 0x589   :  { %3572 = vmatpush1.bf16.msra.mxu1 %v7569_v6  ;;  %v7655_v6 = vld [vmem:[#allocation7 + $0x124] ss:$36 sps:$4 sm:$0xff]  }
 0x58a   :  { %3573 = vmatprep.subr.bf16.mxu1 %v7577_v7  ;;  %v7650_v7 = vld [vmem:[#allocation7 + $0x128] ss:$36 sps:$4 sm:$0xff]  }
 0x58b   :  { %3813 = vmatpush1.bf16.msra.mxu0 %v7572_v10  ;;  %v7658_v10 = vld [vmem:[#allocation7 + $0x174] ss:$36 sps:$4 sm:$0xff]  }
 0x58c   :  { %3814 = vmatprep.subr.bf16.mxu0 %v7580_v12  ;;  %v7653_v12 = vld [vmem:[#allocation7 + $0x120] ss:$36 sps:$4 sm:$0xff]  }
 0x58d   :  { %3574 = vmatpush1.bf16.msra.mxu1 %v7575_v2  ;;  %v7661_v2 = vld [vmem:[#allocation7 + $0x16c] ss:$36 sps:$4 sm:$0xff]  }
 0x58e   :  { %3575 = vmatprep.subr.bf16.mxu1 %v7583_v17  ;;  %v7656_v17 = vld [vmem:[#allocation7 + $0x170] ss:$36 sps:$4 sm:$0xff]  }
 0x58f   :  { %3815 = vmatpush1.bf16.msra.mxu0 %v7578_v0  ;;  %v7664_v0 = vld [vmem:[#allocation7 + $0x1bc] ss:$36 sps:$4 sm:$0xff]  }
 0x590   :  { %3816 = vmatprep.subr.bf16.mxu0 %v7586_v18  ;;  %v7659_v18 = vld [vmem:[#allocation7 + $0x168] ss:$36 sps:$4 sm:$0xff]  }
 0x591   :  { %3576 = vmatpush1.bf16.msra.mxu1 %v7581_v1  ;;  %v7667_v1 = vld [vmem:[#allocation7 + $0x1b4] ss:$36 sps:$4 sm:$0xff]  }
 0x592   :  { %3577 = vmatprep.subr.bf16.mxu1 %v7589_v19  ;;  %v7662_v19 = vld [vmem:[#allocation7 + $0x1b8] ss:$36 sps:$4 sm:$0xff]  }
 0x593   :  { %3817 = vmatpush1.bf16.msra.mxu0 %v7584_v20  ;;  %v7670_v20 = vld [vmem:[#allocation7 + $0x204] ss:$36 sps:$4 sm:$0xff]  }
 0x594   :  { %3818 = vmatprep.subr.bf16.mxu0 %v7592_v21  ;;  %v7665_v21 = vld [vmem:[#allocation7 + $0x1b0] ss:$36 sps:$4 sm:$0xff]  }
 0x595   :  { %3578 = vmatpush1.bf16.msra.mxu1 %v7587_v22  ;;  %v7673_v22 = vld [vmem:[#allocation7 + $0x1fc] ss:$36 sps:$4 sm:$0xff]  }
 0x596   :  { %3579 = vmatprep.subr.bf16.mxu1 %v7595_v23  ;;  %v7668_v23 = vld [vmem:[#allocation7 + $0x200] ss:$36 sps:$4 sm:$0xff]  }
 0x597   :  { %3819 = vmatpush1.bf16.msra.mxu0 %v7590_v24  ;;  %v7676_v24 = vld [vmem:[#allocation7 + $0x24c] ss:$36 sps:$4 sm:$0xff]  }
 0x598   :  { %3820 = vmatprep.subr.bf16.mxu0 %v7598_v31  ;;  %v7671_v31 = vld [vmem:[#allocation7 + $0x1f8] ss:$36 sps:$4 sm:$0xff]  }
 0x599   :  { %3580 = vmatpush1.bf16.msra.mxu1 %v7593_v44  ;;  %v7679_v44 = vld [vmem:[#allocation7 + $0x244] ss:$36 sps:$4 sm:$0xff]  }
 0x59a   :  { %3581 = vmatprep.subr.bf16.mxu1 %v7601_v45  ;;  %v7674_v45 = vld [vmem:[#allocation7 + $0x248] ss:$36 sps:$4 sm:$0xff]  }
 0x59b   :  { %3821 = vmatpush1.bf16.msra.mxu0 %v7596_v32  ;;  %v7682_v32 = vld [vmem:[#allocation7 + $0x294] ss:$36 sps:$4 sm:$0xff]  }
 0x59c   :  { %3822 = vmatprep.subr.bf16.mxu0 %v7604_v33  ;;  %v7677_v33 = vld [vmem:[#allocation7 + $0x240] ss:$36 sps:$4 sm:$0xff]  }
 0x59d   :  { %3582 = vmatpush1.bf16.msra.mxu1 %v7599_v34  ;;  %v7685_v34 = vld [vmem:[#allocation7 + $0x28c] ss:$36 sps:$4 sm:$0xff]  }
 0x59e   :  { %3583 = vmatprep.subr.bf16.mxu1 %v7607_v35  ;;  %v7680_v35 = vld [vmem:[#allocation7 + $0x290] ss:$36 sps:$4 sm:$0xff]  }
 0x59f   :  { %3823 = vmatpush1.bf16.msra.mxu0 %v7602_v36  ;;  %v7688_v36 = vld [vmem:[#allocation7 + $0x2dc] ss:$36 sps:$4 sm:$0xff]  }
 0x5a0   :  { %3824 = vmatprep.subr.bf16.mxu0 %v7610_v38  ;;  %v7683_v38 = vld [vmem:[#allocation7 + $0x288] ss:$36 sps:$4 sm:$0xff]  }
 0x5a1   :  { %3584 = vmatpush1.bf16.msra.mxu1 %v7605_v39  ;;  %v7691_v39 = vld [vmem:[#allocation7 + $0x2d4] ss:$36 sps:$4 sm:$0xff]  }
 0x5a2   :  { %3585 = vmatprep.subr.bf16.mxu1 %v7613_v40  ;;  %v7686_v40 = vld [vmem:[#allocation7 + $0x2d8] ss:$36 sps:$4 sm:$0xff]  }
 0x5a3   :  { %3825 = vmatpush1.bf16.msra.mxu0 %v7608_v41  ;;  %v7694_v41 = vld [vmem:[#allocation7 + $0x324] ss:$36 sps:$4 sm:$0xff]  }
 0x5a4   :  { %3826 = vmatprep.subr.bf16.mxu0 %v7616_v42  ;;  %v7689_v42 = vld [vmem:[#allocation7 + $0x2d0] ss:$36 sps:$4 sm:$0xff]  }
 0x5a5   :  { %3586 = vmatpush1.bf16.msra.mxu1 %v7611_v43  ;;  %v7697_v43 = vld [vmem:[#allocation7 + $0x31c] ss:$36 sps:$4 sm:$0xff]  }
 0x5a6   :  { %3587 = vmatprep.subr.bf16.mxu1 %v7619_v27  ;;  %v7692_v27 = vld [vmem:[#allocation7 + $0x320] ss:$36 sps:$4 sm:$0xff]  }
 0x5a7   :  { %3827 = vmatpush1.bf16.msra.mxu0 %v7614_v46  ;;  %v7700_v46 = vld [vmem:[#allocation7 + $0x36c] ss:$36 sps:$4 sm:$0xff]  }
 0x5a8   :  { %3828 = vmatprep.subr.bf16.mxu0 %v7622_v29  ;;  %v7695_v29 = vld [vmem:[#allocation7 + $0x318] ss:$36 sps:$4 sm:$0xff]  }
 0x5a9   :  { %3588 = vmatpush1.bf16.msra.mxu1 %v7617_v47  ;;  %v7703_v47 = vld [vmem:[#allocation7 + $0x364] ss:$36 sps:$4 sm:$0xff]  }
 0x5aa   :  { %3589 = vmatprep.subr.bf16.mxu1 %v7625_v48  ;;  %v7698_v48 = vld [vmem:[#allocation7 + $0x368] ss:$36 sps:$4 sm:$0xff]  }
 0x5ab   :  { %3829 = vmatpush1.bf16.msra.mxu0 %v7620_v49  ;;  %v7706_v49 = vld [vmem:[#allocation7 + $0x3b4] ss:$36 sps:$4 sm:$0xff]  }
 0x5ac   :  { %4801 = vmatprep.subr.bf16.mxu0 %v7628_v50  ;;  %v7701_v50 = vld [vmem:[#allocation7 + $0x360] ss:$36 sps:$4 sm:$0xff]  }
 0x5ad   :  { %3590 = vmatpush1.bf16.msra.mxu1 %v7623_v51  ;;  %v7709_v51 = vld [vmem:[#allocation7 + $0x3ac] ss:$36 sps:$4 sm:$0xff]  }
 0x5ae   :  { %3831 = vmatmul.mubr.bf16.vlgmr.msra.gmra.mrb[16].mxu0 %v3634_v15  ;;  %4760 = vmatprep.subr.bf16.mxu1 %v7631_v52  ;;  %v7704_v52 = vld [vmem:[#allocation7 + $0x3b0] ss:$36 sps:$4 sm:$0xff]   ;;  %v7707_v15 = vld [vmem:[#allocation7 + $0x3a8] ss:$36 sps:$4 sm:$0xff]  }
 0x5af   :  { %4802 = vmatpush1.bf16.msra.mxu0 %v7626_v14  ;;  %4833 = vmatprep.mubr.bf16.mxu0 %v8561_v30  ;;  %v7712_v14 = vld [vmem:[#allocation7 + $0x3fc] ss:$36 sps:$4 sm:$0xff]  }
 0x5b0   :  { %3592 = vmatmul.mubr.bf16.vlgmr.msra.gmra.mrb[20].mxu1 %v3395_v55  ;;  %4803 = vmatprep.subr.bf16.mxu0 %v7634_v53  ;;  %v7715_v53 = vld [vmem:[#allocation7 + $0x3f4] ss:$36 sps:$4 sm:$0xff]   ;;  %v7718_v55 = vld [vmem:[#allocation7 + $0x444] ss:$36 sps:$4 sm:$0xff]  }
 0x5b1   :  { %4761 = vmatpush1.bf16.msra.mxu1 %v7629_v54  ;;  %4792 = vmatprep.mubr.bf16.mxu1 %v8561_v30  ;;  %v7710_v54 = vld [vmem:[#allocation7 + $0x3f8] ss:$36 sps:$4 sm:$0xff]  }
 0x5b2   :  { %4762 = vmatprep.subr.bf16.mxu1 %v7637_v56  ;;  %v7713_v56 = vld [vmem:[#allocation7 + $0x3f0] ss:$36 sps:$4 sm:$0xff]  }
 0x5b3   :  { %4804 = vmatpush1.bf16.msra.mxu0 %v7632_v57  ;;  %v7721_v57 = vld [vmem:[#allocation7 + $0x43c] ss:$36 sps:$4 sm:$0xff]  }
 0x5b4   :  { %4805 = vmatprep.subr.bf16.mxu0 %v7640_v58  ;;  %v7716_v58 = vld [vmem:[#allocation7 + $0x440] ss:$36 sps:$4 sm:$0xff]  }
 0x5b5   :  { %4763 = vmatpush1.bf16.msra.mxu1 %v7635_v59  ;;  %v7724_v59 = vld [vmem:[#allocation7 + $0x1c] ss:$36 sps:$4 sm:$0xff]  }
 0x5b6   :  { %4764 = vmatprep.subr.bf16.mxu1 %v7643_v60  ;;  %v7719_v60 = vld [vmem:[#allocation7 + $0x438] ss:$36 sps:$4 sm:$0xff]  }
 0x5b7   :  { %4806 = vmatpush1.bf16.msra.mxu0 %v7638_v61  ;;  %v7727_v61 = vld [vmem:[#allocation7 + $0x14] ss:$36 sps:$4 sm:$0xff]  }
 0x5b8   :  { %4807 = vmatprep.subr.bf16.mxu0 %v7646_v62  ;;  %v7722_v62 = vld [vmem:[#allocation7 + $0x18] ss:$36 sps:$4 sm:$0xff]  }
 0x5b9   :  { %4765 = vmatpush1.bf16.msra.mxu1 %v7641_v37  ;;  %v7730_v37 = vld [vmem:[#allocation7 + $0x64] ss:$36 sps:$4 sm:$0xff]  }
 0x5ba   :  { %4766 = vmatprep.subr.bf16.mxu1 %v7649_v63  ;;  %v7725_v63 = vld [vmem:[#allocation7 + $0x10] ss:$36 sps:$4 sm:$0xff]  }
 0x5bb   :  { %4808 = vmatpush1.bf16.msra.mxu0 %v7644_v3  ;;  %v7733_v3 = vld [vmem:[#allocation7 + $0x5c] ss:$36 sps:$4 sm:$0xff]  }
 0x5bc   :  { %4809 = vmatprep.subr.bf16.mxu0 %v7652_v4  ;;  %v7728_v4 = vld [vmem:[#allocation7 + $0x60] ss:$36 sps:$4 sm:$0xff]  }
 0x5bd   :  { %4767 = vmatpush1.bf16.msra.mxu1 %v7647_v5  ;;  %v7736_v5 = vld [vmem:[#allocation7 + $0xac] ss:$36 sps:$4 sm:$0xff]  }
 0x5be   :  { %4768 = vmatprep.subr.bf16.mxu1 %v7655_v6  ;;  %v7731_v6 = vld [vmem:[#allocation7 + $0x58] ss:$36 sps:$4 sm:$0xff]  }
 0x5bf   :  { %4810 = vmatpush1.bf16.msra.mxu0 %v7650_v7  ;;  %v7739_v7 = vld [vmem:[#allocation7 + $0xa4] ss:$36 sps:$4 sm:$0xff]  }
 0x5c0   :  { %4811 = vmatprep.subr.bf16.mxu0 %v7658_v10  ;;  %v7734_v10 = vld [vmem:[#allocation7 + $0xa8] ss:$36 sps:$4 sm:$0xff]  }
 0x5c1   :  { %4769 = vmatpush1.bf16.msra.mxu1 %v7653_v12  ;;  %v7742_v12 = vld [vmem:[#allocation7 + $0xf4] ss:$36 sps:$4 sm:$0xff]  }
 0x5c2   :  { %4770 = vmatprep.subr.bf16.mxu1 %v7661_v2  ;;  %v7737_v2 = vld [vmem:[#allocation7 + $0xa0] ss:$36 sps:$4 sm:$0xff]  }
 0x5c3   :  { %4812 = vmatpush1.bf16.msra.mxu0 %v7656_v17  ;;  %v7745_v17 = vld [vmem:[#allocation7 + $0xec] ss:$36 sps:$4 sm:$0xff]  }
 0x5c4   :  { %4813 = vmatprep.subr.bf16.mxu0 %v7664_v0  ;;  %v7740_v0 = vld [vmem:[#allocation7 + $0xf0] ss:$36 sps:$4 sm:$0xff]  }
 0x5c5   :  { %4771 = vmatpush1.bf16.msra.mxu1 %v7659_v18  ;;  %v7748_v18 = vld [vmem:[#allocation7 + $0x13c] ss:$36 sps:$4 sm:$0xff]  }
 0x5c6   :  { %4772 = vmatprep.subr.bf16.mxu1 %v7667_v1  ;;  %v7743_v1 = vld [vmem:[#allocation7 + $0xe8] ss:$36 sps:$4 sm:$0xff]  }
 0x5c7   :  { %4814 = vmatpush1.bf16.msra.mxu0 %v7662_v19  ;;  %v7751_v19 = vld [vmem:[#allocation7 + $0x134] ss:$36 sps:$4 sm:$0xff]  }
 0x5c8   :  { %4815 = vmatprep.subr.bf16.mxu0 %v7670_v20  ;;  %v7746_v20 = vld [vmem:[#allocation7 + $0x138] ss:$36 sps:$4 sm:$0xff]  }
 0x5c9   :  { %4773 = vmatpush1.bf16.msra.mxu1 %v7665_v21  ;;  %v7754_v21 = vld [vmem:[#allocation7 + $0x184] ss:$36 sps:$4 sm:$0xff]  }
 0x5ca   :  { %4774 = vmatprep.subr.bf16.mxu1 %v7673_v22  ;;  %v7749_v22 = vld [vmem:[#allocation7 + $0x130] ss:$36 sps:$4 sm:$0xff]  }
 0x5cb   :  { %4816 = vmatpush1.bf16.msra.mxu0 %v7668_v23  ;;  %v7757_v23 = vld [vmem:[#allocation7 + $0x17c] ss:$36 sps:$4 sm:$0xff]  }
 0x5cc   :  { %4817 = vmatprep.subr.bf16.mxu0 %v7676_v24  ;;  %v7752_v24 = vld [vmem:[#allocation7 + $0x180] ss:$36 sps:$4 sm:$0xff]  }
 0x5cd   :  { %4775 = vmatpush1.bf16.msra.mxu1 %v7671_v31  ;;  %v7760_v31 = vld [vmem:[#allocation7 + $0x1cc] ss:$36 sps:$4 sm:$0xff]  }
 0x5ce   :  { %4776 = vmatprep.subr.bf16.mxu1 %v7679_v44  ;;  %v7755_v44 = vld [vmem:[#allocation7 + $0x178] ss:$36 sps:$4 sm:$0xff]  }
 0x5cf   :  { %4818 = vmatpush1.bf16.msra.mxu0 %v7674_v45  ;;  %v7763_v45 = vld [vmem:[#allocation7 + $0x1c4] ss:$36 sps:$4 sm:$0xff]  }
 0x5d0   :  { %4819 = vmatprep.subr.bf16.mxu0 %v7682_v32  ;;  %v7758_v32 = vld [vmem:[#allocation7 + $0x1c8] ss:$36 sps:$4 sm:$0xff]  }
 0x5d1   :  { %4777 = vmatpush1.bf16.msra.mxu1 %v7677_v33  ;;  %v7766_v33 = vld [vmem:[#allocation7 + $0x214] ss:$36 sps:$4 sm:$0xff]  }
 0x5d2   :  { %4778 = vmatprep.subr.bf16.mxu1 %v7685_v34  ;;  %v7761_v34 = vld [vmem:[#allocation7 + $0x1c0] ss:$36 sps:$4 sm:$0xff]  }
 0x5d3   :  { %4820 = vmatpush1.bf16.msra.mxu0 %v7680_v35  ;;  %v7769_v35 = vld [vmem:[#allocation7 + $0x20c] ss:$36 sps:$4 sm:$0xff]  }
 0x5d4   :  { %4821 = vmatprep.subr.bf16.mxu0 %v7688_v36  ;;  %v7764_v36 = vld [vmem:[#allocation7 + $0x210] ss:$36 sps:$4 sm:$0xff]  }
 0x5d5   :  { %4779 = vmatpush1.bf16.msra.mxu1 %v7683_v38  ;;  %v7772_v38 = vld [vmem:[#allocation7 + $0x25c] ss:$36 sps:$4 sm:$0xff]  }
 0x5d6   :  { %4780 = vmatprep.subr.bf16.mxu1 %v7691_v39  ;;  %v7767_v39 = vld [vmem:[#allocation7 + $0x208] ss:$36 sps:$4 sm:$0xff]  }
 0x5d7   :  { %4822 = vmatpush1.bf16.msra.mxu0 %v7686_v40  ;;  %v7775_v40 = vld [vmem:[#allocation7 + $0x254] ss:$36 sps:$4 sm:$0xff]  }
 0x5d8   :  { %4823 = vmatprep.subr.bf16.mxu0 %v7694_v41  ;;  %v7770_v41 = vld [vmem:[#allocation7 + $0x258] ss:$36 sps:$4 sm:$0xff]  }
 0x5d9   :  { %4781 = vmatpush1.bf16.msra.mxu1 %v7689_v42  ;;  %v7778_v42 = vld [vmem:[#allocation7 + $0x2a4] ss:$36 sps:$4 sm:$0xff]  }
 0x5da   :  { %4782 = vmatprep.subr.bf16.mxu1 %v7697_v43  ;;  %v7773_v43 = vld [vmem:[#allocation7 + $0x250] ss:$36 sps:$4 sm:$0xff]  }
 0x5db   :  { %4824 = vmatpush1.bf16.msra.mxu0 %v7692_v27  ;;  %v7781_v27 = vld [vmem:[#allocation7 + $0x29c] ss:$36 sps:$4 sm:$0xff]  }
 0x5dc   :  { %4825 = vmatprep.subr.bf16.mxu0 %v7700_v46  ;;  %v7776_v46 = vld [vmem:[#allocation7 + $0x2a0] ss:$36 sps:$4 sm:$0xff]  }
 0x5dd   :  { %4783 = vmatpush1.bf16.msra.mxu1 %v7695_v29  ;;  %v7784_v29 = vld [vmem:[#allocation7 + $0x2ec] ss:$36 sps:$4 sm:$0xff]  }
 0x5de   :  { %4784 = vmatprep.subr.bf16.mxu1 %v7703_v47  ;;  %v7779_v47 = vld [vmem:[#allocation7 + $0x298] ss:$36 sps:$4 sm:$0xff]  }
 0x5df   :  { %4826 = vmatpush1.bf16.msra.mxu0 %v7698_v48  ;;  %v7787_v48 = vld [vmem:[#allocation7 + $0x2e4] ss:$36 sps:$4 sm:$0xff]  }
 0x5e0   :  { %4827 = vmatprep.subr.bf16.mxu0 %v7706_v49  ;;  %v7782_v49 = vld [vmem:[#allocation7 + $0x2e8] ss:$36 sps:$4 sm:$0xff]  }
 0x5e1   :  { %4785 = vmatpush1.bf16.msra.mxu1 %v7701_v50  ;;  %v7790_v50 = vld [vmem:[#allocation7 + $0x334] ss:$36 sps:$4 sm:$0xff]  }
 0x5e2   :  { %4786 = vmatprep.subr.bf16.mxu1 %v7709_v51  ;;  %v7785_v51 = vld [vmem:[#allocation7 + $0x2e0] ss:$36 sps:$4 sm:$0xff]  }
 0x5e3   :  { %4828 = vmatpush1.bf16.msra.mxu0 %v7704_v52  ;;  %v7793_v52 = vld [vmem:[#allocation7 + $0x32c] ss:$36 sps:$4 sm:$0xff]  }
 0x5e4   :  { %4829 = vmatprep.subr.bf16.mxu0 %v7712_v14  ;;  %v7788_v14 = vld [vmem:[#allocation7 + $0x330] ss:$36 sps:$4 sm:$0xff]  }
 0x5e5   :  { %4787 = vmatpush1.bf16.msra.mxu1 %v7707_v15  ;;  %v7796_v15 = vld [vmem:[#allocation7 + $0x37c] ss:$36 sps:$4 sm:$0xff]  }
 0x5e6   :  { %4788 = vmatprep.subr.bf16.mxu1 %v7715_v53  ;;  %v7791_v53 = vld [vmem:[#allocation7 + $0x328] ss:$36 sps:$4 sm:$0xff]  }
 0x5e7   :  { %4830 = vmatpush1.bf16.msra.mxu0 %v7710_v54  ;;  %v7799_v54 = vld [vmem:[#allocation7 + $0x374] ss:$36 sps:$4 sm:$0xff]  }
 0x5e8   :  { %4831 = vmatprep.subr.bf16.mxu0 %v7718_v55  ;;  %v7794_v55 = vld [vmem:[#allocation7 + $0x378] ss:$36 sps:$4 sm:$0xff]  }
 0x5e9   :  { %4789 = vmatpush1.bf16.msra.mxu1 %v7713_v56  ;;  %v7802_v56 = vld [vmem:[#allocation7 + $0x3c4] ss:$36 sps:$4 sm:$0xff]  }
 0x5ea   :  { %4790 = vmatprep.subr.bf16.mxu1 %v7721_v57  ;;  %v7797_v57 = vld [vmem:[#allocation7 + $0x370] ss:$36 sps:$4 sm:$0xff]  }
 0x5eb   :  { %4832 = vmatpush1.bf16.msra.mxu0 %v7716_v58  ;;  %v7805_v58 = vld [vmem:[#allocation7 + $0x3bc] ss:$36 sps:$4 sm:$0xff]  }
 0x5ec   :  { %4883 = vmatprep.subr.bf16.mxu0 %v7724_v59  ;;  %v7800_v59 = vld [vmem:[#allocation7 + $0x3c0] ss:$36 sps:$4 sm:$0xff]  }
 0x5ed   :  { %4791 = vmatpush1.bf16.msra.mxu1 %v7719_v60  ;;  %v7808_v60 = vld [vmem:[#allocation7 + $0x40c] ss:$36 sps:$4 sm:$0xff]  }
 0x5ee   :  { %4834 = vmatmul.mubr.bf16.vlgmr.msra.gmra.mrb[20].mxu0 %v8555_v28  ;;  %4842 = vmatprep.subr.bf16.mxu1 %v7727_v61  ;;  %v7803_v61 = vld [vmem:[#allocation7 + $0x3b8] ss:$36 sps:$4 sm:$0xff]  }
 0x5ef   :  { %4884 = vmatpush1.bf16.msra.mxu0 %v7722_v62  ;;  %4915 = vmatprep.mubr.bf16.mxu0 %v8561_v30  ;;  %v7811_v62 = vld [vmem:[#allocation7 + $0x404] ss:$36 sps:$4 sm:$0xff]  }
 0x5f0   :  { %4793 = vmatmul.mubr.bf16.vlgmr.msra.gmra.mrb[24].mxu1 %v8555_v28  ;;  %4885 = vmatprep.subr.bf16.mxu0 %v7730_v37  ;;  %v7806_v37 = vld [vmem:[#allocation7 + $0x408] ss:$36 sps:$4 sm:$0xff]  }
 0x5f1   :  { %4843 = vmatpush1.bf16.msra.mxu1 %v7725_v63  ;;  %4874 = vmatprep.mubr.bf16.mxu1 %v8561_v30  ;;  %v7814_v63 = vld [vmem:[#allocation7 + $0x454] ss:$36 sps:$4 sm:$0xff]  }
 0x5f2   :  { %4844 = vmatprep.subr.bf16.mxu1 %v7733_v3  ;;  %v7809_v3 = vld [vmem:[#allocation7 + $0x400] ss:$36 sps:$4 sm:$0xff]  }
 0x5f3   :  { %4886 = vmatpush1.bf16.msra.mxu0 %v7728_v4  ;;  %v7817_v4 = vld [vmem:[#allocation7 + $0x44c] ss:$36 sps:$4 sm:$0xff]  }
 0x5f4   :  { %4887 = vmatprep.subr.bf16.mxu0 %v7736_v5  ;;  %v7812_v5 = vld [vmem:[#allocation7 + $0x450] ss:$36 sps:$4 sm:$0xff]  }
 0x5f5   :  { %4845 = vmatpush1.bf16.msra.mxu1 %v7731_v6  ;;  %v7815_v6 = vld [vmem:[#allocation7 + $0x448] ss:$36 sps:$4 sm:$0xff]  }
 0x5f6   :  { %4846 = vmatprep.subr.bf16.mxu1 %v7739_v7  ;;  %v7818_v7 = vld [vmem:[#allocation7 + $0x260] ss:$36 sps:$4 sm:$0xff]  }
 0x5f7   :  { %4888 = vmatpush1.bf16.msra.mxu0 %v7734_v10  ;;  %v7819_v10 = vld [vmem:[#allocation7 + $0x20] ss:$36 sps:$4 sm:$0xff]  }
 0x5f8   :  { %4889 = vmatprep.subr.bf16.mxu0 %v7742_v12  ;;  %v7820_v12 = vld [vmem:[#allocation7 + $0x2a8] ss:$36 sps:$4 sm:$0xff]  }
 0x5f9   :  { %4847 = vmatpush1.bf16.msra.mxu1 %v7737_v2  ;;  %v7821_v2 = vld [vmem:[#allocation7 + $0x68] ss:$36 sps:$4 sm:$0xff]  }
 0x5fa   :  { %4848 = vmatprep.subr.bf16.mxu1 %v7745_v17  ;;  %v7822_v17 = vld [vmem:[#allocation7 + $0x2f0] ss:$36 sps:$4 sm:$0xff]  }
 0x5fb   :  { %4890 = vmatpush1.bf16.msra.mxu0 %v7740_v0  ;;  %v7823_v0 = vld [vmem:[#allocation7 + $0xb0] ss:$36 sps:$4 sm:$0xff]  }
 0x5fc   :  { %4891 = vmatprep.subr.bf16.mxu0 %v7748_v18  ;;  %v7824_v18 = vld [vmem:[#allocation7 + $0x338] ss:$36 sps:$4 sm:$0xff]  }
 0x5fd   :  { %4849 = vmatpush1.bf16.msra.mxu1 %v7743_v1  ;;  %v7825_v1 = vld [vmem:[#allocation7 + $0xf8] ss:$36 sps:$4 sm:$0xff]  }
 0x5fe   :  { %4850 = vmatprep.subr.bf16.mxu1 %v7751_v19  ;;  %v7826_v19 = vld [vmem:[#allocation7 + $0x380] ss:$36 sps:$4 sm:$0xff]  }
 0x5ff   :  { %4892 = vmatpush1.bf16.msra.mxu0 %v7746_v20  ;;  %v7827_v20 = vld [vmem:[#allocation7 + $0x140] ss:$36 sps:$4 sm:$0xff]  }
 0x600   :  { %4893 = vmatprep.subr.bf16.mxu0 %v7754_v21  ;;  %v7828_v21 = vld [vmem:[#allocation7 + $0x3c8] ss:$36 sps:$4 sm:$0xff]  }
 0x601   :  { %4851 = vmatpush1.bf16.msra.mxu1 %v7749_v22 }
 0x602   :  { %4852 = vmatprep.subr.bf16.mxu1 %v7757_v23  ;;  %v7829_v23 = vld [vmem:[#allocation7 + $0x188] ss:$36 sps:$4 sm:$0xff]  }
 0x603   :  { %4894 = vmatpush1.bf16.msra.mxu0 %v7752_v24 }
 0x604   :  { %4895 = vmatprep.subr.bf16.mxu0 %v7760_v31 }
 0x605   :  { %4853 = vmatpush1.bf16.msra.mxu1 %v7755_v44 }
 0x606   :  { %4854 = vmatprep.subr.bf16.mxu1 %v7763_v45 }
 0x607   :  { %4896 = vmatpush1.bf16.msra.mxu0 %v7758_v32 }
 0x608   :  { %4897 = vmatprep.subr.bf16.mxu0 %v7766_v33 }
 0x609   :  { %4855 = vmatpush1.bf16.msra.mxu1 %v7761_v34 }
 0x60a   :  { %4856 = vmatprep.subr.bf16.mxu1 %v7769_v35 }
 0x60b   :  { %4898 = vmatpush1.bf16.msra.mxu0 %v7764_v36  ;;  %v7831_v36 = vld [vmem:[#allocation7 + $0x1d0] ss:$36 sps:$4 sm:$0xff]  }
 0x60c   :  { %4899 = vmatprep.subr.bf16.mxu0 %v7772_v38 }
 0x60d   :  { %4857 = vmatpush1.bf16.msra.mxu1 %v7767_v39  ;;  %v7832_v39 = vld [vmem:[#allocation7 + $0x458] ss:$36 sps:$4 sm:$0xff]  }
 0x60e   :  { %4858 = vmatprep.subr.bf16.mxu1 %v7775_v40  ;;  %v7833_v40 = vld [vmem:[#allocation7 + $0x218] ss:$36 sps:$4 sm:$0xff]  }
 0x60f   :  { %4900 = vmatpush1.bf16.msra.mxu0 %v7770_v41 }
 0x610   :  { %4901 = vmatprep.subr.bf16.mxu0 %v7778_v42 }
 0x611   :  { %4859 = vmatpush1.bf16.msra.mxu1 %v7773_v43 }
 0x612   :  { %4860 = vmatprep.subr.bf16.mxu1 %v7781_v27 }
 0x613   :  { %4902 = vmatpush1.bf16.msra.mxu0 %v7776_v46 }
 0x614   :  { %4903 = vmatprep.subr.bf16.mxu0 %v7784_v29 }
 0x615   :  { %4861 = vmatpush1.bf16.msra.mxu1 %v7779_v47 }
 0x616   :  { %4862 = vmatprep.subr.bf16.mxu1 %v7787_v48 }
 0x617   :  { %4904 = vmatpush1.bf16.msra.mxu0 %v7782_v49 }
 0x618   :  { %4905 = vmatprep.subr.bf16.mxu0 %v7790_v50 }
 0x619   :  { %4863 = vmatpush1.bf16.msra.mxu1 %v7785_v51 }
 0x61a   :  { %4864 = vmatprep.subr.bf16.mxu1 %v7793_v52 }
 0x61b   :  { %4906 = vmatpush1.bf16.msra.mxu0 %v7788_v14  ;;  %v7834_v14 = vld [vmem:[#allocation9] ss:$8 sps:$4 sm:$0xff]  }
 0x61c   :  { %4907 = vmatprep.subr.bf16.mxu0 %v7796_v15  ;;  %v7836_v15 = vld [vmem:[#allocation9 + $0x4] ss:$8 sps:$4 sm:$0xff]  }
 0x61d   :  { %4865 = vmatpush1.bf16.msra.mxu1 %v7791_v53  ;;  %v7837_v53 = vld [vmem:[#allocation9 + $0x80] ss:$8 sps:$4 sm:$0xff]  }
 0x61e   :  { %4866 = vmatprep.subr.bf16.mxu1 %v7799_v54  ;;  %v7842_v54 = vld [vmem:[#allocation9 + $0x14] ss:$8 sps:$4 sm:$0xff]  }
 0x61f   :  { %4908 = vmatpush1.bf16.msra.mxu0 %v7794_v55  ;;  %v7845_v55 = vld [vmem:[#allocation9 + $0x94] ss:$8 sps:$4 sm:$0xff]  }
 0x620   :  { %4909 = vmatprep.subr.bf16.mxu0 %v7802_v56  ;;  %v7840_v56 = vld [vmem:[#allocation9 + $0x10] ss:$8 sps:$4 sm:$0xff]  }
 0x621   :  { %4867 = vmatpush1.bf16.msra.mxu1 %v7797_v57  ;;  %v7843_v57 = vld [vmem:[#allocation9 + $0x90] ss:$8 sps:$4 sm:$0xff]  }
 0x622   :  { %4868 = vmatprep.subr.bf16.mxu1 %v7805_v58  ;;  %v7848_v58 = vld [vmem:[#allocation9 + $0x24] ss:$8 sps:$4 sm:$0xff]  }
 0x623   :  { %4910 = vmatpush1.bf16.msra.mxu0 %v7800_v59  ;;  %v7851_v59 = vld [vmem:[#allocation9 + $0xa4] ss:$8 sps:$4 sm:$0xff]  }
 0x624   :  { %4911 = vmatprep.subr.bf16.mxu0 %v7808_v60  ;;  %v7846_v60 = vld [vmem:[#allocation9 + $0x20] ss:$8 sps:$4 sm:$0xff]  }
 0x625   :  { %4869 = vmatpush1.bf16.msra.mxu1 %v7803_v61  ;;  %v7849_v61 = vld [vmem:[#allocation9 + $0xa0] ss:$8 sps:$4 sm:$0xff]  }
 0x626   :  { %4870 = vmatprep.subr.bf16.mxu1 %v7811_v62  ;;  %v7854_v62 = vld [vmem:[#allocation9 + $0x34] ss:$8 sps:$4 sm:$0xff]  }
 0x627   :  { %4912 = vmatpush1.bf16.msra.mxu0 %v7806_v37  ;;  %v7857_v37 = vld [vmem:[#allocation9 + $0xb4] ss:$8 sps:$4 sm:$0xff]  }
 0x628   :  { %4913 = vmatprep.subr.bf16.mxu0 %v7814_v63  ;;  %v7852_v63 = vld [vmem:[#allocation9 + $0x30] ss:$8 sps:$4 sm:$0xff]  }
 0x629   :  { %4871 = vmatpush1.bf16.msra.mxu1 %v7809_v3  ;;  %v7855_v3 = vld [vmem:[#allocation9 + $0xb0] ss:$8 sps:$4 sm:$0xff]  }
 0x62a   :  { %4872 = vmatprep.subr.bf16.mxu1 %v7817_v4  ;;  %v7860_v4 = vld [vmem:[#allocation9 + $0x44] ss:$8 sps:$4 sm:$0xff]  }
 0x62b   :  { %4914 = vmatpush1.bf16.msra.mxu0 %v7812_v5  ;;  %v7863_v5 = vld [vmem:[#allocation9 + $0xc4] ss:$8 sps:$4 sm:$0xff]  }
 0x62c   :  { %5209 = vmatprep.subr.bf16.mxu0 %v7836_v15 }
 0x62d   :  { %4873 = vmatpush1.bf16.msra.mxu1 %v7815_v6  ;;  %v7858_v6 = vld [vmem:[#allocation9 + $0x40] ss:$8 sps:$4 sm:$0xff]  }
 0x62e   :  { %4916 = vmatmul.mubr.bf16.vlgmr.msra.gmra.mrb[24].mxu0 %v8555_v28  ;;  %6835 = vmatprep.subr.bf16.mxu1 %v7818_v7  ;;  %v7861_v7 = vld [vmem:[#allocation9 + $0xc0] ss:$8 sps:$4 sm:$0xff]  }
 0x62f   :  { %5241 = vmatprep.mubr.bf16.mxu0 %v8200_v8  ;;  %5210 = vmatpush1.bf16.msra.mxu0 %v7834_v14 }
 0x630   :  { %4875 = vmatmul.mubr.bf16.vlgmr.msra.gmra.mrb[28].mxu1 %v8555_v28  ;;  %5211 = vmatprep.subr.bf16.mxu0 %v7842_v54 }
 0x631   :  { %6836 = vmatpush3.bf16.msra.mxu1 %v7819_v10  ;;  %4956 = vmatprep.mubr.bf16.mxu1 %v8561_v30  ;;  %v7830_v30 = vld [vmem:[#allocation7 + $0x410] ss:$36 sps:$4 sm:$0xff]  }
 0x632   :  { %6837 = vmatprep.subr.bf16.mxu1 %v7820_v12  ;;  %v7866_v10 = vld [vmem:[#allocation9 + $0x54] ss:$8 sps:$4 sm:$0xff]  }
 0x633   :  { %5212 = vmatpush1.bf16.msra.mxu0 %v7840_v56  ;;  %v7869_v12 = vld [vmem:[#allocation9 + $0xd4] ss:$8 sps:$4 sm:$0xff]  }
 0x634   :  { %5213 = vmatprep.subr.bf16.mxu0 %v7848_v58  ;;  %v8805_v58 = vld [vmem:[%s8851_s12 + $0x1] ss:$4 sm:$0x3] }
 0x635   :  { %6838 = vmatpush3.bf16.msra.mxu1 %v7821_v2  ;;  %v7864_v2 = vld [vmem:[#allocation9 + $0x50] ss:$8 sps:$4 sm:$0xff]  }
 0x636   :  { %6839 = vmatprep.subr.bf16.mxu1 %v7822_v17  ;;  %v7867_v17 = vld [vmem:[#allocation9 + $0xd0] ss:$8 sps:$4 sm:$0xff]  }
 0x637   :  { %5214 = vmatpush1.bf16.msra.mxu0 %v7846_v60 }
 0x638   :  { %5215 = vmatprep.subr.bf16.mxu0 %v7854_v62  ;;  %v7885_v62 = vld [vmem:[#allocation9 + $0x100] ss:$8 sps:$4 sm:$0xff]  }
 0x639   :  { %6840 = vmatpush3.bf16.msra.mxu1 %v7823_v0  ;;  %v7872_v0 = vld [vmem:[#allocation9 + $0x64] ss:$8 sps:$4 sm:$0xff]  }
 0x63a   :  { %6841 = vmatprep.subr.bf16.mxu1 %v7824_v18  ;;  %v7870_v18 = vld [vmem:[#allocation9 + $0x60] ss:$8 sps:$4 sm:$0xff]  }
 0x63b   :  { %5216 = vmatpush1.bf16.msra.mxu0 %v7852_v63 }
 0x63c   :  { %5217 = vmatprep.subr.bf16.mxu0 %v7860_v4  ;;  %v7888_v4 = vld [vmem:[#allocation9 + $0x190] ss:$8 sps:$4 sm:$0xff]  }
 0x63d   :  { %6842 = vmatpush3.bf16.msra.mxu1 %v7825_v1  ;;  %v7875_v1 = vld [vmem:[#allocation9 + $0xe4] ss:$8 sps:$4 sm:$0xff]  }
 0x63e   :  { %6843 = vmatprep.subr.bf16.mxu1 %v7826_v19  ;;  %v7873_v19 = vld [vmem:[#allocation9 + $0xe0] ss:$8 sps:$4 sm:$0xff]  }
 0x63f   :  { %5218 = vmatpush1.bf16.msra.mxu0 %v7858_v6  ;;  %v7891_v6 = vld [vmem:[#allocation9 + $0x110] ss:$8 sps:$4 sm:$0xff]  }
 0x640   :  { %5219 = vmatprep.subr.bf16.mxu0 %v7866_v10  ;;  %v7899_v10 = vld [vmem:[#allocation9 + $0x124] ss:$8 sps:$4 sm:$0xff]  }
 0x641   :  { %6844 = vmatpush3.bf16.msra.mxu1 %v7827_v20  ;;  %v3356_v22 = vpop.f32.mrb[12].mxu0  ;;  %v7878_v20 = vld [vmem:[#allocation9 + $0x74] ss:$8 sps:$4 sm:$0xff]  }
 0x642   :  { %v3358_v24 = vpop.f32.mrb[13].mxu0  ;;  %6845 = vmatprep.subr.bf16.mxu1 %v7828_v21  ;;  %v7876_v21 = vld [vmem:[#allocation9 + $0x70] ss:$8 sps:$4 sm:$0xff]  }
 0x643   :  { %v3155_v31 = vpop.f32.mrb[16].mxu1  ;;  %v3360_v44 = vpop.f32.mrb[14].mxu0  ;;  %5220 = vmatpush1.bf16.msra.mxu0 %v7864_v2  ;;  %v7902_v2 = vld [vmem:[#allocation9 + $0x1b4] ss:$8 sps:$4 sm:$0xff]  }
 0x644   :  { %v3357_v45 = vadd.f32 %v3356_v22, %v3155_v31  ;;  %v3157_v32 = vpop.f32.mrb[17].mxu1  ;;  %v3361_v33 = vpop.f32.mrb[15].mxu0  ;;  %5221 = vmatprep.subr.bf16.mxu0 %v7872_v0  ;;  %v7881_v22 = vld [vmem:[#allocation9 + $0xf4] ss:$8 sps:$4 sm:$0xff]  }
 0x645   :  { %v3359_v34 = vadd.f32 %v3358_v24, %v3157_v32  ;;  %6846 = vmatpush3.bf16.msra.mxu1 %v7829_v23  ;;  %v3159_v35 = vpop.f32.mrb[18].mxu1  ;;  %v7879_v23 = vld [vmem:[#allocation9 + $0xf0] ss:$8 sps:$4 sm:$0xff]   ;;  %v7884_v24 = vld [vmem:[#allocation9 + $0x184] ss:$8 sps:$4 sm:$0xff]  }
 0x646   :  { %v3160_v38 = vpop.f32.mrb[19].mxu1  ;;  %6847 = vmatprep.subr.bf16.mxu1 %v7830_v30  ;;  %v7887_v30 = vld [vmem:[#allocation9 + $0x104] ss:$8 sps:$4 sm:$0xff]  }
 0x647   :  { %5222 = vmatpush1.bf16.msra.mxu0 %v7870_v18  ;;  %v7905_v18 = vld [vmem:[#allocation9 + $0x134] ss:$8 sps:$4 sm:$0xff]  }
 0x648   :  { %5223 = vmatprep.subr.bf16.mxu0 %v7878_v20  ;;  %v7903_v20 = vld [vmem:[#allocation9 + $0x130] ss:$8 sps:$4 sm:$0xff]  }
 0x649   :  { %6848 = vmatpush3.bf16.msra.mxu1 %v7831_v36 }
 0x64a   :  { %6849 = vmatprep.subr.bf16.mxu1 %v7832_v39 }
 0x64b   :  { %5224 = vmatpush1.bf16.msra.mxu0 %v7876_v21  ;;  %v7914_v21 = vld [vmem:[#allocation9 + $0x1d4] ss:$8 sps:$4 sm:$0xff]  }
 0x64c   :  { %5489 = vmatprep.subr.bf16.mxu0 %v7884_v24  ;;  %v7912_v24 = vld [vmem:[#allocation9 + $0x1d0] ss:$8 sps:$4 sm:$0xff]  }
 0x64d   :  { %6850 = vmatpush3.bf16.msra.mxu1 %v7833_v40 }
 0x650   :  { %4957 = vmatmul.mubr.bf16.vlgmr.msra.gmra.mrb[32].mxu1 %v8555_v28  ;;  %v7839_v28 = vld [vmem:[#allocation9 + $0x84] ss:$8 sps:$4 sm:$0xff]  }
 0x651   :  { %5120 = vmatprep.mubr.bf16.mxu1 %v8200_v8  ;;  %5088 = vmatprep.subr.bf16.mxu1 %v7839_v28 }
 0x652   :  { %5089 = vmatpush1.bf16.msra.mxu1 %v7837_v53 }
 0x653   :  { %5090 = vmatprep.subr.bf16.mxu1 %v7845_v55 }
 0x656   :  { %5091 = vmatpush1.bf16.msra.mxu1 %v7843_v57 }
 0x657   :  { %5092 = vmatprep.subr.bf16.mxu1 %v7851_v59  ;;  %v7882_v59 = vld [vmem:[#allocation9 + $0x180] ss:$8 sps:$4 sm:$0xff]  }
 0x65a   :  { %5093 = vmatpush1.bf16.msra.mxu1 %v7849_v61  ;;  %v7890_v61 = vld [vmem:[#allocation9 + $0x194] ss:$8 sps:$4 sm:$0xff]  }
 0x65b   :  { %5094 = vmatprep.subr.bf16.mxu1 %v7857_v37  ;;  %v3851_v37 = vrot.slane %v8805_v58, %v8541_v11 }
 0x65e   :  { %5095 = vmatpush1.bf16.msra.mxu1 %v7855_v3  ;;  %v7893_v3 = vld [vmem:[#allocation9 + $0x114] ss:$8 sps:$4 sm:$0xff]  }
 0x65f   :  { %5096 = vmatprep.subr.bf16.mxu1 %v7863_v5  ;;  %v7896_v5 = vld [vmem:[#allocation9 + $0x1a4] ss:$8 sps:$4 sm:$0xff]  }
 0x662   :  { %5097 = vmatpush1.bf16.msra.mxu1 %v7861_v7 }
 0x663   :  { %5098 = vmatprep.subr.bf16.mxu1 %v7869_v12  ;;  %v7894_v12 = vld [vmem:[#allocation9 + $0x1a0] ss:$8 sps:$4 sm:$0xff]  }
 0x666   :  { %5099 = vmatpush1.bf16.msra.mxu1 %v7867_v17  ;;  %v7897_v17 = vld [vmem:[#allocation9 + $0x120] ss:$8 sps:$4 sm:$0xff]  }
 0x667   :  { %5100 = vmatprep.subr.bf16.mxu1 %v7875_v1  ;;  %v7900_v1 = vld [vmem:[#allocation9 + $0x1b0] ss:$8 sps:$4 sm:$0xff]  }
 0x66a   :  { %5101 = vmatpush1.bf16.msra.mxu1 %v7873_v19  ;;  %v7908_v19 = vld [vmem:[#allocation9 + $0x1c4] ss:$8 sps:$4 sm:$0xff]  }
 0x66b   :  { %5102 = vmatprep.subr.bf16.mxu1 %v7881_v22  ;;  %v7909_v22 = vld [vmem:[#allocation9 + $0x140] ss:$8 sps:$4 sm:$0xff]  }
 0x66e   :  { %5103 = vmatpush1.bf16.msra.mxu1 %v7879_v23  ;;  %v7917_v23 = vld [vmem:[#allocation9 + $0x154] ss:$8 sps:$4 sm:$0xff]  }
 0x66f   :  { %5348 = vmatprep.subr.bf16.mxu1 %v7887_v30  ;;  %v7920_v30 = vld [vmem:[#allocation9 + $0x1e4] ss:$8 sps:$4 sm:$0xff]  }
 0x681   :  { %v3832_v41 = vpop.f32.mrb[16].mxu0 }
 0x682   :  { %v3834_v42 = vpop.f32.mrb[17].mxu0 }
 0x683   :  { %v3593_v43 = vpop.f32.mrb[20].mxu1  ;;  %v3836_v27 = vpop.f32.mrb[18].mxu0 }
 0x684   :  { %v3600_v46 = vadd.f32 %v3593_v43, %v3357_v45  ;;  %v3595_v29 = vpop.f32.mrb[21].mxu1  ;;  %v3837_v47 = vpop.f32.mrb[19].mxu0 }
 0x685   :  { %v3601_v48 = vadd.f32 %v3595_v29, %v3359_v34  ;;  %v3597_v49 = vpop.f32.mrb[22].mxu1 }
 0x686   :  { %v8798_v50 = vadd.f32 %v3832_v41, %v3600_v46  ;;  %v3598_v51 = vpop.f32.mrb[23].mxu1 }
 0x687   :  { %v8800_v52 = vadd.f32 %v3834_v42, %v3601_v48 }
 0x689   :  { %v3855_v7 = vadd.f32 %v3851_v37, %v8800_v52  ;;  %v7906_v52 = vld [vmem:[#allocation9 + $0x1c0] ss:$8 sps:$4 sm:$0xff]   ;;  %v7959_v37 = vld [vmem:[#allocation10 + $0x94] ss:$8 sps:$4 sm:$0xff]  }
 0x68b   :  { %v3857_v0 = vmul.f32 0.5, %v3855_v7  ;;  %v7965_v7 = vld [vmem:[#allocation10 + $0xb4] ss:$8 sps:$4 sm:$0xff]  }
 0x68d   :  { %8034 = vtanh.f32 %v3857_v0 }
 0x6c1   :  { %v4835_v31 = vpop.f32.mrb[20].mxu0 }
 0x6c2   :  { %v4837_v44 = vpop.f32.mrb[21].mxu0 }
 0x6c3   :  { %v4794_v45 = vpop.f32.mrb[24].mxu1  ;;  %v4839_v32 = vpop.f32.mrb[22].mxu0 }
 0x6c4   :  { %v4796_v33 = vpop.f32.mrb[25].mxu1  ;;  %v4840_v34 = vpop.f32.mrb[23].mxu0 }
 0x6c5   :  { %v4964_v35 = vmax.f32 %v4794_v45, %v4796_v33  ;;  %v4798_v36 = vpop.f32.mrb[26].mxu1  ;;  %v7918_v45 = vld [vmem:[#allocation9 + $0x1e0] ss:$8 sps:$4 sm:$0xff]   ;;  %v8035_v32 = vpop.eup %8034  ;;  %v7926_v33 = vld [vmem:[#allocation9 + $0x1f4] ss:$8 sps:$4 sm:$0xff]  }
 0x6c6   :  { %v4799_v38 = vpop.f32.mrb[27].mxu1  ;;  %v7921_v34 = vld [vmem:[#allocation9 + $0x160] ss:$8 sps:$4 sm:$0xff]   ;;  %v7924_v36 = vld [vmem:[#allocation9 + $0x1f0] ss:$8 sps:$4 sm:$0xff]  }
 0x6c7   :  { %v4965_v39 = vmax.f32 %v4964_v35, %v4835_v31  ;;  %v7915_v31 = vld [vmem:[#allocation9 + $0x150] ss:$8 sps:$4 sm:$0xff]   ;;  %v7929_v35 = vld [vmem:[#allocation9 + $0x174] ss:$8 sps:$4 sm:$0xff]   ;;  %v3861_v38 = vadd.f32 1.0, %v8035_v32 }
 0x6c8   :  { %v7992_v32 = vld [vmem:[#allocation10 + $0x144] ss:$8 sps:$4 sm:$0xff]  }
 0x6c9   :  { %v4966_v40 = vmax.f32 %v4965_v39, %v4837_v44  ;;  %v7923_v44 = vld [vmem:[#allocation9 + $0x164] ss:$8 sps:$4 sm:$0xff]   ;;  %v7927_v39 = vld [vmem:[#allocation9 + $0x170] ss:$8 sps:$4 sm:$0xff]  }
 0x701   :  { %v4917_v41 = vpop.f32.mrb[24].mxu0 }
 0x702   :  { %v4919_v42 = vpop.f32.mrb[25].mxu0 }
 0x703   :  { %v4876_v43 = vpop.f32.mrb[28].mxu1  ;;  %v4921_v27 = vpop.f32.mrb[26].mxu0 }
 0x704   :  { %v4967_v46 = vmax.f32 %v4966_v40, %v4876_v43  ;;  %v4878_v29 = vpop.f32.mrb[29].mxu1  ;;  %v4922_v47 = vpop.f32.mrb[27].mxu0  ;;  %v7932_v40 = vld [vmem:[#allocation10 + $0x4] ss:$8 sps:$4 sm:$0xff]   ;;  %v7930_v43 = vld [vmem:[#allocation10] ss:$8 sps:$4 sm:$0xff]  }
 0x705   :  { %v4880_v48 = vpop.f32.mrb[30].mxu1  ;;  %v7933_v47 = vld [vmem:[#allocation10 + $0x10] ss:$8 sps:$4 sm:$0xff]  }
 0x706   :  { %v4968_v49 = vmax.f32 %v4967_v46, %v4878_v29  ;;  %v4881_v51 = vpop.f32.mrb[31].mxu1  ;;  %v7935_v46 = vld [vmem:[#allocation10 + $0x14] ss:$8 sps:$4 sm:$0xff]   ;;  %v7938_v48 = vld [vmem:[#allocation10 + $0x24] ss:$8 sps:$4 sm:$0xff]  }
 0x707   :  { %v7941_v51 = vld [vmem:[#allocation10 + $0x34] ss:$8 sps:$4 sm:$0xff]  }
 0x708   :  { %v4969_v14 = vmax.f32 %v4968_v49, %v4917_v41  ;;  %v3863_v41 = vmul.f32 %v3861_v38, %v3857_v0  ;;  %v7936_v49 = vld [vmem:[#allocation10 + $0x20] ss:$8 sps:$4 sm:$0xff]  }
 0x709   :  { %v7996_v38 = vld [vmem:[#allocation10 + $0x160] ss:$8 sps:$4 sm:$0xff]  }
 0x70a   :  { %v4970_v15 = vmax.f32 %v4969_v14, %v4919_v42  ;;  %v5556_v29 = vpack.c.bf16 %v3863_v41, %v3863_v41  ;;  %v7939_v14 = vld [vmem:[#allocation10 + $0x30] ss:$8 sps:$4 sm:$0xff]   ;;  %v8004_v41 = vld [vmem:[#allocation10 + $0x184] ss:$8 sps:$4 sm:$0xff]  }
 0x723   :  { %v6851_v53 = vpop.f32.mrb[32].mxu1 }
 0x724   :  { %v6852_v28 = vpop.f32.mrb[33].mxu1 }
 0x725   :  { %v6853_v54 = vadd.f32 %v6852_v28, %v6851_v53  ;;  %v6854_v55 = vpop.f32.mrb[34].mxu1  ;;  %v7942_v53 = vld [vmem:[#allocation10 + $0x40] ss:$8 sps:$4 sm:$0xff]   ;;  %v7947_v28 = vld [vmem:[#allocation10 + $0x54] ss:$8 sps:$4 sm:$0xff]  }
 0x726   :  { %v6855_v56 = vpop.f32.mrb[35].mxu1  ;;  %v7950_v55 = vld [vmem:[#allocation10 + $0x64] ss:$8 sps:$4 sm:$0xff]  }
 0x727   :  { %v4971_v57 = vmax.f32 %v4970_v15, %v6853_v54  ;;  %v7944_v15 = vld [vmem:[#allocation10 + $0x44] ss:$8 sps:$4 sm:$0xff]   ;;  %v7945_v54 = vld [vmem:[#allocation10 + $0x50] ss:$8 sps:$4 sm:$0xff]   ;;  %v7948_v56 = vld [vmem:[#allocation10 + $0x60] ss:$8 sps:$4 sm:$0xff]  }
 0x729   :  { %v8807_v60 = vpack.c.bf16 %v4971_v57, %v4971_v57  ;;  %v7953_v57 = vld [vmem:[#allocation10 + $0x74] ss:$8 sps:$4 sm:$0xff]  }
 0x72b   :  { %5242 = vmatmul.mubr.bf16.vlgmr.msra.gmra.mrb[28].mxu0 %v8807_v60  ;;  %v5006_v63 = vrot.slane %v8807_v60, 1  ;;  %v5407_v42 = vrot.slane %v8807_v60, 3  ;;  %v5266_v27 = vrot.slane %v8807_v60, 2  ;;  %v7956_v60 = vld [vmem:[#allocation10 + $0x84] ss:$8 sps:$4 sm:$0xff]  }
 0x72c   :  { %5490 = vmatpush1.bf16.msra.mxu0 %v7882_v59  ;;  %5521 = vmatprep.mubr.bf16.mxu0 %v8200_v8  ;;  %v7951_v59 = vld [vmem:[#allocation10 + $0x70] ss:$8 sps:$4 sm:$0xff]  }
 0x72d   :  { %5121 = vmatmul.mubr.bf16.vlgmr.msra.gmra.mrb[36].mxu1 %v5006_v63  ;;  %5491 = vmatprep.subr.bf16.mxu0 %v7890_v61  ;;  %v3847_v61 = vrot.slane %v8805_v58, %v8535_v9  ;;  %v7968_v58 = vld [vmem:[#allocation10 + $0xc4] ss:$8 sps:$4 sm:$0xff]  }
 0x72e   :  { %5349 = vmatpush1.bf16.msra.mxu1 %v7885_v62  ;;  %5380 = vmatprep.mubr.bf16.mxu1 %v8200_v8  ;;  %v7911_v8 = vld [vmem:[#allocation9 + $0x144] ss:$8 sps:$4 sm:$0xff]   ;;  %v7954_v62 = vld [vmem:[#allocation10 + $0x80] ss:$8 sps:$4 sm:$0xff]  }
 0x72f   :  { %5350 = vmatprep.subr.bf16.mxu1 %v7893_v3  ;;  %v3854_v63 = vadd.f32 %v3847_v61, %v8798_v50  ;;  %v7957_v3 = vld [vmem:[#allocation10 + $0x90] ss:$8 sps:$4 sm:$0xff]  }
 0x730   :  { %5492 = vmatpush1.bf16.msra.mxu0 %v7888_v4  ;;  %v7962_v4 = vld [vmem:[#allocation10 + $0xa4] ss:$8 sps:$4 sm:$0xff]   ;;  %v7969_v50 = vld [vmem:[#allocation10 + $0xd0] ss:$8 sps:$4 sm:$0xff]  }
 0x731   :  { %5493 = vmatprep.subr.bf16.mxu0 %v7896_v5  ;;  %v3856_v5 = vmul.f32 0.5, %v3854_v63 }
 0x732   :  { %5351 = vmatpush1.bf16.msra.mxu1 %v7891_v6  ;;  %v7960_v6 = vld [vmem:[#allocation10 + $0xa0] ss:$8 sps:$4 sm:$0xff]  }
 0x733   :  { %5352 = vmatprep.subr.bf16.mxu1 %v7899_v10  ;;  %8036 = vtanh.f32 %v3856_v5  ;;  %v7963_v10 = vld [vmem:[#allocation10 + $0xb0] ss:$8 sps:$4 sm:$0xff]  }
 0x734   :  { %5494 = vmatpush1.bf16.msra.mxu0 %v7894_v12  ;;  %v7966_v12 = vld [vmem:[#allocation10 + $0xc0] ss:$8 sps:$4 sm:$0xff]  }
 0x735   :  { %5495 = vmatprep.subr.bf16.mxu0 %v7902_v2  ;;  %v7971_v2 = vld [vmem:[#allocation10 + $0xd4] ss:$8 sps:$4 sm:$0xff]  }
 0x736   :  { %5353 = vmatpush1.bf16.msra.mxu1 %v7897_v17  ;;  %v7974_v17 = vld [vmem:[#allocation10 + $0xe4] ss:$8 sps:$4 sm:$0xff]  }
 0x737   :  { %5354 = vmatprep.subr.bf16.mxu1 %v7905_v18  ;;  %v7972_v18 = vld [vmem:[#allocation10 + $0xe0] ss:$8 sps:$4 sm:$0xff]  }
 0x738   :  { %5496 = vmatpush1.bf16.msra.mxu0 %v7900_v1 }
 0x739   :  { %5497 = vmatprep.subr.bf16.mxu0 %v7908_v19  ;;  %v7977_v19 = vld [vmem:[#allocation10 + $0xf4] ss:$8 sps:$4 sm:$0xff]  }
 0x73a   :  { %5355 = vmatpush1.bf16.msra.mxu1 %v7903_v20  ;;  %v7975_v20 = vld [vmem:[#allocation10 + $0xf0] ss:$8 sps:$4 sm:$0xff]  }
 0x73b   :  { %5356 = vmatprep.subr.bf16.mxu1 %v7911_v8 }
 0x73c   :  { %5498 = vmatpush1.bf16.msra.mxu0 %v7906_v52  ;;  %v7980_v52 = vld [vmem:[#allocation10 + $0x104] ss:$8 sps:$4 sm:$0xff]  }
 0x73d   :  { %5499 = vmatprep.subr.bf16.mxu0 %v7914_v21  ;;  %v8037_v0 = vpop.eup %8036  ;;  %v7978_v21 = vld [vmem:[#allocation10 + $0x100] ss:$8 sps:$4 sm:$0xff]  }
 0x73e   :  { %5357 = vmatpush1.bf16.msra.mxu1 %v7909_v22  ;;  %v3860_v1 = vadd.f32 1.0, %v8037_v0 }
 0x73f   :  { %5358 = vmatprep.subr.bf16.mxu1 %v7917_v23  ;;  %v7983_v23 = vld [vmem:[#allocation10 + $0x114] ss:$8 sps:$4 sm:$0xff]  }
 0x740   :  { %5500 = vmatpush1.bf16.msra.mxu0 %v7912_v24  ;;  %v3862_v8 = vmul.f32 %v3860_v1, %v3856_v5  ;;  %v7981_v24 = vld [vmem:[#allocation10 + $0x110] ss:$8 sps:$4 sm:$0xff]  }
 0x741   :  { %5501 = vmatprep.subr.bf16.mxu0 %v7920_v30  ;;  %v7986_v30 = vld [vmem:[#allocation10 + $0x124] ss:$8 sps:$4 sm:$0xff]  }
 0x742   :  { %5359 = vmatpush1.bf16.msra.mxu1 %v7915_v31  ;;  %v5555_v22 = vpack.c.bf16 %v3862_v8, %v3862_v8  ;;  %v7984_v31 = vld [vmem:[#allocation10 + $0x120] ss:$8 sps:$4 sm:$0xff]  }
 0x743   :  { %5360 = vmatprep.subr.bf16.mxu1 %v7923_v44  ;;  %v7989_v44 = vld [vmem:[#allocation10 + $0x134] ss:$8 sps:$4 sm:$0xff]  }
 0x744   :  { %5502 = vmatpush1.bf16.msra.mxu0 %v7918_v45  ;;  %v7987_v45 = vld [vmem:[#allocation10 + $0x130] ss:$8 sps:$4 sm:$0xff]  }
 0x745   :  { %5503 = vmatprep.subr.bf16.mxu0 %v7926_v33  ;;  %v7990_v33 = vld [vmem:[#allocation10 + $0x140] ss:$8 sps:$4 sm:$0xff]  }
 0x746   :  { %5361 = vmatpush1.bf16.msra.mxu1 %v7921_v34  ;;  %v7995_v34 = vld [vmem:[#allocation10 + $0x154] ss:$8 sps:$4 sm:$0xff]  }
 0x747   :  { %5362 = vmatprep.subr.bf16.mxu1 %v7929_v35  ;;  %v7993_v35 = vld [vmem:[#allocation10 + $0x150] ss:$8 sps:$4 sm:$0xff]  }
 0x748   :  { %5504 = vmatpush1.bf16.msra.mxu0 %v7924_v36  ;;  %v7998_v36 = vld [vmem:[#allocation10 + $0x164] ss:$8 sps:$4 sm:$0xff]  }
 0x74a   :  { %5363 = vmatpush1.bf16.msra.mxu1 %v7927_v39  ;;  %v8001_v39 = vld [vmem:[#allocation10 + $0x174] ss:$8 sps:$4 sm:$0xff]  }
 0x74b   :  { %5522 = vmatmul.mubr.bf16.vlgmr.msra.gmra.mrb[32].mxu0 %v5407_v42  ;;  %5956 = vmatprep.subr.bf16.mxu1 %v7932_v40  ;;  %v7999_v40 = vld [vmem:[#allocation10 + $0x170] ss:$8 sps:$4 sm:$0xff]   ;;  %v8002_v42 = vld [vmem:[#allocation10 + $0x180] ss:$8 sps:$4 sm:$0xff]  }
 0x74d   :  { %5381 = vmatmul.mubr.bf16.vlgmr.msra.gmra.mrb[40].mxu1 %v5266_v27  ;;  %v8005_v27 = vld [vmem:[#allocation10 + $0x190] ss:$8 sps:$4 sm:$0xff]  }
 0x74e   :  { %5957 = vmatpush1.bf16.msra.mxu1 %v7930_v43  ;;  %5988 = vmatprep.mubr.bf16.mxu1 %v5556_v29  ;;  %v8007_v43 = vld [vmem:[#allocation10 + $0x194] ss:$8 sps:$4 sm:$0xff]   ;;  %v8008_v29 = vld [vmem:[#allocation10 + $0x1a0] ss:$8 sps:$4 sm:$0xff]  }
 0x74f   :  { %5958 = vmatprep.subr.bf16.mxu1 %v7935_v46  ;;  %v8010_v46 = vld [vmem:[#allocation10 + $0x1a4] ss:$8 sps:$4 sm:$0xff]  }
 0x752   :  { %5959 = vmatpush1.bf16.msra.mxu1 %v7933_v47  ;;  %v8013_v47 = vld [vmem:[#allocation10 + $0x1b4] ss:$8 sps:$4 sm:$0xff]  }
 0x753   :  { %5960 = vmatprep.subr.bf16.mxu1 %v7938_v48  ;;  %v8011_v48 = vld [vmem:[#allocation10 + $0x1b0] ss:$8 sps:$4 sm:$0xff]  }
 0x756   :  { %5961 = vmatpush1.bf16.msra.mxu1 %v7936_v49  ;;  %v8016_v49 = vld [vmem:[#allocation10 + $0x1c4] ss:$8 sps:$4 sm:$0xff]  }
 0x757   :  { %5962 = vmatprep.subr.bf16.mxu1 %v7941_v51  ;;  %v8014_v51 = vld [vmem:[#allocation10 + $0x1c0] ss:$8 sps:$4 sm:$0xff]  }
 0x75a   :  { %5963 = vmatpush1.bf16.msra.mxu1 %v7939_v14  ;;  %v8019_v14 = vld [vmem:[#allocation10 + $0x1d4] ss:$8 sps:$4 sm:$0xff]  }
 0x75b   :  { %5964 = vmatprep.subr.bf16.mxu1 %v7944_v15  ;;  %v8017_v15 = vld [vmem:[#allocation10 + $0x1d0] ss:$8 sps:$4 sm:$0xff]  }
 0x75e   :  { %5965 = vmatpush1.bf16.msra.mxu1 %v7942_v53  ;;  %v8022_v53 = vld [vmem:[#allocation10 + $0x1e4] ss:$8 sps:$4 sm:$0xff]  }
 0x75f   :  { %5966 = vmatprep.subr.bf16.mxu1 %v7947_v28  ;;  %v8020_v28 = vld [vmem:[#allocation10 + $0x1e0] ss:$8 sps:$4 sm:$0xff]  }
 0x762   :  { %5967 = vmatpush1.bf16.msra.mxu1 %v7945_v54  ;;  %v8025_v54 = vld [vmem:[#allocation10 + $0x1f4] ss:$8 sps:$4 sm:$0xff]  }
 0x763   :  { %5968 = vmatprep.subr.bf16.mxu1 %v7950_v55  ;;  %v8023_v55 = vld [vmem:[#allocation10 + $0x1f0] ss:$8 sps:$4 sm:$0xff]  }
 0x766   :  { %5969 = vmatpush1.bf16.msra.mxu1 %v7948_v56 }
 0x767   :  { %5970 = vmatprep.subr.bf16.mxu1 %v7953_v57 }
 0x76a   :  { %5971 = vmatpush1.bf16.msra.mxu1 %v7951_v59 }
 0x76b   :  { %5972 = vmatprep.subr.bf16.mxu1 %v7956_v60 }
 0x76e   :  { %5973 = vmatpush1.bf16.msra.mxu1 %v7954_v62 }
 0x76f   :  { %5974 = vmatprep.subr.bf16.mxu1 %v7959_v37 }
 0x772   :  { %5975 = vmatpush1.bf16.msra.mxu1 %v7957_v3 }
 0x773   :  { %5976 = vmatprep.subr.bf16.mxu1 %v7962_v4 }
 0x776   :  { %5977 = vmatpush1.bf16.msra.mxu1 %v7960_v6  ;;  %v6769_v6 = vld [vmem:[%s8851_s12 + $0x2] ss:$4 sm:$0x3] }
 0x777   :  { %5978 = vmatprep.subr.bf16.mxu1 %v7965_v7 }
 0x77a   :  { %5979 = vmatpush1.bf16.msra.mxu1 %v7963_v10 }
 0x77b   :  { %5980 = vmatprep.subr.bf16.mxu1 %v7968_v58 }
 0x77e   :  { %5981 = vmatpush1.bf16.msra.mxu1 %v7966_v12 }
 0x77f   :  { %5982 = vmatprep.subr.bf16.mxu1 %v7971_v2  ;;  %v5538_v2 = vrot.slane %v6769_v6, %v8535_v9 }
 0x782   :  { %5983 = vmatpush1.bf16.msra.mxu1 %v7969_v50 }
 0x783   :  { %5984 = vmatprep.subr.bf16.mxu1 %v7974_v17 }
 0x786   :  { %5985 = vmatpush1.bf16.msra.mxu1 %v7972_v18  ;;  %v5542_v18 = vrot.slane %v6769_v6, %v8541_v11 }
 0x787   :  { %5986 = vmatprep.subr.bf16.mxu1 %v7977_v19 }
 0x78a   :  { %5987 = vmatpush1.bf16.msra.mxu1 %v7975_v20 }
 0x78b   :  { %5997 = vmatprep.subr.bf16.mxu1 %v7980_v52 }
 0x78d   :  { %5989 = vmatmul.mubr.bf16.vlgmr.msra.gmra.mrb[44].mxu1 %v5555_v22 }
 0x78e   :  { %5998 = vmatpush1.bf16.msra.mxu1 %v7978_v21 }
 0x78f   :  { %5999 = vmatprep.subr.bf16.mxu1 %v7983_v23 }
 0x792   :  { %6000 = vmatpush1.bf16.msra.mxu1 %v7981_v24 }
 0x793   :  { %6001 = vmatprep.subr.bf16.mxu1 %v7986_v30 }
 0x796   :  { %6002 = vmatpush1.bf16.msra.mxu1 %v7984_v31 }
 0x797   :  { %6003 = vmatprep.subr.bf16.mxu1 %v7989_v44 }
 0x79a   :  { %6004 = vmatpush1.bf16.msra.mxu1 %v7987_v45 }
 0x79b   :  { %6005 = vmatprep.subr.bf16.mxu1 %v7992_v32 }
 0x79e   :  { %6006 = vmatpush1.bf16.msra.mxu1 %v7990_v33 }
 0x79f   :  { %6007 = vmatprep.subr.bf16.mxu1 %v7995_v34 }
 0x7a2   :  { %6008 = vmatpush1.bf16.msra.mxu1 %v7993_v35  ;;  %v6770_v35 = vld [vmem:[%s8851_s12 + $0x3] ss:$4 sm:$0x3] }
 0x7a3   :  { %6009 = vmatprep.subr.bf16.mxu1 %v7998_v36  ;;  %v5629_v36 = vrot.slane %v6770_v35, %v8535_v9  ;;  %v6058_v9 = vrot.slane %v6050_v26, %v8379_v16 }
 0x7a6   :  { %6010 = vmatpush1.bf16.msra.mxu1 %v7996_v38  ;;  %v5633_v38 = vrot.slane %v6770_v35, %v8541_v11 }
 0x7a7   :  { %6011 = vmatprep.subr.bf16.mxu1 %v8001_v39 }
 0x7aa   :  { %6012 = vmatpush1.bf16.msra.mxu1 %v7999_v40 }
 0x7ab   :  { %6013 = vmatprep.subr.bf16.mxu1 %v8004_v41 }
 0x7ae   :  { %6014 = vmatpush1.bf16.msra.mxu1 %v8002_v42 }
 0x7af   :  { %6015 = vmatprep.subr.bf16.mxu1 %v8007_v43 }
 0x7b2   :  { %6016 = vmatpush1.bf16.msra.mxu1 %v8005_v27 }
 0x7b3   :  { %6017 = vmatprep.subr.bf16.mxu1 %v8010_v46 }
 0x7b6   :  { %6018 = vmatpush1.bf16.msra.mxu1 %v8008_v29 }
 0x7b7   :  { %6019 = vmatprep.subr.bf16.mxu1 %v8013_v47 }
 0x7ba   :  { %6020 = vmatpush1.bf16.msra.mxu1 %v8011_v48 }
 0x7bb   :  { %6021 = vmatprep.subr.bf16.mxu1 %v8016_v49 }
 0x7be   :  { %6022 = vmatpush1.bf16.msra.mxu1 %v8014_v51 }
 0x7bf   :  { %6023 = vmatprep.subr.bf16.mxu1 %v8019_v14 }
 0x7c2   :  { %6024 = vmatpush1.bf16.msra.mxu1 %v8017_v15 }
 0x7c3   :  { %6025 = vmatprep.subr.bf16.mxu1 %v8022_v53 }
 0x7c6   :  { %6026 = vmatpush1.bf16.msra.mxu1 %v8020_v28 }
 0x7c7   :  { %6027 = vmatprep.subr.bf16.mxu1 %v8025_v54 }
 0x7ca   :  { %6028 = vmatpush1.bf16.msra.mxu1 %v8023_v55 }
 0x7fe   :  { %v5243_v56 = vpop.f32.mrb[28].mxu0 }
 0x7ff   :  { %v5245_v57 = vpop.f32.mrb[29].mxu0 }
 0x800   :  { %v5122_v59 = vpop.f32.mrb[36].mxu1  ;;  %v5247_v60 = vpop.f32.mrb[30].mxu0 }
 0x801   :  { %v5244_v61 = vadd.f32 %v5243_v56, %v5122_v59  ;;  %v5124_v62 = vpop.f32.mrb[37].mxu1  ;;  %v5248_v37 = vpop.f32.mrb[31].mxu0 }
 0x802   :  { %v5246_v63 = vadd.f32 %v5245_v57, %v5124_v62  ;;  %v5126_v3 = vpop.f32.mrb[38].mxu1 }
 0x803   :  { %v5127_v4 = vpop.f32.mrb[39].mxu1 }
 0x81e   :  { %v5523_v5 = vpop.f32.mrb[32].mxu0 }
 0x81f   :  { %v5525_v7 = vpop.f32.mrb[33].mxu0 }
 0x820   :  { %v5382_v10 = vpop.f32.mrb[40].mxu1  ;;  %v5527_v58 = vpop.f32.mrb[34].mxu0 }
 0x821   :  { %v5389_v12 = vadd.f32 %v5382_v10, %v5244_v61  ;;  %v5384_v50 = vpop.f32.mrb[41].mxu1  ;;  %v5528_v17 = vpop.f32.mrb[35].mxu0 }
 0x822   :  { %v5390_v0 = vadd.f32 %v5384_v50, %v5246_v63  ;;  %v5386_v1 = vpop.f32.mrb[42].mxu1 }
 0x823   :  { %v5530_v19 = vadd.f32 %v5523_v5, %v5389_v12  ;;  %v5387_v20 = vpop.f32.mrb[43].mxu1 }
 0x824   :  { %v5531_v8 = vadd.f32 %v5525_v7, %v5390_v0 }
 0x825   :  { %v5545_v52 = vadd.f32 %v5538_v2, %v5530_v19 }
 0x826   :  { %v5546_v21 = vadd.f32 %v5542_v18, %v5531_v8 }
 0x827   :  { %v5547_v22 = vmul.f32 0.5, %v5545_v52 }
 0x828   :  { %v5548_v23 = vmul.f32 0.5, %v5546_v21 }
 0x829   :  { %8038 = vtanh.f32 %v5547_v22 }
 0x82a   :  { %8040 = vtanh.f32 %v5548_v23 }
 0x833   :  { %v8039_v24 = vpop.eup %8038 }
 0x834   :  { %v8041_v30 = vpop.eup %8040  ;;  %v5551_v31 = vadd.f32 1.0, %v8039_v24 }
 0x835   :  { %v5552_v44 = vadd.f32 1.0, %v8041_v30 }
 0x836   :  { %v5553_v45 = vmul.f32 %v5551_v31, %v5547_v22 }
 0x837   :  { %v5554_v32 = vmul.f32 %v5552_v44, %v5548_v23 }
 0x838   :  { %v5557_v34 = vpack.c.bf16 %v5553_v45, %v5553_v45 }
 0x839   :  { %v5558_v33 = vpack.c.bf16 %v5554_v32, %v5554_v32 }
 0x83b   :  { %6029 = vmatprep.mubr.bf16.mxu1 %v5558_v33 }
 0x83c   :  { %6030 = vmatmul.mubr.bf16.vlgmr.msra.gmra.mrb[44].mxu1 %v5557_v34 }
 0x90f   :  { %v6031_v39 = vpop.f32.mrb[44].mxu1 }
 0x910   :  { %v6859_v40 = vadd.f32 %v6031_v39, %v5629_v36  ;;  %v6033_v41 = vpop.f32.mrb[45].mxu1 }
 0x911   :  { %v6860_v42 = vadd.f32 %v6033_v41, %v5633_v38  ;;  %v6035_v43 = vpop.f32.mrb[46].mxu1 }
 0x912   :  { %v6038_v27 = vmul.f32 0.5, %v6859_v40  ;;  %v6036_v46 = vpop.f32.mrb[47].mxu1 }
 0x913   :  { %v6039_v29 = vmul.f32 0.5, %v6860_v42 }
 0x914   :  { %8042 = vtanh.f32 %v6038_v27 }
 0x915   :  { %8044 = vtanh.f32 %v6039_v29 }
 0x91e   :  { %v8043_v47 = vpop.eup %8042 }
 0x91f   :  { %v8045_v48 = vpop.eup %8044  ;;  %v6042_v49 = vadd.f32 1.0, %v8043_v47 }
 0x920   :  { %v6043_v51 = vadd.f32 1.0, %v8045_v48 }
 0x921   :  { %v6044_v14 = vmul.f32 %v6042_v49, %v6038_v27 }
 0x922   :  { %v6045_v15 = vmul.f32 %v6043_v51, %v6039_v29 }
 0x924   :  { %v6051_v53 = vcombine.low %v6044_v14, %v6045_v15 }
 0x926   :  { %v6065_v11 = vrot.slane %v6051_v53, %v8379_v16 }
 0x928   :  { %v6066_v28 = vcombine.low %v6058_v9, %v6065_v11 }
 0x92a   :  { %6068 = vst [vmem:[%s8852_s13] sm:$0xff] %v6066_v28 }
 0x92b   :  { %6073 = vsyncpa [#allocation3], 1 }
 0x92c   :  { %6074 = vsyncpa [#allocation5], 1 }
 0x92d   :  { %6075 = vsyncpa [#allocation8], 1 }
 0x92e   :  { %6076 = vsyncpa [#allocation11], 1 }

</bundles_post_ra>
